<compile_context>
chip_gen: v7x
topology: tpu7x:2x2x1
jax: 0.10.0
libtpu: 0.0.40
codegen_flags: <defaults>
</compile_context>

<pallas_src>
import jax
import jax.numpy as jnp
import numpy as np
from jax import lax
from jax.experimental import pallas as pl
from jax.experimental.pallas import tpu as pltpu


def _round_up(x, m):
    return (x + m - 1) // m * m


def attention_decoder_kernel(
    embed_ref,    # (T, Bt, H)  bf16  embedded decoder inputs, time-major
    ann_ref,      # (Bt, S, H)  f32   annotations (keys == values)
    h0_ref,       # (Bt, H)     f32   encoder final hidden state
    w1q_ref,      # (H, H)      bf16  attention W1, query half
    w1k_ref,      # (H, H)      bf16  attention W1, key half
    b1_ref,       # (1, H)      f32
    w2_ref,       # (1, H)      f32   attention W2 as a row vector
    b2_ref,       # (1, 1)      f32
    wic_ref,      # (H, 3H)     bf16  fused GRU input weights (z|r|h), context half
    wie_ref,      # (H, 3H)     bf16  fused GRU input weights (z|r|h), embedding half
    bi_ref,       # (1, 3H)     f32
    wh_ref,       # (H, 3H)     bf16  fused GRU hidden weights (z|r|h)
    bh_ref,       # (1, 3H)     f32
    wout_ref,     # (H, Vp)     bf16  output projection (vocab padded to Vp)
    bout_ref,     # (1, Vp)     f32
    out_ref,      # (T, Bt, Vp) f32
    att_ref,      # (T, Bt, S)  f32
):
    T = embed_ref.shape[0]
    Bt, S, H = ann_ref.shape

    values = ann_ref[...]                          # f32, used for the context
    ann_bf = values.astype(jnp.bfloat16)

    # Hoisted, loop-invariant key projection: keys @ W1_k + b1  -> (Bt, S, H)
    keys_proj = (
        jnp.dot(ann_bf.reshape(Bt * S, H), w1k_ref[...],
                preferred_element_type=jnp.float32)
        + b1_ref[...]
    ).reshape(Bt, S, H)

    w2_row = w2_ref[...].reshape(1, 1, H)          # (1, 1, H) f32
    b2 = b2_ref[...]                               # (1, 1)    f32
    bi = bi_ref[...]                               # (1, 3H)   f32
    bh = bh_ref[...]                               # (1, 3H)   f32

    def step(t, h):                                # h: (Bt, H) f32 recurrent state
        h_bf = h.astype(jnp.bfloat16)

        # ---------------- additive attention ----------------
        q_proj = jnp.dot(h_bf, w1q_ref[...],
                         preferred_element_type=jnp.float32)       # (Bt, H)
        hid = jnp.maximum(q_proj[:, None, :] + keys_proj, 0.0)     # (Bt, S, H)
        # Second attention layer has output width 1 -> VPU mul + XLU reduce
        scores = jnp.sum(hid * w2_row, axis=2) + b2                # (Bt, S)

        scores = scores - jnp.max(scores, axis=1, keepdims=True)   # softmax(dim=1)
        e = jnp.exp(scores)
        attn = e * pl.reciprocal(jnp.sum(e, axis=1, keepdims=True),
                                 approx=True)                      # (Bt, S)
        context = jnp.sum(attn[:, :, None] * values, axis=1)       # (Bt, H) f32

        # ---------------- GRU cell (fused gates, no concat) ----------------
        gi = (jnp.dot(context.astype(jnp.bfloat16), wic_ref[...],
                      preferred_element_type=jnp.float32)
              + jnp.dot(embed_ref[t], wie_ref[...],
                        preferred_element_type=jnp.float32)
              + bi)                                                # (Bt, 3H)
        gh = jnp.dot(h_bf, wh_ref[...],
                     preferred_element_type=jnp.float32) + bh      # (Bt, 3H)

        z = jax.nn.sigmoid(gi[:, :H] + gh[:, :H])
        r = jax.nn.sigmoid(gi[:, H:2 * H] + gh[:, H:2 * H])
        g = jnp.tanh(gi[:, 2 * H:] + r * gh[:, 2 * H:])
        h_new = (1.0 - z) * g + z * h

        # ---------------- output projection (lane-dense, Vp = k*128) -------
        out_ref[t] = (
            jnp.dot(h_new.astype(jnp.bfloat16), wout_ref[...],
                    preferred_element_type=jnp.float32)
            + bout_ref[...]
        )
        att_ref[t] = attn
        return h_new

    # Short fixed trip count -> fully unrolled for LLO scheduler visibility.
    lax.fori_loop(0, T, step, h0_ref[...], unroll=True)


def attention_decoder_pallas(embed_tbh, annotations, hidden_init, p, *, b_tile=None):
    """embed_tbh: (T, B, H) f32; annotations: (B, S, H) f32; hidden_init: (B, H) f32."""
    T, B, H = embed_tbh.shape
    S = annotations.shape[1]
    V = p["wout"].shape[1]
    Vp = _round_up(V, 128)
    # Batch tile: with bt < B (multiple of 8 or == B) the "parallel" grid axis
    # shards independent batch rows across TensorCores on v7x.
    bt = B if b_tile is None else b_tile

    bf16 = jnp.bfloat16

    # ---- one-time weight repacking / bf16 cast (cache this in real use) ----
    w1q = p["w1"][:H, :].astype(bf16)                     # query half of W1
    w1k = p["w1"][H:, :].astype(bf16)                     # key half of W1
    b1 = p["b1"]
    w2 = p["w2"].T                                        # (1, H), stays f32 (VPU path)
    b2 = p["b2"]
    wic = jnp.concatenate([p["wiz"][:H], p["wir"][:H], p["wih"][:H]], axis=1).astype(bf16)
    wie = jnp.concatenate([p["wiz"][H:], p["wir"][H:], p["wih"][H:]], axis=1).astype(bf16)
    bi = jnp.concatenate([p["biz"], p["bir"], p["bih"]], axis=1)
    wh = jnp.concatenate([p["whz"], p["whr"], p["whh"]], axis=1).astype(bf16)
    bh = jnp.concatenate([p["bhz"], p["bhr"], p["bhh"]], axis=1)
    wout = jnp.pad(p["wout"], ((0, 0), (0, Vp - V))).astype(bf16)
    bout = jnp.pad(p["bout"], ((0, 0), (0, Vp - V)))

    embed_bf = embed_tbh.astype(bf16)

    def wspec(shape):
        return pl.BlockSpec(shape, lambda b: (0,) * len(shape))

    in_specs = [
        pl.BlockSpec((T, bt, H), lambda b: (0, b, 0)),    # embedded tokens
        pl.BlockSpec((bt, S, H), lambda b: (b, 0, 0)),    # annotations
        pl.BlockSpec((bt, H), lambda b: (b, 0)),          # hidden_init
        wspec((H, H)), wspec((H, H)), wspec((1, H)),      # w1q, w1k, b1
        wspec((1, H)), wspec((1, 1)),                     # w2 (row), b2
        wspec((H, 3 * H)), wspec((H, 3 * H)), wspec((1, 3 * H)),   # wic, wie, bi
        wspec((H, 3 * H)), wspec((1, 3 * H)),             # wh, bh
        wspec((H, Vp)), wspec((1, Vp)),                   # wout, bout (V padded)
    ]
    out_specs = [
        pl.BlockSpec((T, bt, Vp), lambda b: (0, b, 0)),
        pl.BlockSpec((T, bt, S), lambda b: (0, b, 0)),
    ]
    out_shape = [
        jax.ShapeDtypeStruct((T, B, Vp), jnp.float32),
        jax.ShapeDtypeStruct((T, B, S), jnp.float32),
    ]

    grid_spec = pltpu.PrefetchScalarGridSpec(
        num_scalar_prefetch=0,
        grid=(pl.cdiv(B, bt),),       # batch tiles; recurrence lives inside the kernel
        in_specs=in_specs,
        out_specs=out_specs,
    )

    out_tbv, att_tbs = pl.pallas_call(
        attention_decoder_kernel,
        grid_spec=grid_spec,
        out_shape=out_shape,
        compiler_params=pltpu.CompilerParams(
            # Batch tiles are independent -> shard across TensorCores on v7x.
            # At production H/V, also set vmem_limit_bytes and tile V here.
            dimension_semantics=("parallel",),
        ),
    )(
        embed_bf, annotations, hidden_init,
        w1q, w1k, b1, w2, b2,
        wic, wie, bi, wh, bh,
        wout, bout,
    )

    output = jnp.transpose(out_tbv, (1, 0, 2))[:, :, :V]   # (B, T_dec, V)
    attentions = jnp.transpose(att_tbs, (1, 2, 0))         # (B, S_enc, T_dec)
    return output, attentions


def reference_decoder(embed_bth, annotations, hidden_init, p):
    """Pure-JAX f32 reference mirroring the PyTorch module semantics."""
    B, T, H = embed_bth.shape
    outs, atts = [], []
    h = hidden_init
    for t in range(T):
        q = jnp.broadcast_to(h[:, None, :], annotations.shape)
        x = jnp.concatenate([q, annotations], axis=2)
        hid = jax.nn.relu(x @ p["w1"] + p["b1"][0])
        sc = (hid @ p["w2"] + p["b2"][0])[..., 0]                 # (B, S)
        a = jax.nn.softmax(sc, axis=1)
        ctx = jnp.einsum("bs,bsh->bh", a, annotations)
        xin = jnp.concatenate([ctx, embed_bth[:, t, :]], axis=1)
        z = jax.nn.sigmoid(xin @ p["wiz"] + p["biz"][0] + h @ p["whz"] + p["bhz"][0])
        r = jax.nn.sigmoid(xin @ p["wir"] + p["bir"][0] + h @ p["whr"] + p["bhr"][0])
        g = jnp.tanh(xin @ p["wih"] + p["bih"][0] + r * (h @ p["whh"] + p["bhh"][0]))
        h = (1.0 - z) * g + z * h
        outs.append(h @ p["wout"] + p["bout"][0])
        atts.append(a)
    return jnp.stack(outs, axis=1), jnp.stack(atts, axis=2)


def init_params(key, vocab_size, hidden_size):
    H, V = hidden_size, vocab_size
    names_shapes = [
        ("embedding", (V, H)),
        ("w1", (2 * H, H)), ("b1", (1, H)),
        ("w2", (H, 1)), ("b2", (1, 1)),
        ("wiz", (2 * H, H)), ("biz", (1, H)),
        ("wir", (2 * H, H)), ("bir", (1, H)),
        ("wih", (2 * H, H)), ("bih", (1, H)),
        ("whz", (H, H)), ("bhz", (1, H)),
        ("whr", (H, H)), ("bhr", (1, H)),
        ("whh", (H, H)), ("bhh", (1, H)),
        ("wout", (H, V)), ("bout", (1, V)),
    ]
    keys = jax.random.split(key, len(names_shapes))
    return {
        name: (0.1 * jax.random.normal(k, shape, dtype=jnp.float32))
        for (name, shape), k in zip(names_shapes, keys)
    }


if __name__ == "__main__":
    vocab_size, hidden_size = 20, 32
    batch_size, enc_seq_len, dec_seq_len = 2, 8, 6

    root = jax.random.PRNGKey(0)
    k_par, k_tok, k_ann, k_hid = jax.random.split(root, 4)

    params = init_params(k_par, vocab_size, hidden_size)

    inputs = jax.random.randint(k_tok, (batch_size, dec_seq_len), 0, vocab_size)
    annotations = jax.random.normal(
        k_ann, (batch_size, enc_seq_len, hidden_size), dtype=jnp.float32
    )
    hidden_init = jax.random.normal(
        k_hid, (batch_size, hidden_size), dtype=jnp.float32
    )

    # Embedding lookup is glue (gather), done in plain JAX.
    embed_bth = params["embedding"][inputs]                      # (B, T, H)
    embed_tbh = jnp.transpose(embed_bth, (1, 0, 2))              # (T, B, H)

    output, attentions = attention_decoder_pallas(
        embed_tbh, annotations, hidden_init, params
    )
    jax.block_until_ready((output, attentions))

    ref_out, ref_att = reference_decoder(embed_bth, annotations, hidden_init, params)

    assert output.shape == (batch_size, dec_seq_len, vocab_size)
    assert attentions.shape == (batch_size, enc_seq_len, dec_seq_len)
    np.testing.assert_allclose(np.asarray(output), np.asarray(ref_out),
                               rtol=5e-2, atol=5e-2)
    np.testing.assert_allclose(np.asarray(attentions), np.asarray(ref_att),
                               rtol=5e-2, atol=5e-2)

    print("KERNEL_OK")
</pallas_src>

<mosaic_0001>
module attributes {stable_mosaic.version = 11 : i64} {
  func.func @attention_decoder_kernel(%arg0: i32, %arg1: memref<6x2x32xbf16, #tpu.memory_space<vmem>>, %arg2: memref<2x8x32xf32, #tpu.memory_space<vmem>>, %arg3: memref<2x32xf32, #tpu.memory_space<vmem>>, %arg4: memref<32x32xbf16, #tpu.memory_space<vmem>>, %arg5: memref<32x32xbf16, #tpu.memory_space<vmem>>, %arg6: memref<1x32xf32, #tpu.memory_space<vmem>>, %arg7: memref<1x32xf32, #tpu.memory_space<vmem>>, %arg8: memref<1x1xf32, #tpu.memory_space<vmem>>, %arg9: memref<32x96xbf16, #tpu.memory_space<vmem>>, %arg10: memref<32x96xbf16, #tpu.memory_space<vmem>>, %arg11: memref<1x96xf32, #tpu.memory_space<vmem>>, %arg12: memref<32x96xbf16, #tpu.memory_space<vmem>>, %arg13: memref<1x96xf32, #tpu.memory_space<vmem>>, %arg14: memref<32x128xbf16, #tpu.memory_space<vmem>>, %arg15: memref<1x128xf32, #tpu.memory_space<vmem>>, %arg16: memref<6x2x128xf32, #tpu.memory_space<vmem>>, %arg17: memref<6x2x8xf32, #tpu.memory_space<vmem>>) attributes {dimension_semantics = [#tpu.dimension_semantics<parallel>], iteration_bounds = array<i64: 1>, scalar_prefetch = 0 : i64, scratch_operands = 0 : i64, tpu.core_type = #tpu.core_type<tc>, window_params = [{transform_indices = @transform_0, window_bounds = array<i64: 6, 2, 32>}, {transform_indices = @transform_1, window_bounds = array<i64: 2, 8, 32>}, {transform_indices = @transform_2, window_bounds = array<i64: 2, 32>}, {pipeline_mode = #tpu.pipeline_mode<synchronous>, transform_indices = @transform_3, window_bounds = array<i64: 32, 32>}, {pipeline_mode = #tpu.pipeline_mode<synchronous>, transform_indices = @transform_4, window_bounds = array<i64: 32, 32>}, {pipeline_mode = #tpu.pipeline_mode<synchronous>, transform_indices = @transform_5, window_bounds = array<i64: 1, 32>}, {pipeline_mode = #tpu.pipeline_mode<synchronous>, transform_indices = @transform_6, window_bounds = array<i64: 1, 32>}, {pipeline_mode = #tpu.pipeline_mode<synchronous>, transform_indices = @transform_7, window_bounds = array<i64: 1, 1>}, {pipeline_mode = #tpu.pipeline_mode<synchronous>, transform_indices = @transform_8, window_bounds = array<i64: 32, 96>}, {pipeline_mode = #tpu.pipeline_mode<synchronous>, transform_indices = @transform_9, window_bounds = array<i64: 32, 96>}, {pipeline_mode = #tpu.pipeline_mode<synchronous>, transform_indices = @transform_10, window_bounds = array<i64: 1, 96>}, {pipeline_mode = #tpu.pipeline_mode<synchronous>, transform_indices = @transform_11, window_bounds = array<i64: 32, 96>}, {pipeline_mode = #tpu.pipeline_mode<synchronous>, transform_indices = @transform_12, window_bounds = array<i64: 1, 96>}, {pipeline_mode = #tpu.pipeline_mode<synchronous>, transform_indices = @transform_13, window_bounds = array<i64: 32, 128>}, {pipeline_mode = #tpu.pipeline_mode<synchronous>, transform_indices = @transform_14, window_bounds = array<i64: 1, 128>}, {transform_indices = @transform_15, window_bounds = array<i64: 6, 2, 128>}, {transform_indices = @transform_16, window_bounds = array<i64: 6, 2, 8>}]} {
    %c0 = arith.constant 0 : index
    %c0_0 = arith.constant 0 : index
    %c0_1 = arith.constant 0 : index
    %0 = vector.load %arg2[%c0, %c0_0, %c0_1] : memref<2x8x32xf32, #tpu.memory_space<vmem>>, vector<2x8x32xf32>
    %1 = arith.truncf %0 : vector<2x8x32xf32> to vector<2x8x32xbf16>
    %2 = vector.shape_cast %1 : vector<2x8x32xbf16> to vector<16x32xbf16>
    %c0_2 = arith.constant 0 : index
    %c0_3 = arith.constant 0 : index
    %3 = vector.load %arg5[%c0_2, %c0_3] : memref<32x32xbf16, #tpu.memory_space<vmem>>, vector<32x32xbf16>
    %cst = arith.constant dense<0.000000e+00> : vector<16x32xf32>
    %4 = tpu.matmul %2, %3, %cst {dimension_numbers = #tpu.dot_dimension_numbers<[1], [0], [0], [1], [0, 0, 1, 1], [], []>} : vector<16x32xbf16>, vector<32x32xbf16>, vector<16x32xf32> -> vector<16x32xf32>
    %c0_4 = arith.constant 0 : index
    %c0_5 = arith.constant 0 : index
    %5 = vector.load %arg6[%c0_4, %c0_5] : memref<1x32xf32, #tpu.memory_space<vmem>>, vector<1x32xf32>
    %6 = vector.broadcast %5 : vector<1x32xf32> to vector<16x32xf32>
    %7 = arith.addf %4, %6 : vector<16x32xf32>
    %8 = vector.shape_cast %7 : vector<16x32xf32> to vector<2x8x32xf32>
    %c0_6 = arith.constant 0 : index
    %c0_7 = arith.constant 0 : index
    %9 = vector.load %arg7[%c0_6, %c0_7] : memref<1x32xf32, #tpu.memory_space<vmem>>, vector<1x32xf32>
    %10 = vector.shape_cast %9 : vector<1x32xf32> to vector<1x1x32xf32>
    %c0_8 = arith.constant 0 : index
    %c0_9 = arith.constant 0 : index
    %11 = vector.load %arg8[%c0_8, %c0_9] : memref<1x1xf32, #tpu.memory_space<vmem>>, vector<1x1xf32>
    %c0_10 = arith.constant 0 : index
    %c0_11 = arith.constant 0 : index
    %12 = vector.load %arg11[%c0_10, %c0_11] : memref<1x96xf32, #tpu.memory_space<vmem>>, vector<1x96xf32>
    %c0_12 = arith.constant 0 : index
    %c0_13 = arith.constant 0 : index
    %13 = vector.load %arg13[%c0_12, %c0_13] : memref<1x96xf32, #tpu.memory_space<vmem>>, vector<1x96xf32>
    %c0_14 = arith.constant 0 : index
    %c0_15 = arith.constant 0 : index
    %14 = vector.load %arg3[%c0_14, %c0_15] : memref<2x32xf32, #tpu.memory_space<vmem>>, vector<2x32xf32>
    %c0_i32 = arith.constant 0 : i32
    %15 = arith.truncf %14 : vector<2x32xf32> to vector<2x32xbf16>
    %c0_16 = arith.constant 0 : index
    %c0_17 = arith.constant 0 : index
    %16 = vector.load %arg4[%c0_16, %c0_17] : memref<32x32xbf16, #tpu.memory_space<vmem>>, vector<32x32xbf16>
    %cst_18 = arith.constant dense<0.000000e+00> : vector<2x32xf32>
    %17 = tpu.matmul %15, %16, %cst_18 {dimension_numbers = #tpu.dot_dimension_numbers<[1], [0], [0], [1], [0, 0, 1, 1], [], []>} : vector<2x32xbf16>, vector<32x32xbf16>, vector<2x32xf32> -> vector<2x32xf32>
    %18 = vector.shape_cast %17 : vector<2x32xf32> to vector<2x1x32xf32>
    %19 = vector.broadcast %18 : vector<2x1x32xf32> to vector<2x8x32xf32>
    %20 = arith.addf %19, %8 : vector<2x8x32xf32>
    %cst_19 = arith.constant 0.000000e+00 : f32
    %21 = vector.broadcast %cst_19 : f32 to vector<2x8x32xf32>
    %22 = arith.maximumf %20, %21 : vector<2x8x32xf32>
    %23 = vector.broadcast %10 : vector<1x1x32xf32> to vector<2x8x32xf32>
    %24 = arith.mulf %22, %23 : vector<2x8x32xf32>
    %cst_20 = arith.constant dense<0.000000e+00> : vector<2x8xf32>
    %25 = vector.multi_reduction <add>, %24, %cst_20 [2] : vector<2x8x32xf32> to vector<2x8xf32>
    %26 = vector.broadcast %11 : vector<1x1xf32> to vector<2x8xf32>
    %27 = arith.addf %25, %26 : vector<2x8xf32>
    %cst_21 = arith.constant dense<0xFF800000> : vector<2xf32>
    %28 = vector.multi_reduction <maximumf>, %27, %cst_21 [1] : vector<2x8xf32> to vector<2xf32>
    %29 = vector.shape_cast %28 : vector<2xf32> to vector<2x1xf32>
    %30 = vector.broadcast %29 : vector<2x1xf32> to vector<2x8xf32>
    %31 = arith.subf %27, %30 : vector<2x8xf32>
    %32 = math.exp %31 : vector<2x8xf32>
    %cst_22 = arith.constant dense<0.000000e+00> : vector<2xf32>
    %33 = vector.multi_reduction <add>, %32, %cst_22 [1] : vector<2x8xf32> to vector<2xf32>
    %34 = vector.shape_cast %33 : vector<2xf32> to vector<2x1xf32>
    %35 = tpu.reciprocal %34 {approx = true} : vector<2x1xf32> -> vector<2x1xf32>
    %36 = vector.broadcast %35 : vector<2x1xf32> to vector<2x8xf32>
    %37 = arith.mulf %32, %36 : vector<2x8xf32>
    %38 = vector.shape_cast %37 : vector<2x8xf32> to vector<2x8x1xf32>
    %39 = vector.broadcast %38 : vector<2x8x1xf32> to vector<2x8x32xf32>
    %40 = arith.mulf %39, %0 : vector<2x8x32xf32>
    %cst_23 = arith.constant dense<0.000000e+00> : vector<2x32xf32>
    %41 = vector.multi_reduction <add>, %40, %cst_23 [1] : vector<2x8x32xf32> to vector<2x32xf32>
    %42 = arith.truncf %41 : vector<2x32xf32> to vector<2x32xbf16>
    %c0_24 = arith.constant 0 : index
    %c0_25 = arith.constant 0 : index
    %43 = vector.load %arg9[%c0_24, %c0_25] : memref<32x96xbf16, #tpu.memory_space<vmem>>, vector<32x96xbf16>
    %cst_26 = arith.constant dense<0.000000e+00> : vector<2x96xf32>
    %44 = tpu.matmul %42, %43, %cst_26 {dimension_numbers = #tpu.dot_dimension_numbers<[1], [0], [0], [1], [0, 0, 1, 1], [], []>} : vector<2x32xbf16>, vector<32x96xbf16>, vector<2x96xf32> -> vector<2x96xf32>
    %45 = arith.index_cast %c0_i32 : i32 to index
    %c0_27 = arith.constant 0 : index
    %c0_28 = arith.constant 0 : index
    %46 = vector.load %arg1[%45, %c0_27, %c0_28] : memref<6x2x32xbf16, #tpu.memory_space<vmem>>, vector<1x2x32xbf16>
    %47 = vector.shape_cast %46 : vector<1x2x32xbf16> to vector<2x32xbf16>
    %c0_29 = arith.constant 0 : index
    %c0_30 = arith.constant 0 : index
    %48 = vector.load %arg10[%c0_29, %c0_30] : memref<32x96xbf16, #tpu.memory_space<vmem>>, vector<32x96xbf16>
    %cst_31 = arith.constant dense<0.000000e+00> : vector<2x96xf32>
    %49 = tpu.matmul %47, %48, %cst_31 {dimension_numbers = #tpu.dot_dimension_numbers<[1], [0], [0], [1], [0, 0, 1, 1], [], []>} : vector<2x32xbf16>, vector<32x96xbf16>, vector<2x96xf32> -> vector<2x96xf32>
    %50 = arith.addf %44, %49 : vector<2x96xf32>
    %51 = vector.broadcast %12 : vector<1x96xf32> to vector<2x96xf32>
    %52 = arith.addf %50, %51 : vector<2x96xf32>
    %c0_32 = arith.constant 0 : index
    %c0_33 = arith.constant 0 : index
    %53 = vector.load %arg12[%c0_32, %c0_33] : memref<32x96xbf16, #tpu.memory_space<vmem>>, vector<32x96xbf16>
    %cst_34 = arith.constant dense<0.000000e+00> : vector<2x96xf32>
    %54 = tpu.matmul %15, %53, %cst_34 {dimension_numbers = #tpu.dot_dimension_numbers<[1], [0], [0], [1], [0, 0, 1, 1], [], []>} : vector<2x32xbf16>, vector<32x96xbf16>, vector<2x96xf32> -> vector<2x96xf32>
    %55 = vector.broadcast %13 : vector<1x96xf32> to vector<2x96xf32>
    %56 = arith.addf %54, %55 : vector<2x96xf32>
    %57 = vector.extract_strided_slice %52 {offsets = [0, 0], sizes = [2, 32], strides = [1, 1]} : vector<2x96xf32> to vector<2x32xf32>
    %58 = vector.extract_strided_slice %56 {offsets = [0, 0], sizes = [2, 32], strides = [1, 1]} : vector<2x96xf32> to vector<2x32xf32>
    %59 = arith.addf %57, %58 : vector<2x32xf32>
    %60 = arith.negf %59 : vector<2x32xf32>
    %61 = math.exp %60 : vector<2x32xf32>
    %cst_35 = arith.constant 1.000000e+00 : f32
    %62 = vector.broadcast %cst_35 : f32 to vector<2x32xf32>
    %63 = arith.addf %62, %61 : vector<2x32xf32>
    %64 = arith.divf %62, %63 : vector<2x32xf32>
    %65 = vector.extract_strided_slice %52 {offsets = [0, 32], sizes = [2, 32], strides = [1, 1]} : vector<2x96xf32> to vector<2x32xf32>
    %66 = vector.extract_strided_slice %56 {offsets = [0, 32], sizes = [2, 32], strides = [1, 1]} : vector<2x96xf32> to vector<2x32xf32>
    %67 = arith.addf %65, %66 : vector<2x32xf32>
    %68 = arith.negf %67 : vector<2x32xf32>
    %69 = math.exp %68 : vector<2x32xf32>
    %cst_36 = arith.constant 1.000000e+00 : f32
    %70 = vector.broadcast %cst_36 : f32 to vector<2x32xf32>
    %71 = arith.addf %70, %69 : vector<2x32xf32>
    %72 = arith.divf %70, %71 : vector<2x32xf32>
    %73 = vector.extract_strided_slice %52 {offsets = [0, 64], sizes = [2, 32], strides = [1, 1]} : vector<2x96xf32> to vector<2x32xf32>
    %74 = vector.extract_strided_slice %56 {offsets = [0, 64], sizes = [2, 32], strides = [1, 1]} : vector<2x96xf32> to vector<2x32xf32>
    %75 = arith.mulf %72, %74 : vector<2x32xf32>
    %76 = arith.addf %73, %75 : vector<2x32xf32>
    %77 = math.tanh %76 : vector<2x32xf32>
    %cst_37 = arith.constant 1.000000e+00 : f32
    %78 = vector.broadcast %cst_37 : f32 to vector<2x32xf32>
    %79 = arith.subf %78, %64 : vector<2x32xf32>
    %80 = arith.mulf %79, %77 : vector<2x32xf32>
    %81 = arith.mulf %64, %14 : vector<2x32xf32>
    %82 = arith.addf %80, %81 : vector<2x32xf32>
    %83 = arith.truncf %82 : vector<2x32xf32> to vector<2x32xbf16>
    %c0_38 = arith.constant 0 : index
    %c0_39 = arith.constant 0 : index
    %84 = vector.load %arg14[%c0_38, %c0_39] : memref<32x128xbf16, #tpu.memory_space<vmem>>, vector<32x128xbf16>
    %cst_40 = arith.constant dense<0.000000e+00> : vector<2x128xf32>
    %85 = tpu.matmul %83, %84, %cst_40 {dimension_numbers = #tpu.dot_dimension_numbers<[1], [0], [0], [1], [0, 0, 1, 1], [], []>} : vector<2x32xbf16>, vector<32x128xbf16>, vector<2x128xf32> -> vector<2x128xf32>
    %c0_41 = arith.constant 0 : index
    %c0_42 = arith.constant 0 : index
    %86 = vector.load %arg15[%c0_41, %c0_42] : memref<1x128xf32, #tpu.memory_space<vmem>>, vector<1x128xf32>
    %87 = vector.broadcast %86 : vector<1x128xf32> to vector<2x128xf32>
    %88 = arith.addf %85, %87 : vector<2x128xf32>
    %89 = arith.index_cast %c0_i32 : i32 to index
    %c0_43 = arith.constant 0 : index
    %c0_44 = arith.constant 0 : index
    %90 = vector.load %arg16[%89, %c0_43, %c0_44] : memref<6x2x128xf32, #tpu.memory_space<vmem>>, vector<1x2x128xf32>
    %91 = vector.shape_cast %90 : vector<1x2x128xf32> to vector<2x128xf32>
    %92 = vector.shape_cast %88 : vector<2x128xf32> to vector<1x2x128xf32>
    tpu.vector_store %arg16[%89, %c0_43, %c0_44], %92 {strides = array<i32>} : memref<6x2x128xf32, #tpu.memory_space<vmem>>, vector<1x2x128xf32>,
    %93 = arith.index_cast %c0_i32 : i32 to index
    %c0_45 = arith.constant 0 : index
    %c0_46 = arith.constant 0 : index
    %94 = vector.load %arg17[%93, %c0_45, %c0_46] : memref<6x2x8xf32, #tpu.memory_space<vmem>>, vector<1x2x8xf32>
    %95 = vector.shape_cast %94 : vector<1x2x8xf32> to vector<2x8xf32>
    %96 = vector.shape_cast %37 : vector<2x8xf32> to vector<1x2x8xf32>
    tpu.vector_store %arg17[%93, %c0_45, %c0_46], %96 {strides = array<i32>} : memref<6x2x8xf32, #tpu.memory_space<vmem>>, vector<1x2x8xf32>,
    %c1_i32 = arith.constant 1 : i32
    %97 = arith.truncf %82 : vector<2x32xf32> to vector<2x32xbf16>
    %c0_47 = arith.constant 0 : index
    %c0_48 = arith.constant 0 : index
    %98 = vector.load %arg4[%c0_47, %c0_48] : memref<32x32xbf16, #tpu.memory_space<vmem>>, vector<32x32xbf16>
    %cst_49 = arith.constant dense<0.000000e+00> : vector<2x32xf32>
    %99 = tpu.matmul %97, %98, %cst_49 {dimension_numbers = #tpu.dot_dimension_numbers<[1], [0], [0], [1], [0, 0, 1, 1], [], []>} : vector<2x32xbf16>, vector<32x32xbf16>, vector<2x32xf32> -> vector<2x32xf32>
    %100 = vector.shape_cast %99 : vector<2x32xf32> to vector<2x1x32xf32>
    %101 = vector.broadcast %100 : vector<2x1x32xf32> to vector<2x8x32xf32>
    %102 = arith.addf %101, %8 : vector<2x8x32xf32>
    %cst_50 = arith.constant 0.000000e+00 : f32
    %103 = vector.broadcast %cst_50 : f32 to vector<2x8x32xf32>
    %104 = arith.maximumf %102, %103 : vector<2x8x32xf32>
    %105 = vector.broadcast %10 : vector<1x1x32xf32> to vector<2x8x32xf32>
    %106 = arith.mulf %104, %105 : vector<2x8x32xf32>
    %cst_51 = arith.constant dense<0.000000e+00> : vector<2x8xf32>
    %107 = vector.multi_reduction <add>, %106, %cst_51 [2] : vector<2x8x32xf32> to vector<2x8xf32>
    %108 = vector.broadcast %11 : vector<1x1xf32> to vector<2x8xf32>
    %109 = arith.addf %107, %108 : vector<2x8xf32>
    %cst_52 = arith.constant dense<0xFF800000> : vector<2xf32>
    %110 = vector.multi_reduction <maximumf>, %109, %cst_52 [1] : vector<2x8xf32> to vector<2xf32>
    %111 = vector.shape_cast %110 : vector<2xf32> to vector<2x1xf32>
    %112 = vector.broadcast %111 : vector<2x1xf32> to vector<2x8xf32>
    %113 = arith.subf %109, %112 : vector<2x8xf32>
    %114 = math.exp %113 : vector<2x8xf32>
    %cst_53 = arith.constant dense<0.000000e+00> : vector<2xf32>
    %115 = vector.multi_reduction <add>, %114, %cst_53 [1] : vector<2x8xf32> to vector<2xf32>
    %116 = vector.shape_cast %115 : vector<2xf32> to vector<2x1xf32>
    %117 = tpu.reciprocal %116 {approx = true} : vector<2x1xf32> -> vector<2x1xf32>
    %118 = vector.broadcast %117 : vector<2x1xf32> to vector<2x8xf32>
    %119 = arith.mulf %114, %118 : vector<2x8xf32>
    %120 = vector.shape_cast %119 : vector<2x8xf32> to vector<2x8x1xf32>
    %121 = vector.broadcast %120 : vector<2x8x1xf32> to vector<2x8x32xf32>
    %122 = arith.mulf %121, %0 : vector<2x8x32xf32>
    %cst_54 = arith.constant dense<0.000000e+00> : vector<2x32xf32>
    %123 = vector.multi_reduction <add>, %122, %cst_54 [1] : vector<2x8x32xf32> to vector<2x32xf32>
    %124 = arith.truncf %123 : vector<2x32xf32> to vector<2x32xbf16>
    %c0_55 = arith.constant 0 : index
    %c0_56 = arith.constant 0 : index
    %125 = vector.load %arg9[%c0_55, %c0_56] : memref<32x96xbf16, #tpu.memory_space<vmem>>, vector<32x96xbf16>
    %cst_57 = arith.constant dense<0.000000e+00> : vector<2x96xf32>
    %126 = tpu.matmul %124, %125, %cst_57 {dimension_numbers = #tpu.dot_dimension_numbers<[1], [0], [0], [1], [0, 0, 1, 1], [], []>} : vector<2x32xbf16>, vector<32x96xbf16>, vector<2x96xf32> -> vector<2x96xf32>
    %127 = arith.index_cast %c1_i32 : i32 to index
    %c0_58 = arith.constant 0 : index
    %c0_59 = arith.constant 0 : index
    %128 = vector.load %arg1[%127, %c0_58, %c0_59] : memref<6x2x32xbf16, #tpu.memory_space<vmem>>, vector<1x2x32xbf16>
    %129 = vector.shape_cast %128 : vector<1x2x32xbf16> to vector<2x32xbf16>
    %c0_60 = arith.constant 0 : index
    %c0_61 = arith.constant 0 : index
    %130 = vector.load %arg10[%c0_60, %c0_61] : memref<32x96xbf16, #tpu.memory_space<vmem>>, vector<32x96xbf16>
    %cst_62 = arith.constant dense<0.000000e+00> : vector<2x96xf32>
    %131 = tpu.matmul %129, %130, %cst_62 {dimension_numbers = #tpu.dot_dimension_numbers<[1], [0], [0], [1], [0, 0, 1, 1], [], []>} : vector<2x32xbf16>, vector<32x96xbf16>, vector<2x96xf32> -> vector<2x96xf32>
    %132 = arith.addf %126, %131 : vector<2x96xf32>
    %133 = vector.broadcast %12 : vector<1x96xf32> to vector<2x96xf32>
    %134 = arith.addf %132, %133 : vector<2x96xf32>
    %c0_63 = arith.constant 0 : index
    %c0_64 = arith.constant 0 : index
    %135 = vector.load %arg12[%c0_63, %c0_64] : memref<32x96xbf16, #tpu.memory_space<vmem>>, vector<32x96xbf16>
    %cst_65 = arith.constant dense<0.000000e+00> : vector<2x96xf32>
    %136 = tpu.matmul %97, %135, %cst_65 {dimension_numbers = #tpu.dot_dimension_numbers<[1], [0], [0], [1], [0, 0, 1, 1], [], []>} : vector<2x32xbf16>, vector<32x96xbf16>, vector<2x96xf32> -> vector<2x96xf32>
    %137 = vector.broadcast %13 : vector<1x96xf32> to vector<2x96xf32>
    %138 = arith.addf %136, %137 : vector<2x96xf32>
    %139 = vector.extract_strided_slice %134 {offsets = [0, 0], sizes = [2, 32], strides = [1, 1]} : vector<2x96xf32> to vector<2x32xf32>
    %140 = vector.extract_strided_slice %138 {offsets = [0, 0], sizes = [2, 32], strides = [1, 1]} : vector<2x96xf32> to vector<2x32xf32>
    %141 = arith.addf %139, %140 : vector<2x32xf32>
    %142 = arith.negf %141 : vector<2x32xf32>
    %143 = math.exp %142 : vector<2x32xf32>
    %cst_66 = arith.constant 1.000000e+00 : f32
    %144 = vector.broadcast %cst_66 : f32 to vector<2x32xf32>
    %145 = arith.addf %144, %143 : vector<2x32xf32>
    %146 = arith.divf %144, %145 : vector<2x32xf32>
    %147 = vector.extract_strided_slice %134 {offsets = [0, 32], sizes = [2, 32], strides = [1, 1]} : vector<2x96xf32> to vector<2x32xf32>
    %148 = vector.extract_strided_slice %138 {offsets = [0, 32], sizes = [2, 32], strides = [1, 1]} : vector<2x96xf32> to vector<2x32xf32>
    %149 = arith.addf %147, %148 : vector<2x32xf32>
    %150 = arith.negf %149 : vector<2x32xf32>
    %151 = math.exp %150 : vector<2x32xf32>
    %cst_67 = arith.constant 1.000000e+00 : f32
    %152 = vector.broadcast %cst_67 : f32 to vector<2x32xf32>
    %153 = arith.addf %152, %151 : vector<2x32xf32>
    %154 = arith.divf %152, %153 : vector<2x32xf32>
    %155 = vector.extract_strided_slice %134 {offsets = [0, 64], sizes = [2, 32], strides = [1, 1]} : vector<2x96xf32> to vector<2x32xf32>
    %156 = vector.extract_strided_slice %138 {offsets = [0, 64], sizes = [2, 32], strides = [1, 1]} : vector<2x96xf32> to vector<2x32xf32>
    %157 = arith.mulf %154, %156 : vector<2x32xf32>
    %158 = arith.addf %155, %157 : vector<2x32xf32>
    %159 = math.tanh %158 : vector<2x32xf32>
    %cst_68 = arith.constant 1.000000e+00 : f32
    %160 = vector.broadcast %cst_68 : f32 to vector<2x32xf32>
    %161 = arith.subf %160, %146 : vector<2x32xf32>
    %162 = arith.mulf %161, %159 : vector<2x32xf32>
    %163 = arith.mulf %146, %82 : vector<2x32xf32>
    %164 = arith.addf %162, %163 : vector<2x32xf32>
    %165 = arith.truncf %164 : vector<2x32xf32> to vector<2x32xbf16>
    %c0_69 = arith.constant 0 : index
    %c0_70 = arith.constant 0 : index
    %166 = vector.load %arg14[%c0_69, %c0_70] : memref<32x128xbf16, #tpu.memory_space<vmem>>, vector<32x128xbf16>
    %cst_71 = arith.constant dense<0.000000e+00> : vector<2x128xf32>
    %167 = tpu.matmul %165, %166, %cst_71 {dimension_numbers = #tpu.dot_dimension_numbers<[1], [0], [0], [1], [0, 0, 1, 1], [], []>} : vector<2x32xbf16>, vector<32x128xbf16>, vector<2x128xf32> -> vector<2x128xf32>
    %c0_72 = arith.constant 0 : index
    %c0_73 = arith.constant 0 : index
    %168 = vector.load %arg15[%c0_72, %c0_73] : memref<1x128xf32, #tpu.memory_space<vmem>>, vector<1x128xf32>
    %169 = vector.broadcast %168 : vector<1x128xf32> to vector<2x128xf32>
    %170 = arith.addf %167, %169 : vector<2x128xf32>
    %171 = arith.index_cast %c1_i32 : i32 to index
    %c0_74 = arith.constant 0 : index
    %c0_75 = arith.constant 0 : index
    %172 = vector.load %arg16[%171, %c0_74, %c0_75] : memref<6x2x128xf32, #tpu.memory_space<vmem>>, vector<1x2x128xf32>
    %173 = vector.shape_cast %172 : vector<1x2x128xf32> to vector<2x128xf32>
    %174 = vector.shape_cast %170 : vector<2x128xf32> to vector<1x2x128xf32>
    tpu.vector_store %arg16[%171, %c0_74, %c0_75], %174 {strides = array<i32>} : memref<6x2x128xf32, #tpu.memory_space<vmem>>, vector<1x2x128xf32>,
    %175 = arith.index_cast %c1_i32 : i32 to index
    %c0_76 = arith.constant 0 : index
    %c0_77 = arith.constant 0 : index
    %176 = vector.load %arg17[%175, %c0_76, %c0_77] : memref<6x2x8xf32, #tpu.memory_space<vmem>>, vector<1x2x8xf32>
    %177 = vector.shape_cast %176 : vector<1x2x8xf32> to vector<2x8xf32>
    %178 = vector.shape_cast %119 : vector<2x8xf32> to vector<1x2x8xf32>
    tpu.vector_store %arg17[%175, %c0_76, %c0_77], %178 {strides = array<i32>} : memref<6x2x8xf32, #tpu.memory_space<vmem>>, vector<1x2x8xf32>,
    %c2_i32 = arith.constant 2 : i32
    %179 = arith.truncf %164 : vector<2x32xf32> to vector<2x32xbf16>
    %c0_78 = arith.constant 0 : index
    %c0_79 = arith.constant 0 : index
    %180 = vector.load %arg4[%c0_78, %c0_79] : memref<32x32xbf16, #tpu.memory_space<vmem>>, vector<32x32xbf16>
    %cst_80 = arith.constant dense<0.000000e+00> : vector<2x32xf32>
    %181 = tpu.matmul %179, %180, %cst_80 {dimension_numbers = #tpu.dot_dimension_numbers<[1], [0], [0], [1], [0, 0, 1, 1], [], []>} : vector<2x32xbf16>, vector<32x32xbf16>, vector<2x32xf32> -> vector<2x32xf32>
    %182 = vector.shape_cast %181 : vector<2x32xf32> to vector<2x1x32xf32>
    %183 = vector.broadcast %182 : vector<2x1x32xf32> to vector<2x8x32xf32>
    %184 = arith.addf %183, %8 : vector<2x8x32xf32>
    %cst_81 = arith.constant 0.000000e+00 : f32
    %185 = vector.broadcast %cst_81 : f32 to vector<2x8x32xf32>
    %186 = arith.maximumf %184, %185 : vector<2x8x32xf32>
    %187 = vector.broadcast %10 : vector<1x1x32xf32> to vector<2x8x32xf32>
    %188 = arith.mulf %186, %187 : vector<2x8x32xf32>
    %cst_82 = arith.constant dense<0.000000e+00> : vector<2x8xf32>
    %189 = vector.multi_reduction <add>, %188, %cst_82 [2] : vector<2x8x32xf32> to vector<2x8xf32>
    %190 = vector.broadcast %11 : vector<1x1xf32> to vector<2x8xf32>
    %191 = arith.addf %189, %190 : vector<2x8xf32>
    %cst_83 = arith.constant dense<0xFF800000> : vector<2xf32>
    %192 = vector.multi_reduction <maximumf>, %191, %cst_83 [1] : vector<2x8xf32> to vector<2xf32>
    %193 = vector.shape_cast %192 : vector<2xf32> to vector<2x1xf32>
    %194 = vector.broadcast %193 : vector<2x1xf32> to vector<2x8xf32>
    %195 = arith.subf %191, %194 : vector<2x8xf32>
    %196 = math.exp %195 : vector<2x8xf32>
    %cst_84 = arith.constant dense<0.000000e+00> : vector<2xf32>
    %197 = vector.multi_reduction <add>, %196, %cst_84 [1] : vector<2x8xf32> to vector<2xf32>
    %198 = vector.shape_cast %197 : vector<2xf32> to vector<2x1xf32>
    %199 = tpu.reciprocal %198 {approx = true} : vector<2x1xf32> -> vector<2x1xf32>
    %200 = vector.broadcast %199 : vector<2x1xf32> to vector<2x8xf32>
    %201 = arith.mulf %196, %200 : vector<2x8xf32>
    %202 = vector.shape_cast %201 : vector<2x8xf32> to vector<2x8x1xf32>
    %203 = vector.broadcast %202 : vector<2x8x1xf32> to vector<2x8x32xf32>
    %204 = arith.mulf %203, %0 : vector<2x8x32xf32>
    %cst_85 = arith.constant dense<0.000000e+00> : vector<2x32xf32>
    %205 = vector.multi_reduction <add>, %204, %cst_85 [1] : vector<2x8x32xf32> to vector<2x32xf32>
    %206 = arith.truncf %205 : vector<2x32xf32> to vector<2x32xbf16>
    %c0_86 = arith.constant 0 : index
    %c0_87 = arith.constant 0 : index
    %207 = vector.load %arg9[%c0_86, %c0_87] : memref<32x96xbf16, #tpu.memory_space<vmem>>, vector<32x96xbf16>
    %cst_88 = arith.constant dense<0.000000e+00> : vector<2x96xf32>
    %208 = tpu.matmul %206, %207, %cst_88 {dimension_numbers = #tpu.dot_dimension_numbers<[1], [0], [0], [1], [0, 0, 1, 1], [], []>} : vector<2x32xbf16>, vector<32x96xbf16>, vector<2x96xf32> -> vector<2x96xf32>
    %209 = arith.index_cast %c2_i32 : i32 to index
    %c0_89 = arith.constant 0 : index
    %c0_90 = arith.constant 0 : index
    %210 = vector.load %arg1[%209, %c0_89, %c0_90] : memref<6x2x32xbf16, #tpu.memory_space<vmem>>, vector<1x2x32xbf16>
    %211 = vector.shape_cast %210 : vector<1x2x32xbf16> to vector<2x32xbf16>
    %c0_91 = arith.constant 0 : index
    %c0_92 = arith.constant 0 : index
    %212 = vector.load %arg10[%c0_91, %c0_92] : memref<32x96xbf16, #tpu.memory_space<vmem>>, vector<32x96xbf16>
    %cst_93 = arith.constant dense<0.000000e+00> : vector<2x96xf32>
    %213 = tpu.matmul %211, %212, %cst_93 {dimension_numbers = #tpu.dot_dimension_numbers<[1], [0], [0], [1], [0, 0, 1, 1], [], []>} : vector<2x32xbf16>, vector<32x96xbf16>, vector<2x96xf32> -> vector<2x96xf32>
    %214 = arith.addf %208, %213 : vector<2x96xf32>
    %215 = vector.broadcast %12 : vector<1x96xf32> to vector<2x96xf32>
    %216 = arith.addf %214, %215 : vector<2x96xf32>
    %c0_94 = arith.constant 0 : index
    %c0_95 = arith.constant 0 : index
    %217 = vector.load %arg12[%c0_94, %c0_95] : memref<32x96xbf16, #tpu.memory_space<vmem>>, vector<32x96xbf16>
    %cst_96 = arith.constant dense<0.000000e+00> : vector<2x96xf32>
    %218 = tpu.matmul %179, %217, %cst_96 {dimension_numbers = #tpu.dot_dimension_numbers<[1], [0], [0], [1], [0, 0, 1, 1], [], []>} : vector<2x32xbf16>, vector<32x96xbf16>, vector<2x96xf32> -> vector<2x96xf32>
    %219 = vector.broadcast %13 : vector<1x96xf32> to vector<2x96xf32>
    %220 = arith.addf %218, %219 : vector<2x96xf32>
    %221 = vector.extract_strided_slice %216 {offsets = [0, 0], sizes = [2, 32], strides = [1, 1]} : vector<2x96xf32> to vector<2x32xf32>
    %222 = vector.extract_strided_slice %220 {offsets = [0, 0], sizes = [2, 32], strides = [1, 1]} : vector<2x96xf32> to vector<2x32xf32>
    %223 = arith.addf %221, %222 : vector<2x32xf32>
    %224 = arith.negf %223 : vector<2x32xf32>
    %225 = math.exp %224 : vector<2x32xf32>
    %cst_97 = arith.constant 1.000000e+00 : f32
    %226 = vector.broadcast %cst_97 : f32 to vector<2x32xf32>
    %227 = arith.addf %226, %225 : vector<2x32xf32>
    %228 = arith.divf %226, %227 : vector<2x32xf32>
    %229 = vector.extract_strided_slice %216 {offsets = [0, 32], sizes = [2, 32], strides = [1, 1]} : vector<2x96xf32> to vector<2x32xf32>
    %230 = vector.extract_strided_slice %220 {offsets = [0, 32], sizes = [2, 32], strides = [1, 1]} : vector<2x96xf32> to vector<2x32xf32>
    %231 = arith.addf %229, %230 : vector<2x32xf32>
    %232 = arith.negf %231 : vector<2x32xf32>
    %233 = math.exp %232 : vector<2x32xf32>
    %cst_98 = arith.constant 1.000000e+00 : f32
    %234 = vector.broadcast %cst_98 : f32 to vector<2x32xf32>
    %235 = arith.addf %234, %233 : vector<2x32xf32>
    %236 = arith.divf %234, %235 : vector<2x32xf32>
    %237 = vector.extract_strided_slice %216 {offsets = [0, 64], sizes = [2, 32], strides = [1, 1]} : vector<2x96xf32> to vector<2x32xf32>
    %238 = vector.extract_strided_slice %220 {offsets = [0, 64], sizes = [2, 32], strides = [1, 1]} : vector<2x96xf32> to vector<2x32xf32>
    %239 = arith.mulf %236, %238 : vector<2x32xf32>
    %240 = arith.addf %237, %239 : vector<2x32xf32>
    %241 = math.tanh %240 : vector<2x32xf32>
    %cst_99 = arith.constant 1.000000e+00 : f32
    %242 = vector.broadcast %cst_99 : f32 to vector<2x32xf32>
    %243 = arith.subf %242, %228 : vector<2x32xf32>
    %244 = arith.mulf %243, %241 : vector<2x32xf32>
    %245 = arith.mulf %228, %164 : vector<2x32xf32>
    %246 = arith.addf %244, %245 : vector<2x32xf32>
    %247 = arith.truncf %246 : vector<2x32xf32> to vector<2x32xbf16>
    %c0_100 = arith.constant 0 : index
    %c0_101 = arith.constant 0 : index
    %248 = vector.load %arg14[%c0_100, %c0_101] : memref<32x128xbf16, #tpu.memory_space<vmem>>, vector<32x128xbf16>
    %cst_102 = arith.constant dense<0.000000e+00> : vector<2x128xf32>
    %249 = tpu.matmul %247, %248, %cst_102 {dimension_numbers = #tpu.dot_dimension_numbers<[1], [0], [0], [1], [0, 0, 1, 1], [], []>} : vector<2x32xbf16>, vector<32x128xbf16>, vector<2x128xf32> -> vector<2x128xf32>
    %c0_103 = arith.constant 0 : index
    %c0_104 = arith.constant 0 : index
    %250 = vector.load %arg15[%c0_103, %c0_104] : memref<1x128xf32, #tpu.memory_space<vmem>>, vector<1x128xf32>
    %251 = vector.broadcast %250 : vector<1x128xf32> to vector<2x128xf32>
    %252 = arith.addf %249, %251 : vector<2x128xf32>
    %253 = arith.index_cast %c2_i32 : i32 to index
    %c0_105 = arith.constant 0 : index
    %c0_106 = arith.constant 0 : index
    %254 = vector.load %arg16[%253, %c0_105, %c0_106] : memref<6x2x128xf32, #tpu.memory_space<vmem>>, vector<1x2x128xf32>
    %255 = vector.shape_cast %254 : vector<1x2x128xf32> to vector<2x128xf32>
    %256 = vector.shape_cast %252 : vector<2x128xf32> to vector<1x2x128xf32>
    tpu.vector_store %arg16[%253, %c0_105, %c0_106], %256 {strides = array<i32>} : memref<6x2x128xf32, #tpu.memory_space<vmem>>, vector<1x2x128xf32>,
    %257 = arith.index_cast %c2_i32 : i32 to index
    %c0_107 = arith.constant 0 : index
    %c0_108 = arith.constant 0 : index
    %258 = vector.load %arg17[%257, %c0_107, %c0_108] : memref<6x2x8xf32, #tpu.memory_space<vmem>>, vector<1x2x8xf32>
    %259 = vector.shape_cast %258 : vector<1x2x8xf32> to vector<2x8xf32>
    %260 = vector.shape_cast %201 : vector<2x8xf32> to vector<1x2x8xf32>
    tpu.vector_store %arg17[%257, %c0_107, %c0_108], %260 {strides = array<i32>} : memref<6x2x8xf32, #tpu.memory_space<vmem>>, vector<1x2x8xf32>,
    %c3_i32 = arith.constant 3 : i32
    %261 = arith.truncf %246 : vector<2x32xf32> to vector<2x32xbf16>
    %c0_109 = arith.constant 0 : index
    %c0_110 = arith.constant 0 : index
    %262 = vector.load %arg4[%c0_109, %c0_110] : memref<32x32xbf16, #tpu.memory_space<vmem>>, vector<32x32xbf16>
    %cst_111 = arith.constant dense<0.000000e+00> : vector<2x32xf32>
    %263 = tpu.matmul %261, %262, %cst_111 {dimension_numbers = #tpu.dot_dimension_numbers<[1], [0], [0], [1], [0, 0, 1, 1], [], []>} : vector<2x32xbf16>, vector<32x32xbf16>, vector<2x32xf32> -> vector<2x32xf32>
    %264 = vector.shape_cast %263 : vector<2x32xf32> to vector<2x1x32xf32>
    %265 = vector.broadcast %264 : vector<2x1x32xf32> to vector<2x8x32xf32>
    %266 = arith.addf %265, %8 : vector<2x8x32xf32>
    %cst_112 = arith.constant 0.000000e+00 : f32
    %267 = vector.broadcast %cst_112 : f32 to vector<2x8x32xf32>
    %268 = arith.maximumf %266, %267 : vector<2x8x32xf32>
    %269 = vector.broadcast %10 : vector<1x1x32xf32> to vector<2x8x32xf32>
    %270 = arith.mulf %268, %269 : vector<2x8x32xf32>
    %cst_113 = arith.constant dense<0.000000e+00> : vector<2x8xf32>
    %271 = vector.multi_reduction <add>, %270, %cst_113 [2] : vector<2x8x32xf32> to vector<2x8xf32>
    %272 = vector.broadcast %11 : vector<1x1xf32> to vector<2x8xf32>
    %273 = arith.addf %271, %272 : vector<2x8xf32>
    %cst_114 = arith.constant dense<0xFF800000> : vector<2xf32>
    %274 = vector.multi_reduction <maximumf>, %273, %cst_114 [1] : vector<2x8xf32> to vector<2xf32>
    %275 = vector.shape_cast %274 : vector<2xf32> to vector<2x1xf32>
    %276 = vector.broadcast %275 : vector<2x1xf32> to vector<2x8xf32>
    %277 = arith.subf %273, %276 : vector<2x8xf32>
    %278 = math.exp %277 : vector<2x8xf32>
    %cst_115 = arith.constant dense<0.000000e+00> : vector<2xf32>
    %279 = vector.multi_reduction <add>, %278, %cst_115 [1] : vector<2x8xf32> to vector<2xf32>
    %280 = vector.shape_cast %279 : vector<2xf32> to vector<2x1xf32>
    %281 = tpu.reciprocal %280 {approx = true} : vector<2x1xf32> -> vector<2x1xf32>
    %282 = vector.broadcast %281 : vector<2x1xf32> to vector<2x8xf32>
    %283 = arith.mulf %278, %282 : vector<2x8xf32>
    %284 = vector.shape_cast %283 : vector<2x8xf32> to vector<2x8x1xf32>
    %285 = vector.broadcast %284 : vector<2x8x1xf32> to vector<2x8x32xf32>
    %286 = arith.mulf %285, %0 : vector<2x8x32xf32>
    %cst_116 = arith.constant dense<0.000000e+00> : vector<2x32xf32>
    %287 = vector.multi_reduction <add>, %286, %cst_116 [1] : vector<2x8x32xf32> to vector<2x32xf32>
    %288 = arith.truncf %287 : vector<2x32xf32> to vector<2x32xbf16>
    %c0_117 = arith.constant 0 : index
    %c0_118 = arith.constant 0 : index
    %289 = vector.load %arg9[%c0_117, %c0_118] : memref<32x96xbf16, #tpu.memory_space<vmem>>, vector<32x96xbf16>
    %cst_119 = arith.constant dense<0.000000e+00> : vector<2x96xf32>
    %290 = tpu.matmul %288, %289, %cst_119 {dimension_numbers = #tpu.dot_dimension_numbers<[1], [0], [0], [1], [0, 0, 1, 1], [], []>} : vector<2x32xbf16>, vector<32x96xbf16>, vector<2x96xf32> -> vector<2x96xf32>
    %291 = arith.index_cast %c3_i32 : i32 to index
    %c0_120 = arith.constant 0 : index
    %c0_121 = arith.constant 0 : index
    %292 = vector.load %arg1[%291, %c0_120, %c0_121] : memref<6x2x32xbf16, #tpu.memory_space<vmem>>, vector<1x2x32xbf16>
    %293 = vector.shape_cast %292 : vector<1x2x32xbf16> to vector<2x32xbf16>
    %c0_122 = arith.constant 0 : index
    %c0_123 = arith.constant 0 : index
    %294 = vector.load %arg10[%c0_122, %c0_123] : memref<32x96xbf16, #tpu.memory_space<vmem>>, vector<32x96xbf16>
    %cst_124 = arith.constant dense<0.000000e+00> : vector<2x96xf32>
    %295 = tpu.matmul %293, %294, %cst_124 {dimension_numbers = #tpu.dot_dimension_numbers<[1], [0], [0], [1], [0, 0, 1, 1], [], []>} : vector<2x32xbf16>, vector<32x96xbf16>, vector<2x96xf32> -> vector<2x96xf32>
    %296 = arith.addf %290, %295 : vector<2x96xf32>
    %297 = vector.broadcast %12 : vector<1x96xf32> to vector<2x96xf32>
    %298 = arith.addf %296, %297 : vector<2x96xf32>
    %c0_125 = arith.constant 0 : index
    %c0_126 = arith.constant 0 : index
    %299 = vector.load %arg12[%c0_125, %c0_126] : memref<32x96xbf16, #tpu.memory_space<vmem>>, vector<32x96xbf16>
    %cst_127 = arith.constant dense<0.000000e+00> : vector<2x96xf32>
    %300 = tpu.matmul %261, %299, %cst_127 {dimension_numbers = #tpu.dot_dimension_numbers<[1], [0], [0], [1], [0, 0, 1, 1], [], []>} : vector<2x32xbf16>, vector<32x96xbf16>, vector<2x96xf32> -> vector<2x96xf32>
    %301 = vector.broadcast %13 : vector<1x96xf32> to vector<2x96xf32>
    %302 = arith.addf %300, %301 : vector<2x96xf32>
    %303 = vector.extract_strided_slice %298 {offsets = [0, 0], sizes = [2, 32], strides = [1, 1]} : vector<2x96xf32> to vector<2x32xf32>
    %304 = vector.extract_strided_slice %302 {offsets = [0, 0], sizes = [2, 32], strides = [1, 1]} : vector<2x96xf32> to vector<2x32xf32>
    %305 = arith.addf %303, %304 : vector<2x32xf32>
    %306 = arith.negf %305 : vector<2x32xf32>
    %307 = math.exp %306 : vector<2x32xf32>
    %cst_128 = arith.constant 1.000000e+00 : f32
    %308 = vector.broadcast %cst_128 : f32 to vector<2x32xf32>
    %309 = arith.addf %308, %307 : vector<2x32xf32>
    %310 = arith.divf %308, %309 : vector<2x32xf32>
    %311 = vector.extract_strided_slice %298 {offsets = [0, 32], sizes = [2, 32], strides = [1, 1]} : vector<2x96xf32> to vector<2x32xf32>
    %312 = vector.extract_strided_slice %302 {offsets = [0, 32], sizes = [2, 32], strides = [1, 1]} : vector<2x96xf32> to vector<2x32xf32>
    %313 = arith.addf %311, %312 : vector<2x32xf32>
    %314 = arith.negf %313 : vector<2x32xf32>
    %315 = math.exp %314 : vector<2x32xf32>
    %cst_129 = arith.constant 1.000000e+00 : f32
    %316 = vector.broadcast %cst_129 : f32 to vector<2x32xf32>
    %317 = arith.addf %316, %315 : vector<2x32xf32>
    %318 = arith.divf %316, %317 : vector<2x32xf32>
    %319 = vector.extract_strided_slice %298 {offsets = [0, 64], sizes = [2, 32], strides = [1, 1]} : vector<2x96xf32> to vector<2x32xf32>
    %320 = vector.extract_strided_slice %302 {offsets = [0, 64], sizes = [2, 32], strides = [1, 1]} : vector<2x96xf32> to vector<2x32xf32>
    %321 = arith.mulf %318, %320 : vector<2x32xf32>
    %322 = arith.addf %319, %321 : vector<2x32xf32>
    %323 = math.tanh %322 : vector<2x32xf32>
    %cst_130 = arith.constant 1.000000e+00 : f32
    %324 = vector.broadcast %cst_130 : f32 to vector<2x32xf32>
    %325 = arith.subf %324, %310 : vector<2x32xf32>
    %326 = arith.mulf %325, %323 : vector<2x32xf32>
    %327 = arith.mulf %310, %246 : vector<2x32xf32>
    %328 = arith.addf %326, %327 : vector<2x32xf32>
    %329 = arith.truncf %328 : vector<2x32xf32> to vector<2x32xbf16>
    %c0_131 = arith.constant 0 : index
    %c0_132 = arith.constant 0 : index
    %330 = vector.load %arg14[%c0_131, %c0_132] : memref<32x128xbf16, #tpu.memory_space<vmem>>, vector<32x128xbf16>
    %cst_133 = arith.constant dense<0.000000e+00> : vector<2x128xf32>
    %331 = tpu.matmul %329, %330, %cst_133 {dimension_numbers = #tpu.dot_dimension_numbers<[1], [0], [0], [1], [0, 0, 1, 1], [], []>} : vector<2x32xbf16>, vector<32x128xbf16>, vector<2x128xf32> -> vector<2x128xf32>
    %c0_134 = arith.constant 0 : index
    %c0_135 = arith.constant 0 : index
    %332 = vector.load %arg15[%c0_134, %c0_135] : memref<1x128xf32, #tpu.memory_space<vmem>>, vector<1x128xf32>
    %333 = vector.broadcast %332 : vector<1x128xf32> to vector<2x128xf32>
    %334 = arith.addf %331, %333 : vector<2x128xf32>
    %335 = arith.index_cast %c3_i32 : i32 to index
    %c0_136 = arith.constant 0 : index
    %c0_137 = arith.constant 0 : index
    %336 = vector.load %arg16[%335, %c0_136, %c0_137] : memref<6x2x128xf32, #tpu.memory_space<vmem>>, vector<1x2x128xf32>
    %337 = vector.shape_cast %336 : vector<1x2x128xf32> to vector<2x128xf32>
    %338 = vector.shape_cast %334 : vector<2x128xf32> to vector<1x2x128xf32>
    tpu.vector_store %arg16[%335, %c0_136, %c0_137], %338 {strides = array<i32>} : memref<6x2x128xf32, #tpu.memory_space<vmem>>, vector<1x2x128xf32>,
    %339 = arith.index_cast %c3_i32 : i32 to index
    %c0_138 = arith.constant 0 : index
    %c0_139 = arith.constant 0 : index
    %340 = vector.load %arg17[%339, %c0_138, %c0_139] : memref<6x2x8xf32, #tpu.memory_space<vmem>>, vector<1x2x8xf32>
    %341 = vector.shape_cast %340 : vector<1x2x8xf32> to vector<2x8xf32>
    %342 = vector.shape_cast %283 : vector<2x8xf32> to vector<1x2x8xf32>
    tpu.vector_store %arg17[%339, %c0_138, %c0_139], %342 {strides = array<i32>} : memref<6x2x8xf32, #tpu.memory_space<vmem>>, vector<1x2x8xf32>,
    %c4_i32 = arith.constant 4 : i32
    %343 = arith.truncf %328 : vector<2x32xf32> to vector<2x32xbf16>
    %c0_140 = arith.constant 0 : index
    %c0_141 = arith.constant 0 : index
    %344 = vector.load %arg4[%c0_140, %c0_141] : memref<32x32xbf16, #tpu.memory_space<vmem>>, vector<32x32xbf16>
    %cst_142 = arith.constant dense<0.000000e+00> : vector<2x32xf32>
    %345 = tpu.matmul %343, %344, %cst_142 {dimension_numbers = #tpu.dot_dimension_numbers<[1], [0], [0], [1], [0, 0, 1, 1], [], []>} : vector<2x32xbf16>, vector<32x32xbf16>, vector<2x32xf32> -> vector<2x32xf32>
    %346 = vector.shape_cast %345 : vector<2x32xf32> to vector<2x1x32xf32>
    %347 = vector.broadcast %346 : vector<2x1x32xf32> to vector<2x8x32xf32>
    %348 = arith.addf %347, %8 : vector<2x8x32xf32>
    %cst_143 = arith.constant 0.000000e+00 : f32
    %349 = vector.broadcast %cst_143 : f32 to vector<2x8x32xf32>
    %350 = arith.maximumf %348, %349 : vector<2x8x32xf32>
    %351 = vector.broadcast %10 : vector<1x1x32xf32> to vector<2x8x32xf32>
    %352 = arith.mulf %350, %351 : vector<2x8x32xf32>
    %cst_144 = arith.constant dense<0.000000e+00> : vector<2x8xf32>
    %353 = vector.multi_reduction <add>, %352, %cst_144 [2] : vector<2x8x32xf32> to vector<2x8xf32>
    %354 = vector.broadcast %11 : vector<1x1xf32> to vector<2x8xf32>
    %355 = arith.addf %353, %354 : vector<2x8xf32>
    %cst_145 = arith.constant dense<0xFF800000> : vector<2xf32>
    %356 = vector.multi_reduction <maximumf>, %355, %cst_145 [1] : vector<2x8xf32> to vector<2xf32>
    %357 = vector.shape_cast %356 : vector<2xf32> to vector<2x1xf32>
    %358 = vector.broadcast %357 : vector<2x1xf32> to vector<2x8xf32>
    %359 = arith.subf %355, %358 : vector<2x8xf32>
    %360 = math.exp %359 : vector<2x8xf32>
    %cst_146 = arith.constant dense<0.000000e+00> : vector<2xf32>
    %361 = vector.multi_reduction <add>, %360, %cst_146 [1] : vector<2x8xf32> to vector<2xf32>
    %362 = vector.shape_cast %361 : vector<2xf32> to vector<2x1xf32>
    %363 = tpu.reciprocal %362 {approx = true} : vector<2x1xf32> -> vector<2x1xf32>
    %364 = vector.broadcast %363 : vector<2x1xf32> to vector<2x8xf32>
    %365 = arith.mulf %360, %364 : vector<2x8xf32>
    %366 = vector.shape_cast %365 : vector<2x8xf32> to vector<2x8x1xf32>
    %367 = vector.broadcast %366 : vector<2x8x1xf32> to vector<2x8x32xf32>
    %368 = arith.mulf %367, %0 : vector<2x8x32xf32>
    %cst_147 = arith.constant dense<0.000000e+00> : vector<2x32xf32>
    %369 = vector.multi_reduction <add>, %368, %cst_147 [1] : vector<2x8x32xf32> to vector<2x32xf32>
    %370 = arith.truncf %369 : vector<2x32xf32> to vector<2x32xbf16>
    %c0_148 = arith.constant 0 : index
    %c0_149 = arith.constant 0 : index
    %371 = vector.load %arg9[%c0_148, %c0_149] : memref<32x96xbf16, #tpu.memory_space<vmem>>, vector<32x96xbf16>
    %cst_150 = arith.constant dense<0.000000e+00> : vector<2x96xf32>
    %372 = tpu.matmul %370, %371, %cst_150 {dimension_numbers = #tpu.dot_dimension_numbers<[1], [0], [0], [1], [0, 0, 1, 1], [], []>} : vector<2x32xbf16>, vector<32x96xbf16>, vector<2x96xf32> -> vector<2x96xf32>
    %373 = arith.index_cast %c4_i32 : i32 to index
    %c0_151 = arith.constant 0 : index
    %c0_152 = arith.constant 0 : index
    %374 = vector.load %arg1[%373, %c0_151, %c0_152] : memref<6x2x32xbf16, #tpu.memory_space<vmem>>, vector<1x2x32xbf16>
    %375 = vector.shape_cast %374 : vector<1x2x32xbf16> to vector<2x32xbf16>
    %c0_153 = arith.constant 0 : index
    %c0_154 = arith.constant 0 : index
    %376 = vector.load %arg10[%c0_153, %c0_154] : memref<32x96xbf16, #tpu.memory_space<vmem>>, vector<32x96xbf16>
    %cst_155 = arith.constant dense<0.000000e+00> : vector<2x96xf32>
    %377 = tpu.matmul %375, %376, %cst_155 {dimension_numbers = #tpu.dot_dimension_numbers<[1], [0], [0], [1], [0, 0, 1, 1], [], []>} : vector<2x32xbf16>, vector<32x96xbf16>, vector<2x96xf32> -> vector<2x96xf32>
    %378 = arith.addf %372, %377 : vector<2x96xf32>
    %379 = vector.broadcast %12 : vector<1x96xf32> to vector<2x96xf32>
    %380 = arith.addf %378, %379 : vector<2x96xf32>
    %c0_156 = arith.constant 0 : index
    %c0_157 = arith.constant 0 : index
    %381 = vector.load %arg12[%c0_156, %c0_157] : memref<32x96xbf16, #tpu.memory_space<vmem>>, vector<32x96xbf16>
    %cst_158 = arith.constant dense<0.000000e+00> : vector<2x96xf32>
    %382 = tpu.matmul %343, %381, %cst_158 {dimension_numbers = #tpu.dot_dimension_numbers<[1], [0], [0], [1], [0, 0, 1, 1], [], []>} : vector<2x32xbf16>, vector<32x96xbf16>, vector<2x96xf32> -> vector<2x96xf32>
    %383 = vector.broadcast %13 : vector<1x96xf32> to vector<2x96xf32>
    %384 = arith.addf %382, %383 : vector<2x96xf32>
    %385 = vector.extract_strided_slice %380 {offsets = [0, 0], sizes = [2, 32], strides = [1, 1]} : vector<2x96xf32> to vector<2x32xf32>
    %386 = vector.extract_strided_slice %384 {offsets = [0, 0], sizes = [2, 32], strides = [1, 1]} : vector<2x96xf32> to vector<2x32xf32>
    %387 = arith.addf %385, %386 : vector<2x32xf32>
    %388 = arith.negf %387 : vector<2x32xf32>
    %389 = math.exp %388 : vector<2x32xf32>
    %cst_159 = arith.constant 1.000000e+00 : f32
    %390 = vector.broadcast %cst_159 : f32 to vector<2x32xf32>
    %391 = arith.addf %390, %389 : vector<2x32xf32>
    %392 = arith.divf %390, %391 : vector<2x32xf32>
    %393 = vector.extract_strided_slice %380 {offsets = [0, 32], sizes = [2, 32], strides = [1, 1]} : vector<2x96xf32> to vector<2x32xf32>
    %394 = vector.extract_strided_slice %384 {offsets = [0, 32], sizes = [2, 32], strides = [1, 1]} : vector<2x96xf32> to vector<2x32xf32>
    %395 = arith.addf %393, %394 : vector<2x32xf32>
    %396 = arith.negf %395 : vector<2x32xf32>
    %397 = math.exp %396 : vector<2x32xf32>
    %cst_160 = arith.constant 1.000000e+00 : f32
    %398 = vector.broadcast %cst_160 : f32 to vector<2x32xf32>
    %399 = arith.addf %398, %397 : vector<2x32xf32>
    %400 = arith.divf %398, %399 : vector<2x32xf32>
    %401 = vector.extract_strided_slice %380 {offsets = [0, 64], sizes = [2, 32], strides = [1, 1]} : vector<2x96xf32> to vector<2x32xf32>
    %402 = vector.extract_strided_slice %384 {offsets = [0, 64], sizes = [2, 32], strides = [1, 1]} : vector<2x96xf32> to vector<2x32xf32>
    %403 = arith.mulf %400, %402 : vector<2x32xf32>
    %404 = arith.addf %401, %403 : vector<2x32xf32>
    %405 = math.tanh %404 : vector<2x32xf32>
    %cst_161 = arith.constant 1.000000e+00 : f32
    %406 = vector.broadcast %cst_161 : f32 to vector<2x32xf32>
    %407 = arith.subf %406, %392 : vector<2x32xf32>
    %408 = arith.mulf %407, %405 : vector<2x32xf32>
    %409 = arith.mulf %392, %328 : vector<2x32xf32>
    %410 = arith.addf %408, %409 : vector<2x32xf32>
    %411 = arith.truncf %410 : vector<2x32xf32> to vector<2x32xbf16>
    %c0_162 = arith.constant 0 : index
    %c0_163 = arith.constant 0 : index
    %412 = vector.load %arg14[%c0_162, %c0_163] : memref<32x128xbf16, #tpu.memory_space<vmem>>, vector<32x128xbf16>
    %cst_164 = arith.constant dense<0.000000e+00> : vector<2x128xf32>
    %413 = tpu.matmul %411, %412, %cst_164 {dimension_numbers = #tpu.dot_dimension_numbers<[1], [0], [0], [1], [0, 0, 1, 1], [], []>} : vector<2x32xbf16>, vector<32x128xbf16>, vector<2x128xf32> -> vector<2x128xf32>
    %c0_165 = arith.constant 0 : index
    %c0_166 = arith.constant 0 : index
    %414 = vector.load %arg15[%c0_165, %c0_166] : memref<1x128xf32, #tpu.memory_space<vmem>>, vector<1x128xf32>
    %415 = vector.broadcast %414 : vector<1x128xf32> to vector<2x128xf32>
    %416 = arith.addf %413, %415 : vector<2x128xf32>
    %417 = arith.index_cast %c4_i32 : i32 to index
    %c0_167 = arith.constant 0 : index
    %c0_168 = arith.constant 0 : index
    %418 = vector.load %arg16[%417, %c0_167, %c0_168] : memref<6x2x128xf32, #tpu.memory_space<vmem>>, vector<1x2x128xf32>
    %419 = vector.shape_cast %418 : vector<1x2x128xf32> to vector<2x128xf32>
    %420 = vector.shape_cast %416 : vector<2x128xf32> to vector<1x2x128xf32>
    tpu.vector_store %arg16[%417, %c0_167, %c0_168], %420 {strides = array<i32>} : memref<6x2x128xf32, #tpu.memory_space<vmem>>, vector<1x2x128xf32>,
    %421 = arith.index_cast %c4_i32 : i32 to index
    %c0_169 = arith.constant 0 : index
    %c0_170 = arith.constant 0 : index
    %422 = vector.load %arg17[%421, %c0_169, %c0_170] : memref<6x2x8xf32, #tpu.memory_space<vmem>>, vector<1x2x8xf32>
    %423 = vector.shape_cast %422 : vector<1x2x8xf32> to vector<2x8xf32>
    %424 = vector.shape_cast %365 : vector<2x8xf32> to vector<1x2x8xf32>
    tpu.vector_store %arg17[%421, %c0_169, %c0_170], %424 {strides = array<i32>} : memref<6x2x8xf32, #tpu.memory_space<vmem>>, vector<1x2x8xf32>,
    %c5_i32 = arith.constant 5 : i32
    %425 = arith.truncf %410 : vector<2x32xf32> to vector<2x32xbf16>
    %c0_171 = arith.constant 0 : index
    %c0_172 = arith.constant 0 : index
    %426 = vector.load %arg4[%c0_171, %c0_172] : memref<32x32xbf16, #tpu.memory_space<vmem>>, vector<32x32xbf16>
    %cst_173 = arith.constant dense<0.000000e+00> : vector<2x32xf32>
    %427 = tpu.matmul %425, %426, %cst_173 {dimension_numbers = #tpu.dot_dimension_numbers<[1], [0], [0], [1], [0, 0, 1, 1], [], []>} : vector<2x32xbf16>, vector<32x32xbf16>, vector<2x32xf32> -> vector<2x32xf32>
    %428 = vector.shape_cast %427 : vector<2x32xf32> to vector<2x1x32xf32>
    %429 = vector.broadcast %428 : vector<2x1x32xf32> to vector<2x8x32xf32>
    %430 = arith.addf %429, %8 : vector<2x8x32xf32>
    %cst_174 = arith.constant 0.000000e+00 : f32
    %431 = vector.broadcast %cst_174 : f32 to vector<2x8x32xf32>
    %432 = arith.maximumf %430, %431 : vector<2x8x32xf32>
    %433 = vector.broadcast %10 : vector<1x1x32xf32> to vector<2x8x32xf32>
    %434 = arith.mulf %432, %433 : vector<2x8x32xf32>
    %cst_175 = arith.constant dense<0.000000e+00> : vector<2x8xf32>
    %435 = vector.multi_reduction <add>, %434, %cst_175 [2] : vector<2x8x32xf32> to vector<2x8xf32>
    %436 = vector.broadcast %11 : vector<1x1xf32> to vector<2x8xf32>
    %437 = arith.addf %435, %436 : vector<2x8xf32>
    %cst_176 = arith.constant dense<0xFF800000> : vector<2xf32>
    %438 = vector.multi_reduction <maximumf>, %437, %cst_176 [1] : vector<2x8xf32> to vector<2xf32>
    %439 = vector.shape_cast %438 : vector<2xf32> to vector<2x1xf32>
    %440 = vector.broadcast %439 : vector<2x1xf32> to vector<2x8xf32>
    %441 = arith.subf %437, %440 : vector<2x8xf32>
    %442 = math.exp %441 : vector<2x8xf32>
    %cst_177 = arith.constant dense<0.000000e+00> : vector<2xf32>
    %443 = vector.multi_reduction <add>, %442, %cst_177 [1] : vector<2x8xf32> to vector<2xf32>
    %444 = vector.shape_cast %443 : vector<2xf32> to vector<2x1xf32>
    %445 = tpu.reciprocal %444 {approx = true} : vector<2x1xf32> -> vector<2x1xf32>
    %446 = vector.broadcast %445 : vector<2x1xf32> to vector<2x8xf32>
    %447 = arith.mulf %442, %446 : vector<2x8xf32>
    %448 = vector.shape_cast %447 : vector<2x8xf32> to vector<2x8x1xf32>
    %449 = vector.broadcast %448 : vector<2x8x1xf32> to vector<2x8x32xf32>
    %450 = arith.mulf %449, %0 : vector<2x8x32xf32>
    %cst_178 = arith.constant dense<0.000000e+00> : vector<2x32xf32>
    %451 = vector.multi_reduction <add>, %450, %cst_178 [1] : vector<2x8x32xf32> to vector<2x32xf32>
    %452 = arith.truncf %451 : vector<2x32xf32> to vector<2x32xbf16>
    %c0_179 = arith.constant 0 : index
    %c0_180 = arith.constant 0 : index
    %453 = vector.load %arg9[%c0_179, %c0_180] : memref<32x96xbf16, #tpu.memory_space<vmem>>, vector<32x96xbf16>
    %cst_181 = arith.constant dense<0.000000e+00> : vector<2x96xf32>
    %454 = tpu.matmul %452, %453, %cst_181 {dimension_numbers = #tpu.dot_dimension_numbers<[1], [0], [0], [1], [0, 0, 1, 1], [], []>} : vector<2x32xbf16>, vector<32x96xbf16>, vector<2x96xf32> -> vector<2x96xf32>
    %455 = arith.index_cast %c5_i32 : i32 to index
    %c0_182 = arith.constant 0 : index
    %c0_183 = arith.constant 0 : index
    %456 = vector.load %arg1[%455, %c0_182, %c0_183] : memref<6x2x32xbf16, #tpu.memory_space<vmem>>, vector<1x2x32xbf16>
    %457 = vector.shape_cast %456 : vector<1x2x32xbf16> to vector<2x32xbf16>
    %c0_184 = arith.constant 0 : index
    %c0_185 = arith.constant 0 : index
    %458 = vector.load %arg10[%c0_184, %c0_185] : memref<32x96xbf16, #tpu.memory_space<vmem>>, vector<32x96xbf16>
    %cst_186 = arith.constant dense<0.000000e+00> : vector<2x96xf32>
    %459 = tpu.matmul %457, %458, %cst_186 {dimension_numbers = #tpu.dot_dimension_numbers<[1], [0], [0], [1], [0, 0, 1, 1], [], []>} : vector<2x32xbf16>, vector<32x96xbf16>, vector<2x96xf32> -> vector<2x96xf32>
    %460 = arith.addf %454, %459 : vector<2x96xf32>
    %461 = vector.broadcast %12 : vector<1x96xf32> to vector<2x96xf32>
    %462 = arith.addf %460, %461 : vector<2x96xf32>
    %c0_187 = arith.constant 0 : index
    %c0_188 = arith.constant 0 : index
    %463 = vector.load %arg12[%c0_187, %c0_188] : memref<32x96xbf16, #tpu.memory_space<vmem>>, vector<32x96xbf16>
    %cst_189 = arith.constant dense<0.000000e+00> : vector<2x96xf32>
    %464 = tpu.matmul %425, %463, %cst_189 {dimension_numbers = #tpu.dot_dimension_numbers<[1], [0], [0], [1], [0, 0, 1, 1], [], []>} : vector<2x32xbf16>, vector<32x96xbf16>, vector<2x96xf32> -> vector<2x96xf32>
    %465 = vector.broadcast %13 : vector<1x96xf32> to vector<2x96xf32>
    %466 = arith.addf %464, %465 : vector<2x96xf32>
    %467 = vector.extract_strided_slice %462 {offsets = [0, 0], sizes = [2, 32], strides = [1, 1]} : vector<2x96xf32> to vector<2x32xf32>
    %468 = vector.extract_strided_slice %466 {offsets = [0, 0], sizes = [2, 32], strides = [1, 1]} : vector<2x96xf32> to vector<2x32xf32>
    %469 = arith.addf %467, %468 : vector<2x32xf32>
    %470 = arith.negf %469 : vector<2x32xf32>
    %471 = math.exp %470 : vector<2x32xf32>
    %cst_190 = arith.constant 1.000000e+00 : f32
    %472 = vector.broadcast %cst_190 : f32 to vector<2x32xf32>
    %473 = arith.addf %472, %471 : vector<2x32xf32>
    %474 = arith.divf %472, %473 : vector<2x32xf32>
    %475 = vector.extract_strided_slice %462 {offsets = [0, 32], sizes = [2, 32], strides = [1, 1]} : vector<2x96xf32> to vector<2x32xf32>
    %476 = vector.extract_strided_slice %466 {offsets = [0, 32], sizes = [2, 32], strides = [1, 1]} : vector<2x96xf32> to vector<2x32xf32>
    %477 = arith.addf %475, %476 : vector<2x32xf32>
    %478 = arith.negf %477 : vector<2x32xf32>
    %479 = math.exp %478 : vector<2x32xf32>
    %cst_191 = arith.constant 1.000000e+00 : f32
    %480 = vector.broadcast %cst_191 : f32 to vector<2x32xf32>
    %481 = arith.addf %480, %479 : vector<2x32xf32>
    %482 = arith.divf %480, %481 : vector<2x32xf32>
    %483 = vector.extract_strided_slice %462 {offsets = [0, 64], sizes = [2, 32], strides = [1, 1]} : vector<2x96xf32> to vector<2x32xf32>
    %484 = vector.extract_strided_slice %466 {offsets = [0, 64], sizes = [2, 32], strides = [1, 1]} : vector<2x96xf32> to vector<2x32xf32>
    %485 = arith.mulf %482, %484 : vector<2x32xf32>
    %486 = arith.addf %483, %485 : vector<2x32xf32>
    %487 = math.tanh %486 : vector<2x32xf32>
    %cst_192 = arith.constant 1.000000e+00 : f32
    %488 = vector.broadcast %cst_192 : f32 to vector<2x32xf32>
    %489 = arith.subf %488, %474 : vector<2x32xf32>
    %490 = arith.mulf %489, %487 : vector<2x32xf32>
    %491 = arith.mulf %474, %410 : vector<2x32xf32>
    %492 = arith.addf %490, %491 : vector<2x32xf32>
    %493 = arith.truncf %492 : vector<2x32xf32> to vector<2x32xbf16>
    %c0_193 = arith.constant 0 : index
    %c0_194 = arith.constant 0 : index
    %494 = vector.load %arg14[%c0_193, %c0_194] : memref<32x128xbf16, #tpu.memory_space<vmem>>, vector<32x128xbf16>
    %cst_195 = arith.constant dense<0.000000e+00> : vector<2x128xf32>
    %495 = tpu.matmul %493, %494, %cst_195 {dimension_numbers = #tpu.dot_dimension_numbers<[1], [0], [0], [1], [0, 0, 1, 1], [], []>} : vector<2x32xbf16>, vector<32x128xbf16>, vector<2x128xf32> -> vector<2x128xf32>
    %c0_196 = arith.constant 0 : index
    %c0_197 = arith.constant 0 : index
    %496 = vector.load %arg15[%c0_196, %c0_197] : memref<1x128xf32, #tpu.memory_space<vmem>>, vector<1x128xf32>
    %497 = vector.broadcast %496 : vector<1x128xf32> to vector<2x128xf32>
    %498 = arith.addf %495, %497 : vector<2x128xf32>
    %499 = arith.index_cast %c5_i32 : i32 to index
    %c0_198 = arith.constant 0 : index
    %c0_199 = arith.constant 0 : index
    %500 = vector.load %arg16[%499, %c0_198, %c0_199] : memref<6x2x128xf32, #tpu.memory_space<vmem>>, vector<1x2x128xf32>
    %501 = vector.shape_cast %500 : vector<1x2x128xf32> to vector<2x128xf32>
    %502 = vector.shape_cast %498 : vector<2x128xf32> to vector<1x2x128xf32>
    tpu.vector_store %arg16[%499, %c0_198, %c0_199], %502 {strides = array<i32>} : memref<6x2x128xf32, #tpu.memory_space<vmem>>, vector<1x2x128xf32>,
    %503 = arith.index_cast %c5_i32 : i32 to index
    %c0_200 = arith.constant 0 : index
    %c0_201 = arith.constant 0 : index
    %504 = vector.load %arg17[%503, %c0_200, %c0_201] : memref<6x2x8xf32, #tpu.memory_space<vmem>>, vector<1x2x8xf32>
    %505 = vector.shape_cast %504 : vector<1x2x8xf32> to vector<2x8xf32>
    %506 = vector.shape_cast %447 : vector<2x8xf32> to vector<1x2x8xf32>
    tpu.vector_store %arg17[%503, %c0_200, %c0_201], %506 {strides = array<i32>} : memref<6x2x8xf32, #tpu.memory_space<vmem>>, vector<1x2x8xf32>,
    %c6_i32 = arith.constant 6 : i32
    return
  }
  func.func @transform_0(%arg0: i32) -> (i32, i32, i32) {
    %c0_i32 = arith.constant 0 : i32
    %c0_i32_0 = arith.constant 0 : i32
    %c0_i32_1 = arith.constant 0 : i32
    return %c0_i32, %arg0, %c0_i32_0 : i32, i32, i32
  }
  func.func @transform_1(%arg0: i32) -> (i32, i32, i32) {
    %c0_i32 = arith.constant 0 : i32
    %c0_i32_0 = arith.constant 0 : i32
    %c0_i32_1 = arith.constant 0 : i32
    return %arg0, %c0_i32, %c0_i32_0 : i32, i32, i32
  }
  func.func @transform_2(%arg0: i32) -> (i32, i32) {
    %c0_i32 = arith.constant 0 : i32
    %c0_i32_0 = arith.constant 0 : i32
    return %arg0, %c0_i32 : i32, i32
  }
  func.func @transform_3(%arg0: i32) -> (i32, i32) {
    %c0_i32 = arith.constant 0 : i32
    %c0_i32_0 = arith.constant 0 : i32
    %c0_i32_1 = arith.constant 0 : i32
    return %c0_i32, %c0_i32_0 : i32, i32
  }
  func.func @transform_4(%arg0: i32) -> (i32, i32) {
    %c0_i32 = arith.constant 0 : i32
    %c0_i32_0 = arith.constant 0 : i32
    %c0_i32_1 = arith.constant 0 : i32
    return %c0_i32, %c0_i32_0 : i32, i32
  }
  func.func @transform_5(%arg0: i32) -> (i32, i32) {
    %c0_i32 = arith.constant 0 : i32
    %c0_i32_0 = arith.constant 0 : i32
    %c0_i32_1 = arith.constant 0 : i32
    return %c0_i32, %c0_i32_0 : i32, i32
  }
  func.func @transform_6(%arg0: i32) -> (i32, i32) {
    %c0_i32 = arith.constant 0 : i32
    %c0_i32_0 = arith.constant 0 : i32
    %c0_i32_1 = arith.constant 0 : i32
    return %c0_i32, %c0_i32_0 : i32, i32
  }
  func.func @transform_7(%arg0: i32) -> (i32, i32) {
    %c0_i32 = arith.constant 0 : i32
    %c0_i32_0 = arith.constant 0 : i32
    %c0_i32_1 = arith.constant 0 : i32
    return %c0_i32, %c0_i32_0 : i32, i32
  }
  func.func @transform_8(%arg0: i32) -> (i32, i32) {
    %c0_i32 = arith.constant 0 : i32
    %c0_i32_0 = arith.constant 0 : i32
    %c0_i32_1 = arith.constant 0 : i32
    return %c0_i32, %c0_i32_0 : i32, i32
  }
  func.func @transform_9(%arg0: i32) -> (i32, i32) {
    %c0_i32 = arith.constant 0 : i32
    %c0_i32_0 = arith.constant 0 : i32
    %c0_i32_1 = arith.constant 0 : i32
    return %c0_i32, %c0_i32_0 : i32, i32
  }
  func.func @transform_10(%arg0: i32) -> (i32, i32) {
    %c0_i32 = arith.constant 0 : i32
    %c0_i32_0 = arith.constant 0 : i32
    %c0_i32_1 = arith.constant 0 : i32
    return %c0_i32, %c0_i32_0 : i32, i32
  }
  func.func @transform_11(%arg0: i32) -> (i32, i32) {
    %c0_i32 = arith.constant 0 : i32
    %c0_i32_0 = arith.constant 0 : i32
    %c0_i32_1 = arith.constant 0 : i32
    return %c0_i32, %c0_i32_0 : i32, i32
  }
  func.func @transform_12(%arg0: i32) -> (i32, i32) {
    %c0_i32 = arith.constant 0 : i32
    %c0_i32_0 = arith.constant 0 : i32
    %c0_i32_1 = arith.constant 0 : i32
    return %c0_i32, %c0_i32_0 : i32, i32
  }
  func.func @transform_13(%arg0: i32) -> (i32, i32) {
    %c0_i32 = arith.constant 0 : i32
    %c0_i32_0 = arith.constant 0 : i32
    %c0_i32_1 = arith.constant 0 : i32
    return %c0_i32, %c0_i32_0 : i32, i32
  }
  func.func @transform_14(%arg0: i32) -> (i32, i32) {
    %c0_i32 = arith.constant 0 : i32
    %c0_i32_0 = arith.constant 0 : i32
    %c0_i32_1 = arith.constant 0 : i32
    return %c0_i32, %c0_i32_0 : i32, i32
  }
  func.func @transform_15(%arg0: i32) -> (i32, i32, i32) {
    %c0_i32 = arith.constant 0 : i32
    %c0_i32_0 = arith.constant 0 : i32
    %c0_i32_1 = arith.constant 0 : i32
    return %c0_i32, %arg0, %c0_i32_0 : i32, i32, i32
  }
  func.func @transform_16(%arg0: i32) -> (i32, i32, i32) {
    %c0_i32 = arith.constant 0 : i32
    %c0_i32_0 = arith.constant 0 : i32
    %c0_i32_1 = arith.constant 0 : i32
    return %c0_i32, %arg0, %c0_i32_0 : i32, i32, i32
  }
}

</mosaic_0001>

<bundles_post_ra>
// kernel: tpu_custom_call.1
= control target key start
LH: loop header
LB: loop body
LE: loop exit
PB: predicated region body
PF: predicated region fallthrough
CT: control target
= control target key end

     0   :  { %s4959_s0 = inlined_call_operand.hbm [shape: bf16[6,2,32], index: 0, kind: input, shape index: {}]   ;;  %s4960_s1 = inlined_call_operand.hbm [shape: f32[2,8,32], index: 1, kind: input, shape index: {}]   ;;  %s4961_s2 = inlined_call_operand.hbm [shape: f32[2,32], index: 2, kind: input, shape index: {}]   ;;  %s4962_s3 = inlined_call_operand.hbm [shape: bf16[32,32], index: 3, kind: input, shape index: {}]   ;;  %s4963_s4 = inlined_call_operand.vmem [shape: bf16[32,32], index: 4, kind: input, shape index: {}]   ;;  %s4964_s5 = inlined_call_operand.vmem [shape: f32[1,32], index: 5, kind: input, shape index: {}]   ;;  %s4965_s6 = inlined_call_operand.hbm [shape: f32[1,32], index: 6, kind: input, shape index: {}]   ;;  %s4966_s7 = inlined_call_operand.<no memory space> [shape: f32[1,1], index: 7, kind: input, shape index: {}]   ;;  %s4967_s8 = inlined_call_operand.hbm [shape: bf16[32,96], index: 8, kind: input, shape index: {}]   ;;  %s4968_s9 = inlined_call_operand.vmem [shape: bf16[32,96], index: 9, kind: input, shape index: {}]   ;;  %s4969_s10 = inlined_call_operand.hbm [shape: f32[1,96], index: 10, kind: input, shape index: {}]   ;;  %s4970_s11 = inlined_call_operand.hbm [shape: bf16[32,96], index: 11, kind: input, shape index: {}]   ;;  %s4971_s12 = inlined_call_operand.hbm [shape: f32[1,96], index: 12, kind: input, shape index: {}]   ;;  %s4972_s13 = inlined_call_operand.vmem [shape: bf16[32,128], index: 13, kind: input, shape index: {}]   ;;  %s4973_s14 = inlined_call_operand.vmem [shape: f32[1,128], index: 14, kind: input, shape index: {}]   ;;  %s4974_s15 = inlined_call_operand.hbm [shape: f32[6,2,128], index: 15, kind: output, shape index: {0}]   ;;  %s4975_s16 = inlined_call_operand.hbm [shape: f32[6,2,8], index: 16, kind: output, shape index: {1}]  }
   0x1   :  { %4977 = sst [smem:[#allocation28_spill]] %s4959_s0  ;;  %v22_v0 = vstv %s4966_s7 }
   0x2   :  { %23 = vst [vmem:[#allocation2] sm:$0x1] %v22_v0 }
   0x3   :  { %24 = vsyncpa [#allocation4], 0 }
   0x4   :  { %25 = vsyncpa [#allocation7], 0 }
   0x5   :  { %26 = vsyncpa [#allocation10], 0 }
   0x6   :  { %27 = vsyncpa [#allocation13], 0 }
   0x7   :  { %28 = vsyncpa [#allocation16], 0 }
   0x8   :  { %29 = vsyncpa [#allocation5], 0 }
   0x9   :  { %30 = vsyncpa [#allocation20], 0  ;;  %s4124_s23 = smov [#allocation6]   ;;  %s3868_s27 = scalar_lea.hbm %s4960_s1, 256 }
   0xa   :  { %s48_s24 = sshll.u32 %s4124_s23, 4  ;;  %p3869_p0 = scmp.ne.s32.totalorder %s4960_s1, %s3868_s27  ;;  %s49_s24 = int_to_ptr.vmem [resolvable:$true] %s48_s24 }
   0xb   :  { %p3872_p1 = scmp.lt.u32.totalorder %s3868_s27, %s4960_s1 }
   0xd   :  { %p3874_p2 = pnand %p3872_p1, %p3869_p0 }
   0xf   :  { %3877 = shalt.err (!%p3874_p2)
}
  0x10   :  { %s3878_s0 = scalar_lea.vmem %s49_s24, 256  ;;  %p3883_p4 = scmp.lt.s32.totalorder %s49_s24, %s49_s24 }
  0x11   :  { %p3879_p3 = scmp.ne.s32.totalorder %s49_s24, %s3878_s0  ;;  %p3884_p5 = scmp.lt.s32.totalorder %s3878_s0, %s3878_s0 }
  0x13   :  { %p3885_p6 = por %p3884_p5, %p3883_p4 }
  0x15   :  { %p3886_p7 = pnand %p3885_p6, %p3879_p3 }
  0x17   :  { %3889 = shalt.err (!%p3886_p7)
}
  0x18   :  { %s4125_s17 = smov 128   ;;  %s4126_s18 = smov 8  }
  0x19   :  { %54 = dma.hbm_to_vmem [thread:$0]  %s4960_s1, 256, %s49_s24, [#allocation7], %s4125_s17, %s4125_s17, %s4126_s18  }
  0x1a   :  { %s4127_s21 = smov [#allocation9]   ;;  %s3890_s26 = scalar_lea.hbm %s4962_s3, 256 }
  0x1b   :  { %s70_s22 = sshll.u32 %s4127_s21, 4  ;;  %p3891_p8 = scmp.ne.s32.totalorder %s4962_s3, %s3890_s26  ;;  %s71_s22 = int_to_ptr.vmem [resolvable:$true] %s70_s22 }
  0x1c   :  { %p3894_p9 = scmp.lt.u32.totalorder %s3890_s26, %s4962_s3 }
  0x1e   :  { %p3896_p10 = pnand %p3894_p9, %p3891_p8 }
  0x20   :  { %3899 = shalt.err (!%p3896_p10)
}
  0x21   :  { %s3900_s30 = scalar_lea.vmem %s71_s22, 256  ;;  %p3905_p12 = scmp.lt.s32.totalorder %s71_s22, %s71_s22 }
  0x22   :  { %p3901_p11 = scmp.ne.s32.totalorder %s71_s22, %s3900_s30  ;;  %p3906_p13 = scmp.lt.s32.totalorder %s3900_s30, %s3900_s30 }
  0x24   :  { %p3907_p0 = por %p3906_p13, %p3905_p12 }
  0x26   :  { %p3908_p1 = pnand %p3907_p0, %p3901_p11 }
  0x28   :  { %3911 = shalt.err (!%p3908_p1)
}
  0x29   :  { %s4128_s1 = smov 64   ;;  %s4129_s24 = smov 4  }
  0x2a   :  { %76 = dma.hbm_to_vmem [thread:$0]  %s4962_s3, 256, %s71_s22, [#allocation10], %s4128_s1, %s4128_s1, %s4129_s24  }
  0x2b   :  { %s4130_s18 = smov [#allocation12]   ;;  %s4131_s20 = smov [#allocation15]  }
  0x2c   :  { %s98_s19 = sshll.u32 %s4130_s18, 4  ;;  %s122_s21 = sshll.u32 %s4131_s20, 4  ;;  %s99_s19 = int_to_ptr.vmem [resolvable:$true] %s98_s19  ;;  %s4263_s21 = int_to_ptr.vmem [resolvable:$true] %s122_s21 }
  0x2d   :  { %s3912_s26 = scalar_lea.hbm %s4967_s8, 256 }
  0x2e   :  { %p3913_p2 = scmp.ne.s32.totalorder %s4967_s8, %s3912_s26  ;;  %p3916_p3 = scmp.lt.u32.totalorder %s3912_s26, %s4967_s8 }
  0x30   :  { %p3918_p4 = pnand %p3916_p3, %p3913_p2 }
  0x32   :  { %3921 = shalt.err (!%p3918_p4)
}
  0x33   :  { %s3922_s3 = scalar_lea.vmem %s99_s19, 256  ;;  %p3927_p6 = scmp.lt.s32.totalorder %s99_s19, %s99_s19 }
  0x34   :  { %p3923_p5 = scmp.ne.s32.totalorder %s99_s19, %s3922_s3  ;;  %p3928_p7 = scmp.lt.s32.totalorder %s3922_s3, %s3922_s3 }
  0x36   :  { %p3929_p8 = por %p3928_p7, %p3927_p6 }
  0x38   :  { %p3930_p9 = pnand %p3929_p8, %p3923_p5 }
  0x3a   :  { %3933 = shalt.err (!%p3930_p9)
}
  0x3b   :  { %104 = dma.hbm_to_vmem [thread:$0]  %s4967_s8, 256, %s99_s19, [#allocation13], %s4128_s1, %s4128_s1, %s4129_s24  }
  0x3c   :  { %s3934_s18 = scalar_lea.hbm %s4970_s11, 256 }
  0x3d   :  { %p3935_p10 = scmp.ne.s32.totalorder %s4970_s11, %s3934_s18  ;;  %p3938_p11 = scmp.lt.u32.totalorder %s3934_s18, %s4970_s11 }
  0x3f   :  { %p3940_p12 = pnand %p3938_p11, %p3935_p10 }
  0x41   :  { %3943 = shalt.err (!%p3940_p12)
}
  0x42   :  { %s3944_s27 = scalar_lea.vmem %s4263_s21, 256  ;;  %p3949_p0 = scmp.lt.s32.totalorder %s4263_s21, %s4263_s21 }
  0x43   :  { %p3945_p13 = scmp.ne.s32.totalorder %s4263_s21, %s3944_s27  ;;  %p3950_p1 = scmp.lt.s32.totalorder %s3944_s27, %s3944_s27 }
  0x45   :  { %p3951_p2 = por %p3950_p1, %p3949_p0 }
  0x47   :  { %p3952_p3 = pnand %p3951_p2, %p3945_p13 }
  0x49   :  { %3955 = shalt.err (!%p3952_p3)
}
  0x4a   :  { %128 = dma.hbm_to_vmem [thread:$0]  %s4970_s11, 256, %s4263_s21, [#allocation16], %s4128_s1, %s4128_s1, %s4129_s24  }
  0x4b   :  { %s4132_s28 = smov [#allocation3]   ;;  %s4978_s22 = sld [smem:[#allocation28_spill]] }
  0x4c   :  { %s36_s29 = sshll.u32 %s4132_s28, 4  ;;  %s37_s29 = int_to_ptr.vmem [resolvable:$true] %s36_s29 }
  0x51   :  { %s3956_s30 = scalar_lea.hbm %s4978_s22, 96 }
  0x52   :  { %p3957_p4 = scmp.ne.s32.totalorder %s4978_s22, %s3956_s30  ;;  %p3960_p5 = scmp.lt.u32.totalorder %s3956_s30, %s4978_s22 }
  0x54   :  { %p3962_p6 = pnand %p3960_p5, %p3957_p4 }
  0x56   :  { %3965 = shalt.err (!%p3962_p6)
}
  0x57   :  { %s3966_s23 = scalar_lea.vmem %s37_s29, 96  ;;  %p3971_p8 = scmp.lt.s32.totalorder %s37_s29, %s37_s29 }
  0x58   :  { %p3967_p7 = scmp.ne.s32.totalorder %s37_s29, %s3966_s23  ;;  %p3972_p9 = scmp.lt.s32.totalorder %s3966_s23, %s3966_s23 }
  0x5a   :  { %p3973_p10 = por %p3972_p9, %p3971_p8 }
  0x5c   :  { %p3974_p11 = pnand %p3973_p10, %p3967_p7 }
  0x5e   :  { %3977 = shalt.err (!%p3974_p11)
}
  0x5f   :  { %s4133_s11 = smov 16   ;;  %s4134_s24 = smov 1  }
  0x60   :  { %42 = dma.hbm_to_vmem [thread:$0]  %s4978_s22, 96, %s37_s29, [#allocation4], %s4133_s11, %s4133_s11, %s4134_s24  }
  0x61   :  { %s4135_s26 = smov [#allocation8]   ;;  %s4136_s8 = smov [#allocation11]  }
  0x62   :  { %s61_s27 = sshll.u32 %s4135_s26, 4  ;;  %s87_s19 = sshll.u32 %s4136_s8, 4  ;;  %s62_s27 = int_to_ptr.vmem [resolvable:$true] %s61_s27  ;;  %s88_s19 = int_to_ptr.vmem [resolvable:$true] %s87_s19 }
  0x63   :  { %s3978_s3 = scalar_lea.hbm %s4961_s2, 32 }
  0x64   :  { %p3979_p12 = scmp.ne.s32.totalorder %s4961_s2, %s3978_s3  ;;  %p3982_p13 = scmp.lt.u32.totalorder %s3978_s3, %s4961_s2 }
  0x66   :  { %p3984_p0 = pnand %p3982_p13, %p3979_p12 }
  0x68   :  { %3987 = shalt.err (!%p3984_p0)
}
  0x69   :  { %s3988_s29 = scalar_lea.vmem %s62_s27, 32  ;;  %p3993_p2 = scmp.lt.s32.totalorder %s62_s27, %s62_s27 }
  0x6a   :  { %p3989_p1 = scmp.ne.s32.totalorder %s62_s27, %s3988_s29  ;;  %p3994_p3 = scmp.lt.s32.totalorder %s3988_s29, %s3988_s29 }
  0x6c   :  { %p3995_p4 = por %p3994_p3, %p3993_p2 }
  0x6e   :  { %p3996_p5 = pnand %p3995_p4, %p3989_p1 }
  0x70   :  { %3999 = shalt.err (!%p3996_p5)
}
  0x71   :  { %64 = dma.hbm_to_vmem [thread:$0]  %s4961_s2, 32, %s62_s27, [#allocation7]  }
  0x72   :  { %s4000_s24 = scalar_lea.hbm %s4965_s6, 16 }
  0x73   :  { %p4001_p6 = scmp.ne.s32.totalorder %s4965_s6, %s4000_s24  ;;  %p4004_p7 = scmp.lt.u32.totalorder %s4000_s24, %s4965_s6 }
  0x75   :  { %p4006_p8 = pnand %p4004_p7, %p4001_p6 }
  0x77   :  { %4009 = shalt.err (!%p4006_p8)
}
  0x78   :  { %s4010_s28 = scalar_lea.vmem %s88_s19, 16  ;;  %s4014_s7 = scalar_lea.vmem %s88_s19, 32 }
  0x79   :  { %p4011_p9 = scmp.ne.s32.totalorder %s88_s19, %s4010_s28  ;;  %p4015_p10 = scmp.lt.s32.totalorder %s88_s19, %s88_s19 }
  0x7a   :  { %p4016_p11 = scmp.lt.s32.totalorder %s4014_s7, %s4010_s28 }
  0x7c   :  { %p4017_p12 = por %p4016_p11, %p4015_p10 }
  0x7e   :  { %p4018_p13 = pnand %p4017_p12, %p4011_p9 }
  0x80   :  { %4021 = shalt.err (!%p4018_p13)
}
  0x81   :  { %90 = dma.hbm_to_vmem [thread:$0]  %s4965_s6, 16, %s88_s19, [#allocation10]  }
  0x82   :  { %s4137_s3 = smov [#allocation14]   ;;  %s4138_s0 = smov [#allocation17]  }
  0x83   :  { %s113_s30 = sshll.u32 %s4137_s3, 4  ;;  %s135_s17 = sshll.u32 %s4138_s0, 4  ;;  %s114_s30 = int_to_ptr.vmem [resolvable:$true] %s113_s30  ;;  %s136_s17 = int_to_ptr.vmem [resolvable:$true] %s135_s17 }
  0x84   :  { %s4022_s22 = scalar_lea.hbm %s4969_s10, 16 }
  0x85   :  { %p4023_p0 = scmp.ne.s32.totalorder %s4969_s10, %s4022_s22  ;;  %p4026_p1 = scmp.lt.u32.totalorder %s4022_s22, %s4969_s10 }
  0x87   :  { %p4028_p2 = pnand %p4026_p1, %p4023_p0 }
  0x89   :  { %4031 = shalt.err (!%p4028_p2)
}
  0x8a   :  { %s4032_s6 = scalar_lea.vmem %s114_s30, 16  ;;  %s4036_s19 = scalar_lea.vmem %s114_s30, 32 }
  0x8b   :  { %p4033_p3 = scmp.ne.s32.totalorder %s114_s30, %s4032_s6  ;;  %p4037_p4 = scmp.lt.s32.totalorder %s114_s30, %s114_s30 }
  0x8c   :  { %p4038_p5 = scmp.lt.s32.totalorder %s4036_s19, %s4032_s6 }
  0x8e   :  { %p4039_p6 = por %p4038_p5, %p4037_p4 }
  0x90   :  { %p4040_p7 = pnand %p4039_p6, %p4033_p3 }
  0x92   :  { %4043 = shalt.err (!%p4040_p7)
}
  0x93   :  { %116 = dma.hbm_to_vmem [thread:$0]  %s4969_s10, 16, %s114_s30, [#allocation13]  }
  0x94   :  { %s4044_s28 = scalar_lea.hbm %s4971_s12, 16 }
  0x95   :  { %p4045_p8 = scmp.ne.s32.totalorder %s4971_s12, %s4044_s28  ;;  %p4048_p9 = scmp.lt.u32.totalorder %s4044_s28, %s4971_s12 }
  0x97   :  { %p4050_p10 = pnand %p4048_p9, %p4045_p8 }
  0x99   :  { %4053 = shalt.err (!%p4050_p10)
}
  0x9a   :  { %s4054_s0 = scalar_lea.vmem %s136_s17, 16  ;;  %s4058_s18 = scalar_lea.vmem %s136_s17, 32 }
  0x9b   :  { %p4055_p11 = scmp.ne.s32.totalorder %s136_s17, %s4054_s0  ;;  %p4059_p12 = scmp.lt.s32.totalorder %s136_s17, %s136_s17 }
  0x9c   :  { %p4060_p13 = scmp.lt.s32.totalorder %s4058_s18, %s4054_s0 }
  0x9e   :  { %p4061_p0 = por %p4060_p13, %p4059_p12 }
  0xa0   :  { %p4062_p1 = pnand %p4061_p0, %p4055_p11 }
  0xa2   :  { %4065 = shalt.err (!%p4062_p1)
}
  0xa3   :  { %138 = dma.hbm_to_vmem [thread:$0]  %s4971_s12, 16, %s136_s17, [#allocation16]  }
  0xa4   :  { %4110 = dma.done.wait [#allocation4], 96  }
  0xa5   :  { %4111 = vsyncadd [#allocation4], 4294967200 }
  0xa6   :  { %4112 = dma.done.wait [#allocation7], 288  }
  0xa7   :  { %4113 = vsyncadd [#allocation7], 4294967008 }
  0xa8   :  { %4114 = dma.done.wait [#allocation10], 272  }
  0xa9   :  { %4115 = vsyncadd [#allocation10], 4294967024 }
  0xaa   :  { %4116 = dma.done.wait [#allocation13], 272  }
  0xab   :  { %4117 = vsyncadd [#allocation13], 4294967024 }
  0xac   :  { %4118 = dma.done.wait [#allocation16], 272  }
  0xad   :  { %4119 = vsyncadd [#allocation16], 4294967024  ;;  %v4139_v1 = vmov 0.0   ;;  %vm4140_vm0 = vmmov 0   ;;  %v3729_v2 = vld [vmem:[#allocation9] sm:$0xff]   ;;  %v3731_v4 = vld [vmem:[#allocation9 + $0x8] sm:$0xff]   ;;  %v317_v15 = vlaneseq }
  0xae   :  { %3463 = vmatprep.subr.bf16.mxu1 %v4139_v1  ;;  %3455 = vmatprep.subr.bf16.mxu0 %v4139_v1  ;;  %v3730_v3 = vld [vmem:[%s4963_s4] sm:$0xff]   ;;  %v3732_v5 = vld [vmem:[%s4963_s4 + $0x8] sm:$0xff]   ;;  %vm203_vm1 = vcmask 261120   ;;  %v4374_v6 = vld [vmem:[#allocation8] sm:$0x3]  ;;  %v4141_v12 = vmov 0  }
  0xaf   :  { %3467 = vmatprep.mubr.msk.bf16.mxu1 %vm4140_vm0, %v4139_v1  ;;  %3459 = vmatprep.mubr.msk.bf16.mxu0 %vm4140_vm0, %v4139_v1  ;;  %v4376_v7 = vld [vmem:[#allocation6] sm:$0xff]  ;;  %v4378_v8 = vld [vmem:[#allocation6 + $0x8] sm:$0xff]  ;;  %v4382_v9 = vpack.c.bf16 %v4374_v6, %v4374_v6  ;;  %v3259_v11 = vld [vmem:[#allocation2] ss:$0 sm:$0xff]  ;;  %v4142_v13 = vmov 1966171168  }
  0xb0   :  { %3464 = vmatpush3.bf16.msra.mxu1 %v3729_v2  ;;  %3456 = vmatpush3.bf16.msra.mxu0 %v3730_v3  ;;  %v3361_v10 = vpack.c.bf16 %v4378_v8, %v4376_v7  ;;  %v315_v14 = vunpack.c.l.s4 %v4142_v13  ;;  %v318_v17 = vshrl.u32 %v317_v15, 7  ;;  %v3250_v20 = vld [vmem:[%s4964_s5] ss:$0 sm:$0xff]  ;;  %v4412_v38 = vld [vmem:[#allocation11] ss:$0 sm:$0xff]  ;;  %v378_v46 = vand.u32 127, %v317_v15 }
  0xb1   :  { %3465 = vmatprep.subr.bf16.mxu1 %v4139_v1  ;;  %3457 = vmatprep.subr.bf16.mxu0 %v4139_v1  ;;  %vm387_vm2 = vcmask 1041409   ;;  %vm390_vm3 = vcmask 58368   ;;  %v3734_v15 = vld [vmem:[%s4968_s9 + $0x8] sm:$0xff]   ;;  %s4143_s6 = smov 96   ;;  %s4144_s19 = smov 32  }
  0xb2   :  { %3727 = vset.pattern.permute.xlu1 %v4141_v12  ;;  %3728 = vset.pattern.permute.xlu0 %v4141_v12  ;;  %v316_v16 = vunpack.c.0.s8 %v315_v14  ;;  %v4401_v22 = vsub.s32 0, %v318_v17  ;;  %v4421_v49 = vsub.s32 %v378_v46, %v318_v17  ;;  %v4429_v57 = vsub.s32 1, %v318_v17  ;;  %v3733_v14 = vld [vmem:[%s4968_s9] sm:$0xff]   ;;  %s4145_s24 = smov [#allocation19]  }
  0xb3   :  { %370 = vperm.xlu1 %3727, %v3259_v11   ;;  %s3230_s21 = sshll.u32 %s4145_s24, 4  ;;  %s3231_s21 = int_to_ptr.vmem [resolvable:$true] %s3230_s21 }
  0xb4   :  { %3466 = vmatpush3.bf16.msra.mxu1 %v3731_v4  ;;  %3458 = vmatpush3.bf16.msra.mxu0 %v3732_v5  ;;  %v4395_v18 = vsub.s32 %v316_v16, %v318_v17  ;;  %v478_v16 = vld [vmem:[#allocation3] sm:$0x1]  ;;  %s4066_s25 = scalar_lea.vmem %s3231_s21, 192  ;;  %p4071_p3 = scmp.lt.s32.totalorder %s3231_s21, %s3231_s21 }
  0xb5   :  { %3479 = vmatprep.subr.bf16.mxu1 %v4139_v1  ;;  %3471 = vmatprep.subr.bf16.mxu0 %v4139_v1  ;;  %v3735_v17 = vld [vmem:[#allocation15] sm:$0xff]   ;;  %p4067_p2 = scmp.ne.s32.totalorder %s3231_s21, %s4066_s25  ;;  %p4072_p4 = scmp.lt.s32.totalorder %s4066_s25, %s4066_s25 }
  0xb7   :  { %3468 = vmatmul.mubr.msk.bf16.vlgmr.msra.gmra.mrb[0].mxu1 %vm203_vm1, %v4382_v9  ;;  %3460 = vmatmul.mubr.msk.bf16.vlgmr.msra.gmra.mrb[0].mxu0 %vm203_vm1, %v3361_v10  ;;  %p4073_p5 = por %p4072_p4, %p4071_p3 }
  0xb8   :  { %3483 = vmatprep.mubr.msk.bf16.mxu1 %vm4140_vm0, %v4139_v1  ;;  %3475 = vmatprep.mubr.msk.bf16.mxu0 %vm4140_vm0, %v4139_v1 }
  0xb9   :  { %3472 = vmatpush3.bf16.msra.mxu0 %v3733_v14  ;;  %p4074_p6 = pnand %p4073_p5, %p4067_p2 }
  0xba   :  { %3473 = vmatprep.subr.bf16.mxu0 %v4139_v1 }
  0xbd   :  { %3474 = vmatpush3.bf16.msra.mxu0 %v3734_v15 }
  0xbe   :  { %3487 = vmatprep.subr.bf16.mxu0 %v4139_v1 }
  0xc0   :  { %3476 = vmatmul.mubr.msk.bf16.vlgmr.msra.gmra.mrb[4].mxu0 %vm203_vm1, %v478_v16 }
  0xc1   :  { %3488 = vmatpush3.bf16.msra.mxu0 %v3735_v17  ;;  %3491 = vmatprep.mubr.msk.bf16.mxu0 %vm4140_vm0, %v4139_v1 }
  0xc2   :  { %3489 = vmatprep.subr.bf16.mxu0 %v4139_v1 }
 0x132   :  { %v4419_v47 = vpop.permute.xlu1 %370 }
 0x18a   :  { %v307_v19 = vpop.f32.mrb[0].mxu1  ;;  %v241_v23 = vpop.f32.mrb[0].mxu0 }
 0x18b   :  { %v320_v21 = vrot.slane %v307_v19, %v4395_v18  ;;  %v3469_v24 = vpop.f32.mrb[1].mxu1  ;;  %v3461_v25 = vpop.f32.mrb[1].mxu0  ;;  %v4404_v29 = vadd.f32 %v3250_v20, %v241_v23  ;;  %v3736_v19 = vld [vmem:[#allocation15 + $0x8] sm:$0xff]  }
 0x18c   :  { %v310_v26 = vpop.f32.mrb[2].mxu1  ;;  %v244_v30 = vpop.f32.mrb[2].mxu0  ;;  %3490 = vmatpush3.bf16.msra.mxu0 %v3736_v19 }
 0x18d   :  { %v321_v27 = vcombine.high %v320_v21, %v320_v21  ;;  %v328_v28 = vrot.slane %v320_v21, %v4395_v18  ;;  %v3470_v31 = vpop.f32.mrb[3].mxu1  ;;  %v3462_v32 = vpop.f32.mrb[3].mxu0  ;;  %v4409_v36 = vadd.f32 %v3250_v20, %v244_v30  ;;  %3503 = vmatprep.subr.bf16.mxu0 %v4139_v1 }
 0x18f   :  { %v335_v33 = vrot.slane %v321_v27, %v4395_v18  ;;  %v339_v34 = vrot.slane %v328_v28, %v4401_v22  ;;  %3492 = vmatmul.mubr.msk.bf16.vlgmr.msra.gmra.mrb[8].mxu0 %vm203_vm1, %v4382_v9  ;;  %v3737_v27 = vld [vmem:[#allocation12] sm:$0xff]   ;;  %v3738_v28 = vld [vmem:[#allocation12 + $0x8] sm:$0xff]  }
 0x190   :  { %3507 = vmatprep.mubr.msk.bf16.mxu0 %vm4140_vm0, %v4139_v1  ;;  %3480 = vmatpush3.bf16.msra.mxu1 %v3737_v27 }
 0x191   :  { %v343_v35 = vrot.slane %v335_v33, %v4401_v22  ;;  %v346_v37 = vadd.f32 %v339_v34, %v4404_v29  ;;  %3481 = vmatprep.subr.bf16.mxu1 %v4139_v1  ;;  %v4458_v33 = vld [vmem:[#allocation17] ss:$0 sm:$0xff] }
 0x193   :  { %v348_v39 = vmax.f32 %v346_v37, 0.0  ;;  %v347_v40 = vadd.f32 %v343_v35, %v4409_v36  ;;  %v532_v9 = vpop.f32.mrb[4].mxu0 }
 0x194   :  { %3482 = vmatpush3.bf16.msra.mxu1 %v3738_v28  ;;  %v3477_v30 = vpop.f32.mrb[5].mxu0  ;;  %v3739_v28 = vld [vmem:[#allocation9] sm:$0xff]  }
 0x195   :  { %v356_v41 = vmul.f32 %v4412_v38, %v348_v39  ;;  %v349_v42 = vmax.f32 %v347_v40, 0.0  ;;  %3495 = vmatprep.subr.bf16.mxu1 %v4139_v1  ;;  %v535_v31 = vpop.f32.mrb[6].mxu0  ;;  %3504 = vmatpush3.bf16.msra.mxu0 %v3739_v28 }
 0x196   :  { %v3478_v32 = vpop.f32.mrb[7].mxu0  ;;  %3505 = vmatprep.subr.bf16.mxu0 %v4139_v1 }
 0x197   :  { %v358_v43 = vsel %vm203_vm1, %v356_v41, 0.0  ;;  %v357_v44 = vmul.f32 %v4412_v38, %v349_v42  ;;  %v3741_v32 = vld [vmem:[#allocation9 + $0x8] sm:$0xff]  }
 0x198   :  { %359 = vadd.xlane.f32.xlu0 %v358_v43 }
 0x199   :  { %v361_v45 = vsel %vm203_vm1, %v357_v44, 0.0  ;;  %3506 = vmatpush3.bf16.msra.mxu0 %v3741_v32 }
 0x19a   :  { %3519 = vmatprep.subr.bf16.mxu0 %v4139_v1 }
 0x19c   :  { %362 = vadd.xlane.f32.xlu0 %v361_v45 }
 0x225   :  { %v360_v48 = vpop.xlane.xlu0 %359 }
 0x226   :  { %v373_v50 = vadd.f32 %v4419_v47, %v360_v48 }
 0x228   :  { %v382_v53 = vrot.slane %v373_v50, %v4421_v49 }
 0x229   :  { %v363_v51 = vpop.xlane.xlu0 %362 }
 0x22a   :  { %v374_v52 = vadd.f32 %v4419_v47, %v363_v51 }
 0x22c   :  { %v386_v54 = vrot.slane %v374_v52, %v4421_v49 }
 0x22e   :  { %v388_v55 = vsel %vm387_vm2, %v386_v54, %v382_v53 }
 0x22f   :  { %v391_v56 = vsel %vm390_vm3, %v388_v55, -inf }
 0x230   :  { %392 = vmax.xlane.f32.xlu1 %v391_v56 }
 0x262   :  { %v662_v34 = vpop.f32.mrb[8].mxu0 }
 0x263   :  { %v663_v35 = vadd.f32 %v4458_v33, %v662_v34  ;;  %v3493_v37 = vpop.f32.mrb[9].mxu0  ;;  %v3742_v34 = vld [vmem:[%s4972_s13 + $0x8] sm:$0xff]  }
 0x264   :  { %v665_v39 = vpop.f32.mrb[10].mxu0 }
 0x265   :  { %v3494_v40 = vpop.f32.mrb[11].mxu0 }
 0x2bd   :  { %v393_v58 = vpop.xlane.xlu1 %392 }
 0x2be   :  { %v398_v59 = vrot.slane %v393_v58, %v4401_v22  ;;  %v402_v60 = vrot.slane %v393_v58, %v4429_v57 }
 0x2c0   :  { %v405_v61 = vsub.f32 %v373_v50, %v398_v59  ;;  %v406_v62 = vsub.f32 %v374_v52, %v402_v60 }
 0x2c2   :  { %v407_v63 = vmul.f32 1.442695, %v405_v61  ;;  %v409_v0 = vmul.f32 1.442695, %v406_v62 }
 0x2c4   :  { %3791 = vpow2.f32 %v407_v63 }
 0x2c5   :  { %3793 = vpow2.f32 %v409_v0 }
 0x2ce   :  { %v3792_v2 = vpop.eup %3791 }
 0x2cf   :  { %v3794_v3 = vpop.eup %3793  ;;  %414 = vperm.xlu0 %3728, %v3792_v2  }
 0x2d0   :  { %417 = vperm.xlu1 %3727, %v3794_v3  }
 0x34e   :  { %v415_v4 = vpop.permute.xlu0 %414 }
 0x34f   :  { %v418_v5 = vpop.permute.xlu1 %417  ;;  %v422_v10 = vrot.slane %v415_v4, %v4421_v49 }
 0x350   :  { %v426_v11 = vrot.slane %v418_v5, %v4421_v49 }
 0x352   :  { %v427_v12 = vsel %vm387_vm2, %v426_v11, %v422_v10 }
 0x353   :  { %v429_v13 = vsel %vm390_vm3, %v427_v12, 0.0  ;;  %v4474_v12 = vld [vmem:[#allocation14] ss:$0 sm:$0xff] }
 0x354   :  { %430 = vadd.xlane.f32.xlu0 %v429_v13 }
 0x3e1   :  { %v431_v20 = vpop.xlane.xlu0 %430 }
 0x3e2   :  { %3795 = vrcp.f32 %v431_v20 }
 0x3ec   :  { %v3796_v21 = vpop.eup %3795 }
 0x3ed   :  { %v437_v23 = vrot.slane %v3796_v21, %v4401_v22  ;;  %v441_v25 = vrot.slane %v3796_v21, %v4429_v57 }
 0x3ef   :  { %v444_v24 = vmul.f32 %v3792_v2, %v437_v23  ;;  %v445_v26 = vmul.f32 %v3794_v3, %v441_v25 }
 0x3f1   :  { %448 = vperm.xlu1 %3727, %v444_v24  }
 0x3f5   :  { %453 = vperm.xlu1 %3727, %v445_v26  }
 0x3f9   :  { %676 = vrot.lane.b32.xlu1 %v663_v35, %s4143_s6 }
 0x470   :  { %v449_v41 = vpop.permute.xlu1 %448 }
 0x471   :  { %v456_v42 = vmul.f32 %v449_v41, %v4376_v7  ;;  %v765_v46 = vrot.slane %v449_v41, %v4421_v49 }
 0x473   :  { %v458_v43 = vsel %vm203_vm1, %v456_v42, 0.0 }
 0x474   :  { %v459_v44 = vrot.slane %v458_v43, 4  ;;  %v454_v45 = vpop.permute.xlu1 %453 }
 0x475   :  { %v457_v48 = vmul.f32 %v454_v45, %v4378_v8  ;;  %v769_v50 = vrot.slane %v454_v45, %v4421_v49  ;;  %v3744_v45 = vld [vmem:[%s4968_s9 + $0x8] sm:$0xff]  }
 0x476   :  { %v460_v51 = vadd.f32 %v459_v44, %v458_v43  ;;  %v3743_v43 = vld [vmem:[%s4968_s9] sm:$0xff]  }
 0x477   :  { %v465_v52 = vsel %vm203_vm1, %v457_v48, 0.0  ;;  %v770_v53 = vsel %vm387_vm2, %v769_v50, %v765_v46  ;;  %v3745_v46 = vld [vmem:[#allocation15] sm:$0xff]   ;;  %v3746_v48 = vld [vmem:[#allocation15 + $0x8] sm:$0xff]  }
 0x478   :  { %v461_v54 = vrot.slane %v460_v51, 2  ;;  %v466_v55 = vrot.slane %v465_v52, 4  ;;  %772 = vst.msk [vmem:[#allocation19] sm:$0x3] %vm390_vm3, %v770_v53  ;;  %v677_v25 = vpop.permute.xlu1 %676  ;;  %v4519_v50 = vld [vmem:[%s4973_s14] ss:$0 sm:$0xff] }
 0x47a   :  { %v462_v56 = vadd.f32 %v461_v54, %v460_v51  ;;  %v467_v58 = vadd.f32 %v466_v55, %v465_v52 }
 0x47c   :  { %v463_v59 = vrot.slane %v462_v56, 1  ;;  %v468_v60 = vrot.slane %v467_v58, 2 }
 0x47e   :  { %v464_v61 = vadd.f32 %v463_v59, %v462_v56  ;;  %v469_v62 = vadd.f32 %v468_v60, %v467_v58 }
 0x480   :  { %v470_v63 = vrot.slane %v469_v62, 1  ;;  %v472_v0 = vpack.c.bf16 %v464_v61, %v464_v61 }
 0x482   :  { %v471_v2 = vadd.f32 %v470_v63, %v469_v62  ;;  %v540_v4 = vunpack.c.l.b16 %v472_v0 }
 0x484   :  { %v473_v3 = vpack.c.bf16 %v471_v2, %v471_v2 }
 0x486   :  { %v541_v5 = vunpack.c.l.b16 %v473_v3 }
 0x488   :  { %v542_v10 = vsel %vm387_vm2, %v541_v5, %v540_v4 }
 0x489   :  { %v543_v11 = vpack.c.b16 %v542_v10, %v542_v10 }
 0x48b   :  { %3484 = vmatmul.mubr.msk.bf16.vlgmr.msra.gmra.mrb[4].mxu1 %vm203_vm1, %v543_v11 }
 0x48c   :  { %3499 = vmatprep.mubr.msk.bf16.mxu1 %vm4140_vm0, %v4139_v1 }
 0x55e   :  { %v593_v13 = vpop.f32.mrb[4].mxu1 }
 0x55f   :  { %v594_v14 = vadd.f32 %v593_v13, %v532_v9  ;;  %v3485_v15 = vpop.f32.mrb[5].mxu1  ;;  %v3740_v9 = vld [vmem:[%s4972_s13] sm:$0xff]  }
 0x560   :  { %v596_v16 = vpop.f32.mrb[6].mxu1  ;;  %3496 = vmatpush3.bf16.msra.mxu1 %v3740_v9 }
 0x561   :  { %v605_v17 = vadd.f32 %v4474_v12, %v594_v14  ;;  %v3486_v19 = vpop.f32.mrb[7].mxu1  ;;  %3497 = vmatprep.subr.bf16.mxu1 %v4139_v1 }
 0x563   :  { %v668_v20 = vadd.f32 %v663_v35, %v605_v17 }
 0x564   :  { %3498 = vmatpush3.bf16.msra.mxu1 %v3742_v34 }
 0x565   :  { %v3271_v21 = vmul.f32 -1.442695, %v668_v20  ;;  %3511 = vmatprep.subr.bf16.mxu1 %v4139_v1 }
 0x567   :  { %3797 = vpow2.f32 %v3271_v21 }
 0x571   :  { %v3798_v23 = vpop.eup %3797 }
 0x572   :  { %v672_v24 = vadd.f32 1.0, %v3798_v23 }
 0x574   :  { %3799 = vrcp.f32 %v672_v24 }
 0x57e   :  { %v3800_v26 = vpop.eup %3799 }
 0x57f   :  { %v679_v27 = vmul.f32 %v3800_v26, %v677_v25  ;;  %v686_v37 = vsub.f32 1.0, %v3800_v26  ;;  %v692_v40 = vmul.f32 %v3800_v26, %v4374_v6  ;;  %v976_v6 = vld [vmem:[#allocation3 + $0x1] sm:$0x1] }
 0x581   :  { %681 = vrot.lane.b32.xlu1 %v679_v27, %s4144_s19 }
 0x5f3   :  { %v682_v30 = vpop.permute.xlu1 %681 }
 0x5f4   :  { %v684_v31 = vadd.f32 %v682_v30, %v605_v17 }
 0x5f6   :  { %3801 = vtanh.f32 %v684_v31 }
 0x600   :  { %v3802_v35 = vpop.eup %3801 }
 0x601   :  { %688 = vrot.lane.b32.xlu1 %v3802_v35, %s4128_s1 }
 0x673   :  { %v689_v39 = vpop.permute.xlu1 %688 }
 0x674   :  { %v691_v41 = vmul.f32 %v689_v39, %v686_v37 }
 0x676   :  { %v4490_v42 = vadd.f32 %v692_v40, %v691_v41 }
 0x678   :  { %v694_v44 = vpack.c.bf16 %v4490_v42, %v4490_v42 }
 0x67a   :  { %3500 = vmatmul.mubr.msk.bf16.vlgmr.msra.gmra.mrb[8].mxu1 %vm203_vm1, %v694_v44  ;;  %3508 = vmatmul.mubr.msk.bf16.vlgmr.msra.gmra.mrb[12].mxu0 %vm203_vm1, %v694_v44 }
 0x67b   :  { %3512 = vmatpush3.bf16.msra.mxu1 %v3743_v43  ;;  %3515 = vmatprep.mubr.msk.bf16.mxu1 %vm4140_vm0, %v4139_v1 }
 0x67c   :  { %3513 = vmatprep.subr.bf16.mxu1 %v4139_v1  ;;  %3523 = vmatprep.mubr.msk.bf16.mxu0 %vm4140_vm0, %v4139_v1 }
 0x67f   :  { %3514 = vmatpush3.bf16.msra.mxu1 %v3744_v45 }
 0x680   :  { %3527 = vmatprep.subr.bf16.mxu1 %v4139_v1 }
 0x682   :  { %3516 = vmatmul.mubr.msk.bf16.vlgmr.msra.gmra.mrb[12].mxu1 %vm203_vm1, %v976_v6 }
 0x683   :  { %3528 = vmatpush3.bf16.msra.mxu1 %v3745_v46  ;;  %3531 = vmatprep.mubr.msk.bf16.mxu1 %vm4140_vm0, %v4139_v1 }
 0x684   :  { %3529 = vmatprep.subr.bf16.mxu1 %v4139_v1 }
 0x687   :  { %3530 = vmatpush3.bf16.msra.mxu1 %v3746_v48 }
 0x688   :  { %3543 = vmatprep.subr.bf16.mxu1 %v4139_v1 }
 0x68a   :  { %3532 = vmatmul.mubr.msk.bf16.vlgmr.msra.gmra.mrb[16].mxu1 %vm203_vm1, %v694_v44 }
 0x68b   :  { %3547 = vmatprep.mubr.msk.bf16.mxu1 %vm4140_vm0, %v4139_v1 }
 0x74d   :  { %v755_v51 = vpop.f32.mrb[8].mxu1  ;;  %v823_v52 = vpop.f32.mrb[12].mxu0 }
 0x74e   :  { %v756_v53 = vadd.f32 %v4519_v50, %v755_v51  ;;  %v836_v54 = vrot.slane %v823_v52, %v4395_v18  ;;  %v3501_v55 = vpop.f32.mrb[9].mxu1  ;;  %v3509_v56 = vpop.f32.mrb[13].mxu0 }
 0x74f   :  { %v758_v58 = vpop.f32.mrb[10].mxu1  ;;  %v826_v59 = vpop.f32.mrb[14].mxu0 }
 0x750   :  { %761 = vst [vmem:[#allocation18] sm:$0x3] %v756_v53  ;;  %v837_v60 = vcombine.high %v836_v54, %v836_v54  ;;  %v844_v61 = vrot.slane %v836_v54, %v4395_v18  ;;  %v3502_v62 = vpop.f32.mrb[11].mxu1  ;;  %v3510_v63 = vpop.f32.mrb[15].mxu0 }
 0x752   :  { %v851_v0 = vrot.slane %v837_v60, %v4395_v18  ;;  %v855_v2 = vrot.slane %v844_v61, %v4401_v22 }
 0x754   :  { %v859_v3 = vrot.slane %v851_v0, %v4401_v22  ;;  %v862_v4 = vadd.f32 %v855_v2, %v4404_v29  ;;  %v3747_v0 = vld [vmem:[#allocation12] sm:$0xff]   ;;  %v3748_v2 = vld [vmem:[#allocation12 + $0x8] sm:$0xff]  }
 0x755   :  { %v4528_v5 = vpop.f32.mrb[12].mxu1  ;;  %3520 = vmatpush3.bf16.msra.mxu0 %v3747_v0 }
 0x756   :  { %v3517_v10 = vpop.f32.mrb[13].mxu1  ;;  %v864_v11 = vmax.f32 %v862_v4, 0.0  ;;  %v863_v13 = vadd.f32 %v859_v3, %v4409_v36  ;;  %3521 = vmatprep.subr.bf16.mxu0 %v4139_v1 }
 0x757   :  { %v1033_v14 = vpop.f32.mrb[14].mxu1 }
 0x758   :  { %v866_v15 = vmul.f32 %v4412_v38, %v864_v11  ;;  %v3518_v16 = vpop.f32.mrb[15].mxu1  ;;  %v865_v17 = vmax.f32 %v863_v13, 0.0 }
 0x759   :  { %3522 = vmatpush3.bf16.msra.mxu0 %v3748_v2 }
 0x75a   :  { %v868_v19 = vsel %vm203_vm1, %v866_v15, 0.0  ;;  %v867_v20 = vmul.f32 %v4412_v38, %v865_v17  ;;  %3535 = vmatprep.subr.bf16.mxu0 %v4139_v1 }
 0x75b   :  { %869 = vadd.xlane.f32.xlu1 %v868_v19 }
 0x75c   :  { %v871_v21 = vsel %vm203_vm1, %v867_v20, 0.0 }
 0x75d   :  { %v1148_v23 = vpop.f32.mrb[16].mxu1  ;;  %872 = vadd.xlane.f32.xlu0 %v871_v21 }
 0x75e   :  { %v3533_v24 = vpop.f32.mrb[17].mxu1  ;;  %v1149_v63 = vadd.f32 %v4458_v33, %v1148_v23 }
 0x75f   :  { %v1151_v25 = vpop.f32.mrb[18].mxu1 }
 0x760   :  { %v3534_v26 = vpop.f32.mrb[19].mxu1 }
 0x7e8   :  { %v870_v27 = vpop.xlane.xlu1 %869 }
 0x7e9   :  { %v874_v28 = vadd.f32 %v870_v27, %v4419_v47 }
 0x7ea   :  { %v873_v9 = vpop.xlane.xlu0 %872 }
 0x7eb   :  { %v875_v30 = vadd.f32 %v873_v9, %v4419_v47  ;;  %v881_v31 = vrot.slane %v874_v28, %v4421_v49 }
 0x7ed   :  { %v885_v32 = vrot.slane %v875_v30, %v4421_v49 }
 0x7ef   :  { %v886_v34 = vsel %vm387_vm2, %v885_v32, %v881_v31 }
 0x7f0   :  { %v888_v35 = vsel %vm390_vm3, %v886_v34, -inf }
 0x7f1   :  { %889 = vmax.xlane.f32.xlu0 %v888_v35 }
 0x87e   :  { %v890_v37 = vpop.xlane.xlu0 %889 }
 0x87f   :  { %v895_v39 = vrot.slane %v890_v37, %v4401_v22  ;;  %v899_v40 = vrot.slane %v890_v37, %v4429_v57 }
 0x881   :  { %v902_v41 = vsub.f32 %v874_v28, %v895_v39  ;;  %v903_v43 = vsub.f32 %v875_v30, %v899_v40 }
 0x883   :  { %v904_v44 = vmul.f32 1.442695, %v902_v41  ;;  %v906_v45 = vmul.f32 1.442695, %v903_v43 }
 0x885   :  { %3803 = vpow2.f32 %v904_v44 }
 0x886   :  { %3805 = vpow2.f32 %v906_v45 }
 0x88f   :  { %v3804_v6 = vpop.eup %3803 }
 0x890   :  { %911 = vperm.xlu0 %3728, %v3804_v6   ;;  %v3806_v46 = vpop.eup %3805 }
 0x894   :  { %914 = vperm.xlu0 %3728, %v3806_v46  }
 0x90f   :  { %v912_v48 = vpop.permute.xlu0 %911 }
 0x910   :  { %v919_v52 = vrot.slane %v912_v48, %v4421_v49 }
 0x913   :  { %v915_v51 = vpop.permute.xlu0 %914 }
 0x914   :  { %v923_v53 = vrot.slane %v915_v51, %v4421_v49 }
 0x916   :  { %v924_v54 = vsel %vm387_vm2, %v923_v53, %v919_v52 }
 0x917   :  { %v926_v55 = vsel %vm390_vm3, %v924_v54, 0.0 }
 0x918   :  { %927 = vadd.xlane.f32.xlu1 %v926_v55  ;;  %v3749_v55 = vld [vmem:[#allocation9] sm:$0xff]  }
 0x919   :  { %3544 = vmatpush3.bf16.msra.mxu1 %v3749_v55 }
 0x91a   :  { %3545 = vmatprep.subr.bf16.mxu1 %v4139_v1 }
 0x9a5   :  { %v928_v56 = vpop.xlane.xlu1 %927 }
 0x9a6   :  { %3807 = vrcp.f32 %v928_v56 }
 0x9b0   :  { %v3808_v58 = vpop.eup %3807 }
 0x9b1   :  { %v938_v59 = vrot.slane %v3808_v58, %v4429_v57  ;;  %v934_v60 = vrot.slane %v3808_v58, %v4401_v22 }
 0x9b3   :  { %v942_v61 = vmul.f32 %v3806_v46, %v938_v59  ;;  %v941_v62 = vmul.f32 %v3804_v6, %v934_v60  ;;  %v3751_v59 = vld [vmem:[#allocation9 + $0x8] sm:$0xff]  }
 0x9b4   :  { %v3752_v60 = vld [vmem:[%s4972_s13 + $0x8] sm:$0xff]   ;;  %3546 = vmatpush3.bf16.msra.mxu1 %v3751_v59 }
 0x9b5   :  { %950 = vperm.xlu1 %3727, %v942_v61   ;;  %945 = vperm.xlu0 %3728, %v941_v62  }
 0x9b6   :  { %3559 = vmatprep.subr.bf16.mxu1 %v4139_v1 }
 0x9b9   :  { %1162 = vrot.lane.b32.xlu0 %v1149_v63, %s4143_s6 }
 0xa34   :  { %v951_v3 = vpop.permute.xlu1 %950  ;;  %v946_v4 = vpop.permute.xlu0 %945 }
 0xa35   :  { %v954_v10 = vmul.f32 %v951_v3, %v4378_v8  ;;  %v1256_v11 = vrot.slane %v951_v3, %v4421_v49  ;;  %v953_v13 = vmul.f32 %v946_v4, %v4376_v7  ;;  %v1252_v14 = vrot.slane %v946_v4, %v4421_v49  ;;  %v3753_v4 = vld [vmem:[%s4968_s9] sm:$0xff]  }
 0xa37   :  { %v962_v15 = vsel %vm203_vm1, %v954_v10, 0.0  ;;  %v955_v16 = vsel %vm203_vm1, %v953_v13, 0.0  ;;  %v1257_v17 = vsel %vm387_vm2, %v1256_v11, %v1252_v14  ;;  %v3754_v11 = vld [vmem:[%s4968_s9 + $0x8] sm:$0xff]   ;;  %v3755_v13 = vld [vmem:[#allocation15] sm:$0xff]  }
 0xa38   :  { %v963_v19 = vrot.slane %v962_v15, 4  ;;  %v956_v20 = vrot.slane %v955_v16, 4  ;;  %1260 = vst.msk [vmem:[#allocation19 + $0x2] sm:$0x3] %vm390_vm3, %v1257_v17  ;;  %v1163_v53 = vpop.permute.xlu0 %1162  ;;  %v3756_v14 = vld [vmem:[#allocation15 + $0x8] sm:$0xff]  }
 0xa3a   :  { %v964_v21 = vadd.f32 %v963_v19, %v962_v15  ;;  %v957_v23 = vadd.f32 %v956_v20, %v955_v16 }
 0xa3c   :  { %v965_v24 = vrot.slane %v964_v21, 2  ;;  %v958_v8 = vrot.slane %v957_v23, 2 }
 0xa3e   :  { %v966_v25 = vadd.f32 %v965_v24, %v964_v21  ;;  %v959_v26 = vadd.f32 %v958_v8, %v957_v23 }
 0xa40   :  { %v967_v27 = vrot.slane %v966_v25, 1  ;;  %v960_v7 = vrot.slane %v959_v26, 1 }
 0xa42   :  { %v968_v28 = vadd.f32 %v967_v27, %v966_v25  ;;  %v961_v9 = vadd.f32 %v960_v7, %v959_v26 }
 0xa44   :  { %v970_v30 = vpack.c.bf16 %v968_v28, %v968_v28  ;;  %v969_v31 = vpack.c.bf16 %v961_v9, %v961_v9 }
 0xa46   :  { %v1039_v32 = vunpack.c.l.b16 %v970_v30  ;;  %v1038_v34 = vunpack.c.l.b16 %v969_v31 }
 0xa48   :  { %v1040_v35 = vsel %vm387_vm2, %v1039_v32, %v1038_v34 }
 0xa49   :  { %v1041_v37 = vpack.c.b16 %v1040_v35, %v1040_v35 }
 0xa4b   :  { %3524 = vmatmul.mubr.msk.bf16.vlgmr.msra.gmra.mrb[16].mxu0 %vm203_vm1, %v1041_v37 }
 0xa4c   :  { %3539 = vmatprep.mubr.msk.bf16.mxu0 %vm4140_vm0, %v4139_v1 }
 0xb1e   :  { %v1091_v39 = vpop.f32.mrb[16].mxu0 }
 0xb1f   :  { %v1092_v40 = vadd.f32 %v1091_v39, %v4528_v5  ;;  %v3525_v41 = vpop.f32.mrb[17].mxu0  ;;  %v3750_v5 = vld [vmem:[%s4972_s13] sm:$0xff]  }
 0xb20   :  { %v1094_v43 = vpop.f32.mrb[18].mxu0  ;;  %3536 = vmatpush3.bf16.msra.mxu0 %v3750_v5 }
 0xb21   :  { %v1097_v44 = vadd.f32 %v4474_v12, %v1092_v40  ;;  %v3526_v45 = vpop.f32.mrb[19].mxu0  ;;  %3537 = vmatprep.subr.bf16.mxu0 %v4139_v1 }
 0xb23   :  { %v1154_v6 = vadd.f32 %v1149_v63, %v1097_v44 }
 0xb24   :  { %3538 = vmatpush3.bf16.msra.mxu0 %v3752_v60 }
 0xb25   :  { %v3288_v46 = vmul.f32 -1.442695, %v1154_v6  ;;  %3551 = vmatprep.subr.bf16.mxu0 %v4139_v1 }
 0xb27   :  { %3809 = vpow2.f32 %v3288_v46 }
 0xb31   :  { %v3810_v48 = vpop.eup %3809 }
 0xb32   :  { %v1158_v51 = vadd.f32 1.0, %v3810_v48 }
 0xb34   :  { %3811 = vrcp.f32 %v1158_v51 }
 0xb3e   :  { %v3812_v52 = vpop.eup %3811 }
 0xb3f   :  { %v1165_v54 = vmul.f32 %v3812_v52, %v1163_v53  ;;  %v1172_v62 = vsub.f32 1.0, %v3812_v52  ;;  %v1178_v0 = vmul.f32 %v3812_v52, %v4490_v42  ;;  %v1464_v42 = vld [vmem:[#allocation3 + $0x2] sm:$0x1] }
 0xb41   :  { %1167 = vrot.lane.b32.xlu0 %v1165_v54, %s4144_s19 }
 0xbb3   :  { %v1168_v56 = vpop.permute.xlu0 %1167 }
 0xbb4   :  { %v1170_v58 = vadd.f32 %v1168_v56, %v1097_v44 }
 0xbb6   :  { %3813 = vtanh.f32 %v1170_v58 }
 0xbc0   :  { %v3814_v61 = vpop.eup %3813 }
 0xbc1   :  { %1174 = vrot.lane.b32.xlu0 %v3814_v61, %s4128_s1 }
 0xc33   :  { %v1175_v63 = vpop.permute.xlu0 %1174 }
 0xc34   :  { %v1177_v2 = vmul.f32 %v1175_v63, %v1172_v62 }
 0xc36   :  { %v4580_v3 = vadd.f32 %v1178_v0, %v1177_v2 }
 0xc38   :  { %v1180_v10 = vpack.c.bf16 %v4580_v3, %v4580_v3 }
 0xc3a   :  { %3540 = vmatmul.mubr.msk.bf16.vlgmr.msra.gmra.mrb[20].mxu0 %vm203_vm1, %v1180_v10  ;;  %3548 = vmatmul.mubr.msk.bf16.vlgmr.msra.gmra.mrb[20].mxu1 %vm203_vm1, %v1180_v10 }
 0xc3b   :  { %3552 = vmatpush3.bf16.msra.mxu0 %v3753_v4  ;;  %3555 = vmatprep.mubr.msk.bf16.mxu0 %vm4140_vm0, %v4139_v1 }
 0xc3c   :  { %3553 = vmatprep.subr.bf16.mxu0 %v4139_v1  ;;  %3563 = vmatprep.mubr.msk.bf16.mxu1 %vm4140_vm0, %v4139_v1 }
 0xc3f   :  { %3554 = vmatpush3.bf16.msra.mxu0 %v3754_v11 }
 0xc40   :  { %3567 = vmatprep.subr.bf16.mxu0 %v4139_v1 }
 0xc42   :  { %3556 = vmatmul.mubr.msk.bf16.vlgmr.msra.gmra.mrb[24].mxu0 %vm203_vm1, %v1464_v42 }
 0xc43   :  { %3568 = vmatpush3.bf16.msra.mxu0 %v3755_v13  ;;  %3571 = vmatprep.mubr.msk.bf16.mxu0 %vm4140_vm0, %v4139_v1 }
 0xc44   :  { %3569 = vmatprep.subr.bf16.mxu0 %v4139_v1 }
 0xc47   :  { %3570 = vmatpush3.bf16.msra.mxu0 %v3756_v14 }
 0xc48   :  { %3583 = vmatprep.subr.bf16.mxu0 %v4139_v1 }
 0xc4a   :  { %3572 = vmatmul.mubr.msk.bf16.vlgmr.msra.gmra.mrb[28].mxu0 %vm203_vm1, %v1180_v10 }
 0xc4b   :  { %3587 = vmatprep.mubr.msk.bf16.mxu0 %vm4140_vm0, %v4139_v1 }
 0xd0d   :  { %v1241_v15 = vpop.f32.mrb[20].mxu0  ;;  %v1311_v16 = vpop.f32.mrb[20].mxu1 }
 0xd0e   :  { %v1242_v17 = vadd.f32 %v4519_v50, %v1241_v15  ;;  %v1324_v19 = vrot.slane %v1311_v16, %v4395_v18  ;;  %v3541_v20 = vpop.f32.mrb[21].mxu0  ;;  %v3549_v21 = vpop.f32.mrb[21].mxu1 }
 0xd0f   :  { %v1244_v23 = vpop.f32.mrb[22].mxu0  ;;  %v1314_v24 = vpop.f32.mrb[22].mxu1 }
 0xd10   :  { %1248 = vst [vmem:[#allocation18 + $0x2] sm:$0x3] %v1242_v17  ;;  %v1325_v8 = vcombine.high %v1324_v19, %v1324_v19  ;;  %v1332_v25 = vrot.slane %v1324_v19, %v4395_v18  ;;  %v3542_v26 = vpop.f32.mrb[23].mxu0  ;;  %v3550_v27 = vpop.f32.mrb[23].mxu1 }
 0xd11   :  { %v3758_v26 = vld [vmem:[#allocation12 + $0x8] sm:$0xff]  }
 0xd12   :  { %v1339_v7 = vrot.slane %v1325_v8, %v4395_v18  ;;  %v1343_v28 = vrot.slane %v1332_v25, %v4401_v22  ;;  %v3757_v25 = vld [vmem:[#allocation12] sm:$0xff]  }
 0xd13   :  { %3560 = vmatpush3.bf16.msra.mxu1 %v3757_v25 }
 0xd14   :  { %v1347_v9 = vrot.slane %v1339_v7, %v4401_v22  ;;  %v1350_v30 = vadd.f32 %v1343_v28, %v4404_v29  ;;  %3561 = vmatprep.subr.bf16.mxu1 %v4139_v1  ;;  %v4638_v7 = vld [vmem:[#allocation6] sm:$0xff] }
 0xd15   :  { %v4613_v31 = vpop.f32.mrb[24].mxu0 }
 0xd16   :  { %v3557_v32 = vpop.f32.mrb[25].mxu0  ;;  %v1352_v34 = vmax.f32 %v1350_v30, 0.0  ;;  %v1351_v35 = vadd.f32 %v1347_v9, %v4409_v36 }
 0xd17   :  { %v1521_v37 = vpop.f32.mrb[26].mxu0  ;;  %3562 = vmatpush3.bf16.msra.mxu1 %v3758_v26 }
 0xd18   :  { %v1354_v39 = vmul.f32 %v4412_v38, %v1352_v34  ;;  %v3558_v40 = vpop.f32.mrb[27].mxu0  ;;  %v1353_v41 = vmax.f32 %v1351_v35, 0.0  ;;  %3575 = vmatprep.subr.bf16.mxu1 %v4139_v1  ;;  %v4643_v34 = vld [vmem:[#allocation6 + $0x8] sm:$0xff] }
 0xd1a   :  { %v1356_v43 = vsel %vm203_vm1, %v1354_v39, 0.0  ;;  %v1355_v44 = vmul.f32 %v4412_v38, %v1353_v41 }
 0xd1b   :  { %1357 = vadd.xlane.f32.xlu0 %v1356_v43 }
 0xd1c   :  { %v1359_v45 = vsel %vm203_vm1, %v1355_v44, 0.0 }
 0xd1d   :  { %1360 = vadd.xlane.f32.xlu1 %v1359_v45  ;;  %v1636_v6 = vpop.f32.mrb[28].mxu0 }
 0xd1e   :  { %v3573_v46 = vpop.f32.mrb[29].mxu0  ;;  %v1637_v8 = vadd.f32 %v4458_v33, %v1636_v6 }
 0xd1f   :  { %v1639_v48 = vpop.f32.mrb[30].mxu0 }
 0xd20   :  { %v3574_v51 = vpop.f32.mrb[31].mxu0 }
 0xda8   :  { %v1358_v52 = vpop.xlane.xlu0 %1357 }
 0xda9   :  { %v1362_v53 = vadd.f32 %v1358_v52, %v4419_v47 }
 0xdaa   :  { %v1361_v54 = vpop.xlane.xlu1 %1360 }
 0xdab   :  { %v1363_v55 = vadd.f32 %v1361_v54, %v4419_v47  ;;  %v1369_v5 = vrot.slane %v1362_v53, %v4421_v49 }
 0xdad   :  { %v1373_v56 = vrot.slane %v1363_v55, %v4421_v49 }
 0xdaf   :  { %v1374_v38 = vsel %vm387_vm2, %v1373_v56, %v1369_v5 }
 0xdb0   :  { %v1376_v58 = vsel %vm390_vm3, %v1374_v38, -inf }
 0xdb1   :  { %1377 = vmax.xlane.f32.xlu0 %v1376_v58 }
 0xe3e   :  { %v1378_v59 = vpop.xlane.xlu0 %1377 }
 0xe3f   :  { %v1383_v60 = vrot.slane %v1378_v59, %v4401_v22  ;;  %v1387_v61 = vrot.slane %v1378_v59, %v4429_v57 }
 0xe41   :  { %v1390_v62 = vsub.f32 %v1362_v53, %v1383_v60  ;;  %v1391_v63 = vsub.f32 %v1363_v55, %v1387_v61 }
 0xe43   :  { %v1392_v0 = vmul.f32 1.442695, %v1390_v62  ;;  %v1394_v2 = vmul.f32 1.442695, %v1391_v63 }
 0xe45   :  { %3815 = vpow2.f32 %v1392_v0 }
 0xe46   :  { %3817 = vpow2.f32 %v1394_v2 }
 0xe4f   :  { %v3816_v4 = vpop.eup %3815 }
 0xe50   :  { %v3818_v10 = vpop.eup %3817  ;;  %1399 = vperm.xlu0 %3728, %v3816_v4  }
 0xe51   :  { %1402 = vperm.xlu1 %3727, %v3818_v10  }
 0xecf   :  { %v1400_v11 = vpop.permute.xlu0 %1399 }
 0xed0   :  { %v1403_v42 = vpop.permute.xlu1 %1402  ;;  %v1407_v13 = vrot.slane %v1400_v11, %v4421_v49 }
 0xed1   :  { %v1411_v14 = vrot.slane %v1403_v42, %v4421_v49 }
 0xed3   :  { %v1412_v15 = vsel %vm387_vm2, %v1411_v14, %v1407_v13 }
 0xed4   :  { %v1414_v16 = vsel %vm390_vm3, %v1412_v15, 0.0 }
 0xed5   :  { %1415 = vadd.xlane.f32.xlu1 %v1414_v16  ;;  %v3759_v16 = vld [vmem:[#allocation9] sm:$0xff]  }
 0xed6   :  { %3584 = vmatpush3.bf16.msra.mxu0 %v3759_v16 }
 0xed7   :  { %3585 = vmatprep.subr.bf16.mxu0 %v4139_v1 }
 0xf62   :  { %v1416_v17 = vpop.xlane.xlu1 %1415 }
 0xf63   :  { %3819 = vrcp.f32 %v1416_v17 }
 0xf6d   :  { %v3820_v19 = vpop.eup %3819 }
 0xf6e   :  { %v1422_v20 = vrot.slane %v3820_v19, %v4401_v22  ;;  %v1426_v23 = vrot.slane %v3820_v19, %v4429_v57  ;;  %v3761_v19 = vld [vmem:[#allocation9 + $0x8] sm:$0xff]  }
 0xf6f   :  { %3586 = vmatpush3.bf16.msra.mxu0 %v3761_v19 }
 0xf70   :  { %v1429_v21 = vmul.f32 %v3816_v4, %v1422_v20  ;;  %v1430_v24 = vmul.f32 %v3818_v10, %v1426_v23  ;;  %v3762_v20 = vld [vmem:[%s4972_s13 + $0x8] sm:$0xff]   ;;  %3599 = vmatprep.subr.bf16.mxu0 %v4139_v1 }
 0xf72   :  { %1433 = vperm.xlu0 %3728, %v1429_v21  }
 0xf76   :  { %1438 = vperm.xlu0 %3728, %v1430_v24  }
 0xf7a   :  { %1650 = vrot.lane.b32.xlu0 %v1637_v8, %s4143_s6 }
 0xff1   :  { %v1434_v27 = vpop.permute.xlu0 %1433 }
 0xff2   :  { %v1441_v28 = vmul.f32 %v4638_v7, %v1434_v27  ;;  %v1740_v33 = vrot.slane %v1434_v27, %v4421_v49  ;;  %v3763_v27 = vld [vmem:[%s4968_s9] sm:$0xff]  }
 0xff4   :  { %v1443_v9 = vsel %vm203_vm1, %v1441_v28, 0.0 }
 0xff5   :  { %v1444_v30 = vrot.slane %v1443_v9, 4  ;;  %v1439_v32 = vpop.permute.xlu0 %1438 }
 0xff6   :  { %v1442_v35 = vmul.f32 %v4643_v34, %v1439_v32  ;;  %v1744_v37 = vrot.slane %v1439_v32, %v4421_v49  ;;  %v3766_v32 = vld [vmem:[#allocation15 + $0x8] sm:$0xff]  }
 0xff7   :  { %v1445_v39 = vadd.f32 %v1444_v30, %v1443_v9  ;;  %v3764_v9 = vld [vmem:[%s4968_s9 + $0x8] sm:$0xff]   ;;  %v3765_v30 = vld [vmem:[#allocation15] sm:$0xff]  }
 0xff8   :  { %v1450_v40 = vsel %vm203_vm1, %v1442_v35, 0.0  ;;  %v1745_v41 = vsel %vm387_vm2, %v1744_v37, %v1740_v33 }
 0xff9   :  { %v1446_v43 = vrot.slane %v1445_v39, 2  ;;  %v1451_v44 = vrot.slane %v1450_v40, 4  ;;  %1748 = vst.msk [vmem:[#allocation19 + $0x4] sm:$0x3] %vm390_vm3, %v1745_v41  ;;  %v1651_v14 = vpop.permute.xlu0 %1650 }
 0xffb   :  { %v1447_v45 = vadd.f32 %v1446_v43, %v1445_v39  ;;  %v1452_v6 = vadd.f32 %v1451_v44, %v1450_v40 }
 0xffd   :  { %v1448_v46 = vrot.slane %v1447_v45, 1  ;;  %v1453_v48 = vrot.slane %v1452_v6, 2 }
 0xfff   :  { %v1449_v51 = vadd.f32 %v1448_v46, %v1447_v45  ;;  %v1454_v52 = vadd.f32 %v1453_v48, %v1452_v6 }
0x1001   :  { %v1455_v53 = vrot.slane %v1454_v52, 1  ;;  %v1457_v54 = vpack.c.bf16 %v1449_v51, %v1449_v51 }
0x1003   :  { %v1456_v55 = vadd.f32 %v1455_v53, %v1454_v52  ;;  %v1526_v56 = vunpack.c.l.b16 %v1457_v54 }
0x1005   :  { %v1458_v5 = vpack.c.bf16 %v1456_v55, %v1456_v55 }
0x1007   :  { %v1527_v38 = vunpack.c.l.b16 %v1458_v5 }
0x1009   :  { %v1528_v58 = vsel %vm387_vm2, %v1527_v38, %v1526_v56 }
0x100a   :  { %v1529_v59 = vpack.c.b16 %v1528_v58, %v1528_v58  ;;  %v4705_v58 = vld [vmem:[#allocation11] ss:$0 sm:$0xff] }
0x100c   :  { %3564 = vmatmul.mubr.msk.bf16.vlgmr.msra.gmra.mrb[24].mxu1 %vm203_vm1, %v1529_v59 }
0x100d   :  { %3579 = vmatprep.mubr.msk.bf16.mxu1 %vm4140_vm0, %v4139_v1 }
0x10df   :  { %v1579_v60 = vpop.f32.mrb[24].mxu1 }
0x10e0   :  { %v1580_v61 = vadd.f32 %v1579_v60, %v4613_v31  ;;  %v3565_v62 = vpop.f32.mrb[25].mxu1  ;;  %v3760_v31 = vld [vmem:[%s4972_s13] sm:$0xff]  }
0x10e1   :  { %v1582_v63 = vpop.f32.mrb[26].mxu1  ;;  %3576 = vmatpush3.bf16.msra.mxu1 %v3760_v31 }
0x10e2   :  { %v1585_v0 = vadd.f32 %v4474_v12, %v1580_v61  ;;  %v3566_v2 = vpop.f32.mrb[27].mxu1  ;;  %3577 = vmatprep.subr.bf16.mxu1 %v4139_v1 }
0x10e4   :  { %v1642_v4 = vadd.f32 %v1637_v8, %v1585_v0 }
0x10e5   :  { %3578 = vmatpush3.bf16.msra.mxu1 %v3762_v20 }
0x10e6   :  { %v3305_v10 = vmul.f32 -1.442695, %v1642_v4  ;;  %3591 = vmatprep.subr.bf16.mxu1 %v4139_v1 }
0x10e8   :  { %3821 = vpow2.f32 %v3305_v10 }
0x10f2   :  { %v3822_v11 = vpop.eup %3821 }
0x10f3   :  { %v1646_v42 = vadd.f32 1.0, %v3822_v11 }
0x10f5   :  { %3823 = vrcp.f32 %v1646_v42 }
0x10ff   :  { %v3824_v13 = vpop.eup %3823 }
0x1100   :  { %v1653_v15 = vmul.f32 %v3824_v13, %v1651_v14  ;;  %v1660_v23 = vsub.f32 1.0, %v3824_v13  ;;  %v1666_v8 = vmul.f32 %v3824_v13, %v4580_v3  ;;  %v1952_v3 = vld [vmem:[#allocation3 + $0x3] sm:$0x1] }
0x1102   :  { %1655 = vrot.lane.b32.xlu0 %v1653_v15, %s4144_s19 }
0x1174   :  { %v1656_v12 = vpop.permute.xlu0 %1655 }
0x1175   :  { %v1658_v17 = vadd.f32 %v1656_v12, %v1585_v0 }
0x1177   :  { %3825 = vtanh.f32 %v1658_v17 }
0x1181   :  { %v3826_v21 = vpop.eup %3825 }
0x1182   :  { %1662 = vrot.lane.b32.xlu0 %v3826_v21, %s4128_s1 }
0x11f4   :  { %v1663_v24 = vpop.permute.xlu0 %1662 }
0x11f5   :  { %v1665_v25 = vmul.f32 %v1663_v24, %v1660_v23 }
0x11f7   :  { %v4669_v26 = vadd.f32 %v1666_v8, %v1665_v25 }
0x11f9   :  { %v1668_v28 = vpack.c.bf16 %v4669_v26, %v4669_v26 }
0x11fb   :  { %3580 = vmatmul.mubr.msk.bf16.vlgmr.msra.gmra.mrb[28].mxu1 %vm203_vm1, %v1668_v28  ;;  %3588 = vmatmul.mubr.msk.bf16.vlgmr.msra.gmra.mrb[32].mxu0 %vm203_vm1, %v1668_v28 }
0x11fc   :  { %3592 = vmatpush3.bf16.msra.mxu1 %v3763_v27  ;;  %3595 = vmatprep.mubr.msk.bf16.mxu1 %vm4140_vm0, %v4139_v1 }
0x11fd   :  { %3593 = vmatprep.subr.bf16.mxu1 %v4139_v1  ;;  %3603 = vmatprep.mubr.msk.bf16.mxu0 %vm4140_vm0, %v4139_v1 }
0x1200   :  { %3594 = vmatpush3.bf16.msra.mxu1 %v3764_v9 }
0x1201   :  { %3607 = vmatprep.subr.bf16.mxu1 %v4139_v1 }
0x1203   :  { %3596 = vmatmul.mubr.msk.bf16.vlgmr.msra.gmra.mrb[32].mxu1 %vm203_vm1, %v1952_v3 }
0x1204   :  { %3608 = vmatpush3.bf16.msra.mxu1 %v3765_v30  ;;  %3611 = vmatprep.mubr.msk.bf16.mxu1 %vm4140_vm0, %v4139_v1 }
0x1205   :  { %3609 = vmatprep.subr.bf16.mxu1 %v4139_v1 }
0x1208   :  { %3610 = vmatpush3.bf16.msra.mxu1 %v3766_v32 }
0x1209   :  { %3623 = vmatprep.subr.bf16.mxu1 %v4139_v1 }
0x120b   :  { %3612 = vmatmul.mubr.msk.bf16.vlgmr.msra.gmra.mrb[36].mxu1 %vm203_vm1, %v1668_v28 }
0x120c   :  { %3627 = vmatprep.mubr.msk.bf16.mxu1 %vm4140_vm0, %v4139_v1 }
0x12ce   :  { %v1729_v33 = vpop.f32.mrb[28].mxu1  ;;  %v1799_v35 = vpop.f32.mrb[32].mxu0 }
0x12cf   :  { %v1730_v37 = vadd.f32 %v4519_v50, %v1729_v33  ;;  %v1812_v39 = vrot.slane %v1799_v35, %v4395_v18  ;;  %v3581_v40 = vpop.f32.mrb[29].mxu1  ;;  %v3589_v41 = vpop.f32.mrb[33].mxu0 }
0x12d0   :  { %v1732_v43 = vpop.f32.mrb[30].mxu1  ;;  %v1802_v44 = vpop.f32.mrb[34].mxu0 }
0x12d1   :  { %1736 = vst [vmem:[#allocation18 + $0x4] sm:$0x3] %v1730_v37  ;;  %v1813_v45 = vcombine.high %v1812_v39, %v1812_v39  ;;  %v1820_v6 = vrot.slane %v1812_v39, %v4395_v18  ;;  %v3582_v46 = vpop.f32.mrb[31].mxu1  ;;  %v3590_v48 = vpop.f32.mrb[35].mxu0 }
0x12d2   :  { %v3767_v46 = vld [vmem:[#allocation12] sm:$0xff]   ;;  %v3768_v48 = vld [vmem:[#allocation12 + $0x8] sm:$0xff]  }
0x12d3   :  { %v1827_v51 = vrot.slane %v1813_v45, %v4395_v18  ;;  %v1831_v52 = vrot.slane %v1820_v6, %v4401_v22  ;;  %v4725_v45 = vld [vmem:[#allocation17] ss:$0 sm:$0xff]  ;;  %3600 = vmatpush3.bf16.msra.mxu0 %v3767_v46 }
0x12d4   :  { %3601 = vmatprep.subr.bf16.mxu0 %v4139_v1 }
0x12d5   :  { %v1835_v53 = vrot.slane %v1827_v51, %v4401_v22  ;;  %v1838_v50 = vadd.f32 %v1831_v52, %v4404_v29 }
0x12d6   :  { %v4702_v54 = vpop.f32.mrb[32].mxu1 }
0x12d7   :  { %v3597_v55 = vpop.f32.mrb[33].mxu1  ;;  %v1840_v5 = vmax.f32 %v1838_v50, 0.0  ;;  %v1839_v56 = vadd.f32 %v1835_v53, %v4409_v36  ;;  %3602 = vmatpush3.bf16.msra.mxu0 %v3768_v48 }
0x12d8   :  { %v2009_v38 = vpop.f32.mrb[34].mxu1  ;;  %3615 = vmatprep.subr.bf16.mxu0 %v4139_v1 }
0x12d9   :  { %v1842_v59 = vmul.f32 %v4705_v58, %v1840_v5  ;;  %v3598_v60 = vpop.f32.mrb[35].mxu1  ;;  %v1841_v61 = vmax.f32 %v1839_v56, 0.0 }
0x12db   :  { %v1844_v62 = vsel %vm203_vm1, %v1842_v59, 0.0  ;;  %v1843_v63 = vmul.f32 %v4705_v58, %v1841_v61 }
0x12dc   :  { %1845 = vadd.xlane.f32.xlu0 %v1844_v62 }
0x12dd   :  { %v1847_v0 = vsel %vm203_vm1, %v1843_v63, 0.0 }
0x12de   :  { %v2124_v2 = vpop.f32.mrb[36].mxu1  ;;  %1848 = vadd.xlane.f32.xlu1 %v1847_v0 }
0x12df   :  { %v3613_v4 = vpop.f32.mrb[37].mxu1  ;;  %v2125_v6 = vadd.f32 %v4725_v45, %v2124_v2 }
0x12e0   :  { %v2127_v10 = vpop.f32.mrb[38].mxu1 }
0x12e1   :  { %v3614_v11 = vpop.f32.mrb[39].mxu1 }
0x1369   :  { %v1846_v42 = vpop.xlane.xlu0 %1845 }
0x136a   :  { %v1850_v13 = vadd.f32 %v1846_v42, %v4419_v47 }
0x136b   :  { %v1849_v14 = vpop.xlane.xlu1 %1848 }
0x136c   :  { %v1851_v15 = vadd.f32 %v1849_v14, %v4419_v47  ;;  %v1857_v16 = vrot.slane %v1850_v13, %v4421_v49 }
0x136e   :  { %v1861_v31 = vrot.slane %v1851_v15, %v4421_v49 }
0x1370   :  { %v1862_v12 = vsel %vm387_vm2, %v1861_v31, %v1857_v16 }
0x1371   :  { %v1864_v17 = vsel %vm390_vm3, %v1862_v12, -inf }
0x1372   :  { %1865 = vmax.xlane.f32.xlu1 %v1864_v17 }
0x13ff   :  { %v1866_v19 = vpop.xlane.xlu1 %1865 }
0x1400   :  { %v1871_v20 = vrot.slane %v1866_v19, %v4401_v22  ;;  %v1875_v21 = vrot.slane %v1866_v19, %v4429_v57 }
0x1402   :  { %v1878_v23 = vsub.f32 %v1850_v13, %v1871_v20  ;;  %v1879_v24 = vsub.f32 %v1851_v15, %v1875_v21 }
0x1404   :  { %v1880_v8 = vmul.f32 1.442695, %v1878_v23  ;;  %v1882_v25 = vmul.f32 1.442695, %v1879_v24 }
0x1406   :  { %3827 = vpow2.f32 %v1880_v8  ;;  %v4744_v8 = vld [vmem:[#allocation14] ss:$0 sm:$0xff] }
0x1407   :  { %3829 = vpow2.f32 %v1882_v25 }
0x1410   :  { %v3828_v27 = vpop.eup %3827 }
0x1411   :  { %v3830_v28 = vpop.eup %3829  ;;  %1887 = vperm.xlu1 %3727, %v3828_v27  }
0x1412   :  { %1890 = vperm.xlu0 %3728, %v3830_v28  }
0x1490   :  { %v1888_v9 = vpop.permute.xlu1 %1887 }
0x1491   :  { %v1891_v3 = vpop.permute.xlu0 %1890  ;;  %v1895_v30 = vrot.slane %v1888_v9, %v4421_v49 }
0x1492   :  { %v1899_v32 = vrot.slane %v1891_v3, %v4421_v49 }
0x1494   :  { %v1900_v33 = vsel %vm387_vm2, %v1899_v32, %v1895_v30 }
0x1495   :  { %v1902_v35 = vsel %vm390_vm3, %v1900_v33, 0.0 }
0x1496   :  { %1903 = vadd.xlane.f32.xlu1 %v1902_v35 }
0x1523   :  { %v1904_v37 = vpop.xlane.xlu1 %1903 }
0x1524   :  { %3831 = vrcp.f32 %v1904_v37  ;;  %v3769_v37 = vld [vmem:[#allocation9] sm:$0xff]  }
0x1525   :  { %3624 = vmatpush3.bf16.msra.mxu1 %v3769_v37 }
0x1526   :  { %3625 = vmatprep.subr.bf16.mxu1 %v4139_v1 }
0x152e   :  { %v3832_v39 = vpop.eup %3831 }
0x152f   :  { %v1910_v40 = vrot.slane %v3832_v39, %v4401_v22  ;;  %v1914_v43 = vrot.slane %v3832_v39, %v4429_v57 }
0x1531   :  { %v1917_v41 = vmul.f32 %v3828_v27, %v1910_v40  ;;  %v1918_v44 = vmul.f32 %v3830_v28, %v1914_v43  ;;  %v3772_v43 = vld [vmem:[%s4972_s13 + $0x8] sm:$0xff]  }
0x1533   :  { %1921 = vperm.xlu0 %3728, %v1917_v41   ;;  %v3771_v41 = vld [vmem:[#allocation9 + $0x8] sm:$0xff]  }
0x1534   :  { %3626 = vmatpush3.bf16.msra.mxu1 %v3771_v41 }
0x1535   :  { %3639 = vmatprep.subr.bf16.mxu1 %v4139_v1 }
0x1537   :  { %1926 = vperm.xlu0 %3728, %v1918_v44  }
0x153b   :  { %2138 = vrot.lane.b32.xlu0 %v2125_v6, %s4143_s6 }
0x15b2   :  { %v1922_v51 = vpop.permute.xlu0 %1921 }
0x15b3   :  { %v1929_v52 = vmul.f32 %v4638_v7, %v1922_v51  ;;  %v2228_v5 = vrot.slane %v1922_v51, %v4421_v49 }
0x15b5   :  { %v1931_v53 = vsel %vm203_vm1, %v1929_v52, 0.0 }
0x15b6   :  { %v1932_v50 = vrot.slane %v1931_v53, 4  ;;  %v1927_v55 = vpop.permute.xlu0 %1926 }
0x15b7   :  { %v1930_v56 = vmul.f32 %v4643_v34, %v1927_v55  ;;  %v2232_v38 = vrot.slane %v1927_v55, %v4421_v49  ;;  %v3774_v55 = vld [vmem:[%s4968_s9 + $0x8] sm:$0xff]  }
0x15b8   :  { %v1933_v59 = vadd.f32 %v1932_v50, %v1931_v53  ;;  %v3773_v53 = vld [vmem:[%s4968_s9] sm:$0xff]  }
0x15b9   :  { %v1938_v60 = vsel %vm203_vm1, %v1930_v56, 0.0  ;;  %v2233_v61 = vsel %vm387_vm2, %v2232_v38, %v2228_v5  ;;  %v3775_v5 = vld [vmem:[#allocation15] sm:$0xff]   ;;  %v3776_v56 = vld [vmem:[#allocation15 + $0x8] sm:$0xff]  }
0x15ba   :  { %v1934_v62 = vrot.slane %v1933_v59, 2  ;;  %v1939_v63 = vrot.slane %v1938_v60, 4  ;;  %2236 = vst.msk [vmem:[#allocation19 + $0x6] sm:$0x3] %vm390_vm3, %v2233_v61  ;;  %v2139_v33 = vpop.permute.xlu0 %2138  ;;  %v4789_v38 = vld [vmem:[%s4973_s14] ss:$0 sm:$0xff] }
0x15bc   :  { %v1935_v0 = vadd.f32 %v1934_v62, %v1933_v59  ;;  %v1940_v2 = vadd.f32 %v1939_v63, %v1938_v60 }
0x15be   :  { %v1936_v4 = vrot.slane %v1935_v0, 1  ;;  %v1941_v10 = vrot.slane %v1940_v2, 2 }
0x15c0   :  { %v1937_v11 = vadd.f32 %v1936_v4, %v1935_v0  ;;  %v1942_v42 = vadd.f32 %v1941_v10, %v1940_v2 }
0x15c2   :  { %v1943_v13 = vrot.slane %v1942_v42, 1  ;;  %v1945_v14 = vpack.c.bf16 %v1937_v11, %v1937_v11 }
0x15c4   :  { %v1944_v15 = vadd.f32 %v1943_v13, %v1942_v42  ;;  %v2014_v31 = vunpack.c.l.b16 %v1945_v14 }
0x15c6   :  { %v1946_v16 = vpack.c.bf16 %v1944_v15, %v1944_v15 }
0x15c8   :  { %v2015_v12 = vunpack.c.l.b16 %v1946_v16 }
0x15ca   :  { %v2016_v17 = vsel %vm387_vm2, %v2015_v12, %v2014_v31 }
0x15cb   :  { %v2017_v19 = vpack.c.b16 %v2016_v17, %v2016_v17 }
0x15cd   :  { %3604 = vmatmul.mubr.msk.bf16.vlgmr.msra.gmra.mrb[36].mxu0 %vm203_vm1, %v2017_v19 }
0x15ce   :  { %3619 = vmatprep.mubr.msk.bf16.mxu0 %vm4140_vm0, %v4139_v1 }
0x16a0   :  { %v2067_v20 = vpop.f32.mrb[36].mxu0 }
0x16a1   :  { %v2068_v21 = vadd.f32 %v2067_v20, %v4702_v54  ;;  %v3605_v23 = vpop.f32.mrb[37].mxu0  ;;  %v3770_v54 = vld [vmem:[%s4972_s13] sm:$0xff]  }
0x16a2   :  { %v2070_v24 = vpop.f32.mrb[38].mxu0  ;;  %3616 = vmatpush3.bf16.msra.mxu0 %v3770_v54 }
0x16a3   :  { %v2073_v25 = vadd.f32 %v4744_v8, %v2068_v21  ;;  %v3606_v27 = vpop.f32.mrb[39].mxu0  ;;  %3617 = vmatprep.subr.bf16.mxu0 %v4139_v1 }
0x16a5   :  { %v2130_v28 = vadd.f32 %v2125_v6, %v2073_v25 }
0x16a6   :  { %3618 = vmatpush3.bf16.msra.mxu0 %v3772_v43 }
0x16a7   :  { %v3322_v9 = vmul.f32 -1.442695, %v2130_v28  ;;  %3631 = vmatprep.subr.bf16.mxu0 %v4139_v1 }
0x16a9   :  { %3833 = vpow2.f32 %v3322_v9 }
0x16b3   :  { %v3834_v3 = vpop.eup %3833 }
0x16b4   :  { %v2134_v30 = vadd.f32 1.0, %v3834_v3 }
0x16b6   :  { %3835 = vrcp.f32 %v2134_v30 }
0x16c0   :  { %v3836_v32 = vpop.eup %3835 }
0x16c1   :  { %v2141_v35 = vmul.f32 %v3836_v32, %v2139_v33  ;;  %v2148_v6 = vsub.f32 1.0, %v3836_v32  ;;  %v2154_v48 = vmul.f32 %v3836_v32, %v4669_v26  ;;  %v2440_v26 = vld [vmem:[#allocation3 + $0x4] sm:$0x1] }
0x16c3   :  { %2143 = vrot.lane.b32.xlu0 %v2141_v35, %s4144_s19 }
0x1735   :  { %v2144_v39 = vpop.permute.xlu0 %2143 }
0x1736   :  { %v2146_v40 = vadd.f32 %v2144_v39, %v2073_v25 }
0x1738   :  { %3837 = vtanh.f32 %v2146_v40 }
0x1742   :  { %v3838_v44 = vpop.eup %3837 }
0x1743   :  { %2150 = vrot.lane.b32.xlu0 %v3838_v44, %s4128_s1 }
0x17b5   :  { %v2151_v46 = vpop.permute.xlu0 %2150 }
0x17b6   :  { %v2153_v51 = vmul.f32 %v2151_v46, %v2148_v6 }
0x17b8   :  { %v4760_v52 = vadd.f32 %v2154_v48, %v2153_v51 }
0x17ba   :  { %v2156_v50 = vpack.c.bf16 %v4760_v52, %v4760_v52 }
0x17bc   :  { %3620 = vmatmul.mubr.msk.bf16.vlgmr.msra.gmra.mrb[40].mxu0 %vm203_vm1, %v2156_v50  ;;  %3628 = vmatmul.mubr.msk.bf16.vlgmr.msra.gmra.mrb[40].mxu1 %vm203_vm1, %v2156_v50 }
0x17bd   :  { %3632 = vmatpush3.bf16.msra.mxu0 %v3773_v53  ;;  %3635 = vmatprep.mubr.msk.bf16.mxu0 %vm4140_vm0, %v4139_v1 }
0x17be   :  { %3633 = vmatprep.subr.bf16.mxu0 %v4139_v1  ;;  %3643 = vmatprep.mubr.msk.bf16.mxu1 %vm4140_vm0, %v4139_v1 }
0x17c1   :  { %3634 = vmatpush3.bf16.msra.mxu0 %v3774_v55 }
0x17c2   :  { %3647 = vmatprep.subr.bf16.mxu0 %v4139_v1 }
0x17c4   :  { %3636 = vmatmul.mubr.msk.bf16.vlgmr.msra.gmra.mrb[44].mxu0 %vm203_vm1, %v2440_v26 }
0x17c5   :  { %3648 = vmatpush3.bf16.msra.mxu0 %v3775_v5  ;;  %3651 = vmatprep.mubr.msk.bf16.mxu0 %vm4140_vm0, %v4139_v1 }
0x17c6   :  { %3649 = vmatprep.subr.bf16.mxu0 %v4139_v1 }
0x17c9   :  { %3650 = vmatpush3.bf16.msra.mxu0 %v3776_v56 }
0x17ca   :  { %3663 = vmatprep.subr.bf16.mxu0 %v4139_v1 }
0x17cc   :  { %3652 = vmatmul.mubr.msk.bf16.vlgmr.msra.gmra.mrb[48].mxu0 %vm203_vm1, %v2156_v50 }
0x17cd   :  { %3667 = vmatprep.mubr.msk.bf16.mxu0 %vm4140_vm0, %v4139_v1 }
0x188f   :  { %v2217_v59 = vpop.f32.mrb[40].mxu0  ;;  %v2287_v60 = vpop.f32.mrb[40].mxu1 }
0x1890   :  { %v2218_v61 = vadd.f32 %v4789_v38, %v2217_v59  ;;  %v2300_v62 = vrot.slane %v2287_v60, %v4395_v18  ;;  %v3621_v63 = vpop.f32.mrb[41].mxu0  ;;  %v3629_v0 = vpop.f32.mrb[41].mxu1 }
0x1891   :  { %v2220_v2 = vpop.f32.mrb[42].mxu0  ;;  %v2290_v4 = vpop.f32.mrb[42].mxu1 }
0x1892   :  { %2224 = vst [vmem:[#allocation18 + $0x6] sm:$0x3] %v2218_v61  ;;  %v2301_v10 = vcombine.high %v2300_v62, %v2300_v62  ;;  %v2308_v11 = vrot.slane %v2300_v62, %v4395_v18  ;;  %v3622_v42 = vpop.f32.mrb[43].mxu0  ;;  %v3630_v13 = vpop.f32.mrb[43].mxu1 }
0x1894   :  { %v2315_v14 = vrot.slane %v2301_v10, %v4395_v18  ;;  %v2319_v15 = vrot.slane %v2308_v11, %v4401_v22 }
0x1896   :  { %v2323_v16 = vrot.slane %v2315_v14, %v4401_v22  ;;  %v2326_v31 = vadd.f32 %v2319_v15, %v4404_v29  ;;  %v3777_v14 = vld [vmem:[#allocation12] sm:$0xff]   ;;  %v3778_v15 = vld [vmem:[#allocation12 + $0x8] sm:$0xff]  }
0x1897   :  { %v4798_v12 = vpop.f32.mrb[44].mxu0  ;;  %3640 = vmatpush3.bf16.msra.mxu1 %v3777_v14 }
0x1898   :  { %v3637_v17 = vpop.f32.mrb[45].mxu0  ;;  %v2328_v19 = vmax.f32 %v2326_v31, 0.0  ;;  %v2327_v20 = vadd.f32 %v2323_v16, %v4409_v36  ;;  %3641 = vmatprep.subr.bf16.mxu1 %v4139_v1 }
0x1899   :  { %v2497_v21 = vpop.f32.mrb[46].mxu0 }
0x189a   :  { %v2330_v23 = vmul.f32 %v4705_v58, %v2328_v19  ;;  %v3638_v24 = vpop.f32.mrb[47].mxu0  ;;  %v2329_v25 = vmax.f32 %v2327_v20, 0.0 }
0x189b   :  { %3642 = vmatpush3.bf16.msra.mxu1 %v3778_v15 }
0x189c   :  { %v2332_v27 = vsel %vm203_vm1, %v2330_v23, 0.0  ;;  %v2331_v28 = vmul.f32 %v4705_v58, %v2329_v25  ;;  %3655 = vmatprep.subr.bf16.mxu1 %v4139_v1 }
0x189d   :  { %2333 = vadd.xlane.f32.xlu0 %v2332_v27 }
0x189e   :  { %v2335_v9 = vsel %vm203_vm1, %v2331_v28, 0.0 }
0x189f   :  { %2336 = vadd.xlane.f32.xlu1 %v2335_v9  ;;  %v2612_v3 = vpop.f32.mrb[48].mxu0 }
0x18a0   :  { %v3653_v30 = vpop.f32.mrb[49].mxu0  ;;  %v2613_v13 = vadd.f32 %v4725_v45, %v2612_v3 }
0x18a1   :  { %v2615_v32 = vpop.f32.mrb[50].mxu0 }
0x18a2   :  { %v3654_v33 = vpop.f32.mrb[51].mxu0 }
0x192a   :  { %v2334_v35 = vpop.xlane.xlu0 %2333 }
0x192b   :  { %v2338_v37 = vadd.f32 %v2334_v35, %v4419_v47 }
0x192c   :  { %v2337_v54 = vpop.xlane.xlu1 %2336 }
0x192d   :  { %v2339_v39 = vadd.f32 %v2337_v54, %v4419_v47  ;;  %v2345_v40 = vrot.slane %v2338_v37, %v4421_v49 }
0x192f   :  { %v2349_v41 = vrot.slane %v2339_v39, %v4421_v49 }
0x1931   :  { %v2350_v43 = vsel %vm387_vm2, %v2349_v41, %v2345_v40 }
0x1932   :  { %v2352_v44 = vsel %vm390_vm3, %v2350_v43, -inf }
0x1933   :  { %2353 = vmax.xlane.f32.xlu1 %v2352_v44 }
0x19c0   :  { %v2354_v6 = vpop.xlane.xlu1 %2353 }
0x19c1   :  { %v2359_v46 = vrot.slane %v2354_v6, %v4401_v22  ;;  %v2363_v48 = vrot.slane %v2354_v6, %v4429_v57 }
0x19c3   :  { %v2366_v51 = vsub.f32 %v2338_v37, %v2359_v46  ;;  %v2367_v53 = vsub.f32 %v2339_v39, %v2363_v48 }
0x19c5   :  { %v2368_v50 = vmul.f32 1.442695, %v2366_v51  ;;  %v2370_v55 = vmul.f32 1.442695, %v2367_v53 }
0x19c7   :  { %3839 = vpow2.f32 %v2368_v50 }
0x19c8   :  { %3841 = vpow2.f32 %v2370_v55 }
0x19d1   :  { %v3840_v26 = vpop.eup %3839 }
0x19d2   :  { %2375 = vperm.xlu1 %3727, %v3840_v26   ;;  %v3842_v5 = vpop.eup %3841 }
0x19d6   :  { %2378 = vperm.xlu1 %3727, %v3842_v5  }
0x1a51   :  { %v2376_v56 = vpop.permute.xlu1 %2375 }
0x1a52   :  { %v2383_v60 = vrot.slane %v2376_v56, %v4421_v49 }
0x1a55   :  { %v2379_v59 = vpop.permute.xlu1 %2378 }
0x1a56   :  { %v2387_v61 = vrot.slane %v2379_v59, %v4421_v49 }
0x1a58   :  { %v2388_v62 = vsel %vm387_vm2, %v2387_v61, %v2383_v60 }
0x1a59   :  { %v2390_v63 = vsel %vm390_vm3, %v2388_v62, 0.0 }
0x1a5a   :  { %2391 = vadd.xlane.f32.xlu1 %v2390_v63 }
0x1ae7   :  { %v2392_v0 = vpop.xlane.xlu1 %2391 }
0x1ae8   :  { %3843 = vrcp.f32 %v2392_v0 }
0x1af2   :  { %v3844_v2 = vpop.eup %3843 }
0x1af3   :  { %v2398_v4 = vrot.slane %v3844_v2, %v4401_v22  ;;  %v2402_v11 = vrot.slane %v3844_v2, %v4429_v57  ;;  %v3779_v2 = vld [vmem:[#allocation9] sm:$0xff]  }
0x1af4   :  { %3664 = vmatpush3.bf16.msra.mxu0 %v3779_v2 }
0x1af5   :  { %v2405_v10 = vmul.f32 %v3840_v26, %v2398_v4  ;;  %v2406_v42 = vmul.f32 %v3842_v5, %v2402_v11  ;;  %3665 = vmatprep.subr.bf16.mxu0 %v4139_v1  ;;  %v3781_v11 = vld [vmem:[#allocation9 + $0x8] sm:$0xff]  }
0x1af7   :  { %2409 = vperm.xlu0 %3728, %v2405_v10  }
0x1af8   :  { %3666 = vmatpush3.bf16.msra.mxu0 %v3781_v11 }
0x1af9   :  { %3679 = vmatprep.subr.bf16.mxu0 %v4139_v1 }
0x1afb   :  { %2414 = vperm.xlu0 %3728, %v2406_v42   ;;  %v3782_v42 = vld [vmem:[%s4972_s13 + $0x8] sm:$0xff]  }
0x1aff   :  { %2626 = vrot.lane.b32.xlu0 %v2613_v13, %s4143_s6 }
0x1b76   :  { %v2410_v16 = vpop.permute.xlu0 %2409 }
0x1b77   :  { %v2417_v31 = vmul.f32 %v4638_v7, %v2410_v16  ;;  %v2716_v21 = vrot.slane %v2410_v16, %v4421_v49 }
0x1b79   :  { %v2419_v17 = vsel %vm203_vm1, %v2417_v31, 0.0 }
0x1b7a   :  { %v2420_v19 = vrot.slane %v2419_v17, 4  ;;  %v2415_v20 = vpop.permute.xlu0 %2414 }
0x1b7b   :  { %v2418_v23 = vmul.f32 %v4643_v34, %v2415_v20  ;;  %v2720_v24 = vrot.slane %v2415_v20, %v4421_v49 }
0x1b7c   :  { %v2421_v25 = vadd.f32 %v2420_v19, %v2419_v17  ;;  %v3783_v19 = vld [vmem:[%s4968_s9] sm:$0xff]  }
0x1b7d   :  { %v2426_v27 = vsel %vm203_vm1, %v2418_v23, 0.0  ;;  %v2721_v28 = vsel %vm387_vm2, %v2720_v24, %v2716_v21  ;;  %v3784_v21 = vld [vmem:[%s4968_s9 + $0x8] sm:$0xff]   ;;  %v3785_v23 = vld [vmem:[#allocation15] sm:$0xff]  }
0x1b7e   :  { %v2422_v9 = vrot.slane %v2421_v25, 2  ;;  %v2427_v3 = vrot.slane %v2426_v27, 4  ;;  %2724 = vst.msk [vmem:[#allocation19 + $0x8] sm:$0x3] %vm390_vm3, %v2721_v28  ;;  %v2627_v63 = vpop.permute.xlu0 %2626  ;;  %v3786_v24 = vld [vmem:[#allocation15 + $0x8] sm:$0xff]  }
0x1b80   :  { %v2423_v30 = vadd.f32 %v2422_v9, %v2421_v25  ;;  %v2428_v32 = vadd.f32 %v2427_v3, %v2426_v27 }
0x1b82   :  { %v2424_v33 = vrot.slane %v2423_v30, 1  ;;  %v2429_v35 = vrot.slane %v2428_v32, 2 }
0x1b84   :  { %v2425_v37 = vadd.f32 %v2424_v33, %v2423_v30  ;;  %v2430_v54 = vadd.f32 %v2429_v35, %v2428_v32 }
0x1b86   :  { %v2431_v39 = vrot.slane %v2430_v54, 1  ;;  %v2433_v40 = vpack.c.bf16 %v2425_v37, %v2425_v37 }
0x1b88   :  { %v2432_v41 = vadd.f32 %v2431_v39, %v2430_v54  ;;  %v2502_v44 = vunpack.c.l.b16 %v2433_v40 }
0x1b8a   :  { %v2434_v43 = vpack.c.bf16 %v2432_v41, %v2432_v41 }
0x1b8c   :  { %v2503_v6 = vunpack.c.l.b16 %v2434_v43 }
0x1b8e   :  { %v2504_v46 = vsel %vm387_vm2, %v2503_v6, %v2502_v44 }
0x1b8f   :  { %v2505_v48 = vpack.c.b16 %v2504_v46, %v2504_v46 }
0x1b91   :  { %3644 = vmatmul.mubr.msk.bf16.vlgmr.msra.gmra.mrb[44].mxu1 %vm203_vm1, %v2505_v48 }
0x1b92   :  { %3659 = vmatprep.mubr.msk.bf16.mxu1 %vm4140_vm0, %v4139_v1 }
0x1c64   :  { %v2555_v51 = vpop.f32.mrb[44].mxu1 }
0x1c65   :  { %v2556_v53 = vadd.f32 %v2555_v51, %v4798_v12  ;;  %v3645_v50 = vpop.f32.mrb[45].mxu1  ;;  %v3780_v12 = vld [vmem:[%s4972_s13] sm:$0xff]  }
0x1c66   :  { %v2558_v55 = vpop.f32.mrb[46].mxu1  ;;  %3656 = vmatpush3.bf16.msra.mxu1 %v3780_v12 }
0x1c67   :  { %v2561_v26 = vadd.f32 %v4744_v8, %v2556_v53  ;;  %v3646_v5 = vpop.f32.mrb[47].mxu1  ;;  %3657 = vmatprep.subr.bf16.mxu1 %v4139_v1 }
0x1c69   :  { %v2618_v56 = vadd.f32 %v2613_v13, %v2561_v26 }
0x1c6a   :  { %3658 = vmatpush3.bf16.msra.mxu1 %v3782_v42 }
0x1c6b   :  { %v3339_v59 = vmul.f32 -1.442695, %v2618_v56  ;;  %3671 = vmatprep.subr.bf16.mxu1 %v4139_v1 }
0x1c6d   :  { %3845 = vpow2.f32 %v3339_v59 }
0x1c77   :  { %v3846_v60 = vpop.eup %3845 }
0x1c78   :  { %v2622_v61 = vadd.f32 1.0, %v3846_v60 }
0x1c7a   :  { %3847 = vrcp.f32 %v2622_v61 }
0x1c84   :  { %v3848_v62 = vpop.eup %3847 }
0x1c85   :  { %v2629_v0 = vmul.f32 %v3848_v62, %v2627_v63  ;;  %v2636_v14 = vsub.f32 1.0, %v3848_v62  ;;  %v2642_v16 = vmul.f32 %v3848_v62, %v4760_v52  ;;  %v2928_v52 = vld [vmem:[#allocation3 + $0x5] sm:$0x1] }
0x1c87   :  { %2631 = vrot.lane.b32.xlu0 %v2629_v0, %s4144_s19 }
0x1cf9   :  { %v2632_v4 = vpop.permute.xlu0 %2631 }
0x1cfa   :  { %v2634_v10 = vadd.f32 %v2632_v4, %v2561_v26 }
0x1cfc   :  { %3849 = vtanh.f32 %v2634_v10 }
0x1d06   :  { %v3850_v13 = vpop.eup %3849 }
0x1d07   :  { %2638 = vrot.lane.b32.xlu0 %v3850_v13, %s4128_s1 }
0x1d79   :  { %v2639_v15 = vpop.permute.xlu0 %2638 }
0x1d7a   :  { %v2641_v31 = vmul.f32 %v2639_v15, %v2636_v14 }
0x1d7c   :  { %v4850_v17 = vadd.f32 %v2642_v16, %v2641_v31 }
0x1d7e   :  { %v2644_v20 = vpack.c.bf16 %v4850_v17, %v4850_v17 }
0x1d80   :  { %3660 = vmatmul.mubr.msk.bf16.vlgmr.msra.gmra.mrb[48].mxu1 %vm203_vm1, %v2644_v20  ;;  %3668 = vmatmul.mubr.msk.bf16.vlgmr.msra.gmra.mrb[52].mxu0 %vm203_vm1, %v2644_v20 }
0x1d81   :  { %3672 = vmatpush3.bf16.msra.mxu1 %v3783_v19  ;;  %3675 = vmatprep.mubr.msk.bf16.mxu1 %vm4140_vm0, %v4139_v1 }
0x1d82   :  { %3673 = vmatprep.subr.bf16.mxu1 %v4139_v1  ;;  %3683 = vmatprep.mubr.msk.bf16.mxu0 %vm4140_vm0, %v4139_v1 }
0x1d85   :  { %3674 = vmatpush3.bf16.msra.mxu1 %v3784_v21 }
0x1d86   :  { %3687 = vmatprep.subr.bf16.mxu1 %v4139_v1 }
0x1d88   :  { %3676 = vmatmul.mubr.msk.bf16.vlgmr.msra.gmra.mrb[52].mxu1 %vm203_vm1, %v2928_v52 }
0x1d89   :  { %3688 = vmatpush3.bf16.msra.mxu1 %v3785_v23  ;;  %3691 = vmatprep.mubr.msk.bf16.mxu1 %vm4140_vm0, %v4139_v1 }
0x1d8a   :  { %3689 = vmatprep.subr.bf16.mxu1 %v4139_v1 }
0x1d8d   :  { %3690 = vmatpush3.bf16.msra.mxu1 %v3786_v24 }
0x1d90   :  { %3692 = vmatmul.mubr.msk.bf16.vlgmr.msra.gmra.mrb[56].mxu1 %vm203_vm1, %v2644_v20 }
0x1e53   :  { %v2705_v25 = vpop.f32.mrb[48].mxu1  ;;  %v2775_v27 = vpop.f32.mrb[52].mxu0 }
0x1e54   :  { %v2706_v28 = vadd.f32 %v4789_v38, %v2705_v25  ;;  %v2788_v9 = vrot.slane %v2775_v27, %v4395_v18  ;;  %v3661_v3 = vpop.f32.mrb[49].mxu1  ;;  %v3669_v30 = vpop.f32.mrb[53].mxu0 }
0x1e55   :  { %v2708_v32 = vpop.f32.mrb[50].mxu1  ;;  %v2778_v33 = vpop.f32.mrb[54].mxu0 }
0x1e56   :  { %2712 = vst [vmem:[#allocation18 + $0x8] sm:$0x3] %v2706_v28  ;;  %v2789_v35 = vcombine.high %v2788_v9, %v2788_v9  ;;  %v2796_v37 = vrot.slane %v2788_v9, %v4395_v18  ;;  %v3662_v54 = vpop.f32.mrb[51].mxu1  ;;  %v3670_v39 = vpop.f32.mrb[55].mxu0  ;;  %v3787_v33 = vld [vmem:[#allocation12] sm:$0xff]  }
0x1e57   :  { %3680 = vmatpush3.bf16.msra.mxu0 %v3787_v33 }
0x1e58   :  { %v2803_v40 = vrot.slane %v2789_v35, %v4395_v18  ;;  %v2807_v41 = vrot.slane %v2796_v37, %v4401_v22  ;;  %3681 = vmatprep.subr.bf16.mxu0 %v4139_v1  ;;  %v3788_v35 = vld [vmem:[#allocation12 + $0x8] sm:$0xff]  }
0x1e5a   :  { %v2811_v43 = vrot.slane %v2803_v40, %v4401_v22  ;;  %v2814_v44 = vadd.f32 %v2807_v41, %v4404_v29 }
0x1e5b   :  { %v4880_v6 = vpop.f32.mrb[52].mxu1  ;;  %3682 = vmatpush3.bf16.msra.mxu0 %v3788_v35 }
0x1e5c   :  { %v3677_v46 = vpop.f32.mrb[53].mxu1  ;;  %v2816_v48 = vmax.f32 %v2814_v44, 0.0  ;;  %v2815_v51 = vadd.f32 %v2811_v43, %v4409_v36  ;;  %3695 = vmatprep.subr.bf16.mxu0 %v4139_v1 }
0x1e5d   :  { %v2985_v53 = vpop.f32.mrb[54].mxu1 }
0x1e5e   :  { %v2818_v50 = vmul.f32 %v4705_v58, %v2816_v48  ;;  %v3678_v55 = vpop.f32.mrb[55].mxu1  ;;  %v2817_v26 = vmax.f32 %v2815_v51, 0.0 }
0x1e60   :  { %v2820_v5 = vsel %vm203_vm1, %v2818_v50, 0.0  ;;  %v2819_v18 = vmul.f32 %v4705_v58, %v2817_v26 }
0x1e61   :  { %2821 = vadd.xlane.f32.xlu1 %v2820_v5 }
0x1e62   :  { %v2823_v56 = vsel %vm203_vm1, %v2819_v18, 0.0 }
0x1e63   :  { %v3100_v59 = vpop.f32.mrb[56].mxu1  ;;  %2824 = vadd.xlane.f32.xlu0 %v2823_v56 }
0x1e64   :  { %v3693_v29 = vpop.f32.mrb[57].mxu1  ;;  %v3101_v32 = vadd.f32 %v4725_v45, %v3100_v59 }
0x1e65   :  { %v3103_v60 = vpop.f32.mrb[58].mxu1 }
0x1e66   :  { %v3694_v61 = vpop.f32.mrb[59].mxu1 }
0x1eee   :  { %v2822_v62 = vpop.xlane.xlu1 %2821 }
0x1eef   :  { %v2826_v36 = vadd.f32 %v2822_v62, %v4419_v47 }
0x1ef0   :  { %v2825_v63 = vpop.xlane.xlu0 %2824 }
0x1ef1   :  { %v2827_v0 = vadd.f32 %v2825_v63, %v4419_v47  ;;  %v2833_v2 = vrot.slane %v2826_v36, %v4421_v49 }
0x1ef3   :  { %v2837_v12 = vrot.slane %v2827_v0, %v4421_v49 }
0x1ef5   :  { %v2838_v58 = vsel %vm387_vm2, %v2837_v12, %v2833_v2 }
0x1ef6   :  { %v2840_v4 = vsel %vm390_vm3, %v2838_v58, -inf }
0x1ef7   :  { %2841 = vmax.xlane.f32.xlu1 %v2840_v4 }
0x1f84   :  { %v2842_v10 = vpop.xlane.xlu1 %2841 }
0x1f85   :  { %v2847_v11 = vrot.slane %v2842_v10, %v4401_v22  ;;  %v2851_v42 = vrot.slane %v2842_v10, %v4429_v57 }
0x1f87   :  { %v2854_v13 = vsub.f32 %v2826_v36, %v2847_v11  ;;  %v2855_v14 = vsub.f32 %v2827_v0, %v2851_v42 }
0x1f89   :  { %v2856_v15 = vmul.f32 1.442695, %v2854_v13  ;;  %v2858_v16 = vmul.f32 1.442695, %v2855_v14 }
0x1f8b   :  { %3851 = vpow2.f32 %v2856_v15 }
0x1f8c   :  { %3853 = vpow2.f32 %v2858_v16  ;;  %v3790_v16 = vld [vmem:[%s4972_s13 + $0x8] sm:$0xff]  }
0x1f95   :  { %v3852_v47 = vpop.eup %3851 }
0x1f96   :  { %2863 = vperm.xlu1 %3727, %v3852_v47   ;;  %v3854_v31 = vpop.eup %3853 }
0x1f9a   :  { %2866 = vperm.xlu1 %3727, %v3854_v31  }
0x2015   :  { %v2864_v19 = vpop.permute.xlu1 %2863 }
0x2016   :  { %v2871_v21 = vrot.slane %v2864_v19, %v4421_v49 }
0x2019   :  { %v2867_v20 = vpop.permute.xlu1 %2866 }
0x201a   :  { %v2875_v52 = vrot.slane %v2867_v20, %v4421_v49 }
0x201c   :  { %v2876_v23 = vsel %vm387_vm2, %v2875_v52, %v2871_v21 }
0x201d   :  { %v2878_v24 = vsel %vm390_vm3, %v2876_v23, 0.0 }
0x201e   :  { %2879 = vadd.xlane.f32.xlu1 %v2878_v24 }
0x20ab   :  { %v2880_v25 = vpop.xlane.xlu1 %2879 }
0x20ac   :  { %3855 = vrcp.f32 %v2880_v25 }
0x20b6   :  { %v3856_v27 = vpop.eup %3855 }
0x20b7   :  { %v2886_v28 = vrot.slane %v3856_v27, %v4401_v22  ;;  %v2890_v3 = vrot.slane %v3856_v27, %v4429_v57 }
0x20b9   :  { %v2893_v9 = vmul.f32 %v3852_v47, %v2886_v28  ;;  %v2894_v30 = vmul.f32 %v3854_v31, %v2890_v3 }
0x20bb   :  { %2897 = vperm.xlu0 %3728, %v2893_v9  }
0x20bf   :  { %2902 = vperm.xlu0 %3728, %v2894_v30  }
0x20c3   :  { %3114 = vrot.lane.b32.xlu0 %v3101_v32, %s4143_s6 }
0x213a   :  { %v2898_v37 = vpop.permute.xlu0 %2897 }
0x213b   :  { %v2905_v22 = vmul.f32 %v4638_v7, %v2898_v37  ;;  %v3204_v40 = vrot.slane %v2898_v37, %v4421_v49 }
0x213d   :  { %v2907_v57 = vsel %vm203_vm1, %v2905_v22, 0.0 }
0x213e   :  { %v2908_v54 = vrot.slane %v2907_v57, 4  ;;  %v2903_v39 = vpop.permute.xlu0 %2902 }
0x213f   :  { %v2906_v45 = vmul.f32 %v4643_v34, %v2903_v39  ;;  %v3208_v41 = vrot.slane %v2903_v39, %v4421_v49 }
0x2140   :  { %v2909_v43 = vadd.f32 %v2908_v54, %v2907_v57 }
0x2141   :  { %v2914_v44 = vsel %vm203_vm1, %v2906_v45, 0.0  ;;  %v3209_v46 = vsel %vm387_vm2, %v3208_v41, %v3204_v40 }
0x2142   :  { %v2910_v48 = vrot.slane %v2909_v43, 2  ;;  %v2915_v51 = vrot.slane %v2914_v44, 4  ;;  %3212 = vst.msk [vmem:[#allocation19 + $0xa] sm:$0x3] %vm390_vm3, %v3209_v46  ;;  %v3115_v13 = vpop.permute.xlu0 %3114 }
0x2144   :  { %v2911_v7 = vadd.f32 %v2910_v48, %v2909_v43  ;;  %v2916_v53 = vadd.f32 %v2915_v51, %v2914_v44 }
0x2146   :  { %v2912_v50 = vrot.slane %v2911_v7, 1  ;;  %v2917_v55 = vrot.slane %v2916_v53, 2 }
0x2148   :  { %v2913_v26 = vadd.f32 %v2912_v50, %v2911_v7  ;;  %v2918_v5 = vadd.f32 %v2917_v55, %v2916_v53 }
0x214a   :  { %v2919_v18 = vrot.slane %v2918_v5, 1  ;;  %v2921_v56 = vpack.c.bf16 %v2913_v26, %v2913_v26 }
0x214c   :  { %v2920_v34 = vadd.f32 %v2919_v18, %v2918_v5  ;;  %v2990_v49 = vunpack.c.l.b16 %v2921_v56 }
0x214e   :  { %v2922_v59 = vpack.c.bf16 %v2920_v34, %v2920_v34 }
0x2150   :  { %v2991_v29 = vunpack.c.l.b16 %v2922_v59 }
0x2152   :  { %v2992_v60 = vsel %vm387_vm2, %v2991_v29, %v2990_v49 }
0x2153   :  { %v2993_v61 = vpack.c.b16 %v2992_v60, %v2992_v60 }
0x2155   :  { %3684 = vmatmul.mubr.msk.bf16.vlgmr.msra.gmra.mrb[56].mxu0 %vm203_vm1, %v2993_v61 }
0x2156   :  { %3699 = vmatprep.mubr.msk.bf16.mxu0 %vm4140_vm0, %v4139_v1 }
0x2228   :  { %v3043_v62 = vpop.f32.mrb[56].mxu0 }
0x2229   :  { %v3044_v36 = vadd.f32 %v3043_v62, %v4880_v6  ;;  %v3685_v63 = vpop.f32.mrb[57].mxu0  ;;  %v3789_v6 = vld [vmem:[%s4972_s13] sm:$0xff]  }
0x222a   :  { %v3046_v0 = vpop.f32.mrb[58].mxu0  ;;  %3696 = vmatpush3.bf16.msra.mxu0 %v3789_v6 }
0x222b   :  { %v3049_v2 = vadd.f32 %v4744_v8, %v3044_v36  ;;  %v3686_v12 = vpop.f32.mrb[59].mxu0  ;;  %3697 = vmatprep.subr.bf16.mxu0 %v4139_v1 }
0x222d   :  { %v3106_v58 = vadd.f32 %v3101_v32, %v3049_v2 }
0x222e   :  { %3698 = vmatpush3.bf16.msra.mxu0 %v3790_v16 }
0x222f   :  { %v3356_v4 = vmul.f32 -1.442695, %v3106_v58 }
0x2231   :  { %3857 = vpow2.f32 %v3356_v4 }
0x223b   :  { %v3858_v10 = vpop.eup %3857 }
0x223c   :  { %v3110_v11 = vadd.f32 1.0, %v3858_v10 }
0x223e   :  { %3859 = vrcp.f32 %v3110_v11 }
0x2248   :  { %v3860_v42 = vpop.eup %3859 }
0x2249   :  { %v3117_v14 = vmul.f32 %v3860_v42, %v3115_v13  ;;  %v3124_v31 = vsub.f32 1.0, %v3860_v42  ;;  %v3130_v20 = vmul.f32 %v3860_v42, %v4850_v17 }
0x224b   :  { %3119 = vrot.lane.b32.xlu0 %v3117_v14, %s4144_s19 }
0x22bd   :  { %v3120_v8 = vpop.permute.xlu0 %3119 }
0x22be   :  { %v3122_v15 = vadd.f32 %v3120_v8, %v3049_v2 }
0x22c0   :  { %3861 = vtanh.f32 %v3122_v15 }
0x22ca   :  { %v3862_v47 = vpop.eup %3861 }
0x22cb   :  { %3126 = vrot.lane.b32.xlu1 %v3862_v47, %s4128_s1 }
0x233d   :  { %v3127_v19 = vpop.permute.xlu1 %3126 }
0x233e   :  { %v3129_v21 = vmul.f32 %v3127_v19, %v3124_v31 }
0x2340   :  { %v3131_v52 = vadd.f32 %v3130_v20, %v3129_v21 }
0x2342   :  { %v3132_v23 = vpack.c.bf16 %v3131_v52, %v3131_v52 }
0x2344   :  { %3700 = vmatmul.mubr.msk.bf16.vlgmr.msra.gmra.mrb[60].mxu0 %vm203_vm1, %v3132_v23 }
0x2345   :  { %4077 = shalt.err (!%p4074_p6)
}
0x2346   :  { %s4078_s26 = scalar_lea.hbm %s4975_s16, 192 }
0x2347   :  { %p4079_p7 = scmp.ne.s32.totalorder %s4975_s16, %s4078_s26  ;;  %p4082_p8 = scmp.lt.u32.totalorder %s4078_s26, %s4975_s16 }
0x2349   :  { %p4084_p9 = pnand %p4082_p8, %p4079_p7 }
0x234b   :  { %4087 = shalt.err (!%p4084_p9)
}
0x234c   :  { %s4146_s27 = smov 2   ;;  %s4147_s18 = smov [#allocation18]  }
0x234d   :  { %3236 = dma.vmem_to_hbm [thread:$0]  %s3231_s21, 192, %s4975_s16, [#allocation20], %s4144_s19, %s4144_s19, %s4146_s27  }
0x234e   :  { %s3218_s10 = sshll.u32 %s4147_s18, 4  ;;  %s3219_s10 = int_to_ptr.vmem [resolvable:$true] %s3218_s10 }
0x234f   :  { %s4088_s30 = scalar_lea.vmem %s3219_s10, 192  ;;  %p4093_p11 = scmp.lt.s32.totalorder %s3219_s10, %s3219_s10 }
0x2350   :  { %p4089_p10 = scmp.ne.s32.totalorder %s3219_s10, %s4088_s30  ;;  %p4094_p12 = scmp.lt.s32.totalorder %s4088_s30, %s4088_s30 }
0x2352   :  { %p4095_p13 = por %p4094_p12, %p4093_p11 }
0x2354   :  { %p4096_p0 = pnand %p4095_p13, %p4089_p10 }
0x2417   :  { %v3193_v1 = vpop.f32.mrb[60].mxu0 }
0x2418   :  { %v3194_v17 = vadd.f32 %v4789_v38, %v3193_v1  ;;  %v3701_v24 = vpop.f32.mrb[61].mxu0 }
0x2419   :  { %v3196_v25 = vpop.f32.mrb[62].mxu0 }
0x241a   :  { %3200 = vst [vmem:[#allocation18 + $0xa] sm:$0x3] %v3194_v17  ;;  %v3702_v27 = vpop.f32.mrb[63].mxu0 }
0x241b   :  { %4099 = shalt.err (!%p4096_p0)
}
0x241c   :  { %s4100_s16 = scalar_lea.hbm %s4974_s15, 192 }
0x241d   :  { %p4101_p1 = scmp.ne.s32.totalorder %s4974_s15, %s4100_s16  ;;  %p4104_p2 = scmp.lt.u32.totalorder %s4100_s16, %s4974_s15 }
0x241f   :  { %p4106_p3 = pnand %p4104_p2, %p4101_p1 }
0x2421   :  { %4109 = shalt.err (!%p4106_p3)
}
0x2422   :  { %3224 = dma.vmem_to_hbm [thread:$0]  %s3219_s10, 192, %s4974_s15, [#allocation5], %s4144_s19, %s4144_s19, %s4146_s27  }
0x2423   :  { %4120 = dma.done.wait [#allocation5], 192  }
0x2424   :  { %4121 = vsyncadd [#allocation5], 4294967104 }
0x2425   :  { %4122 = dma.done.wait [#allocation20], 192  }
0x2426   :  { %4123 = vsyncadd [#allocation20], 4294967104 }
0x2427   :  { %3243 = vsyncpa [#allocation4], 1 }
0x2428   :  { %3244 = vsyncpa [#allocation7], 1 }
0x2429   :  { %3245 = vsyncpa [#allocation10], 1 }
0x242a   :  { %3246 = vsyncpa [#allocation13], 1 }
0x242b   :  { %3247 = vsyncpa [#allocation16], 1 }
0x242c   :  { %3248 = vsyncpa [#allocation5], 1 }
0x242d   :  { %3249 = vsyncpa [#allocation20], 1 }

</bundles_post_ra>
